<compile_context>
chip_gen: v7x
topology: tpu7x:2x2x1
jax: 0.10.0
libtpu: 0.0.40
codegen_flags: <defaults>
</compile_context>

<pallas_src>
import functools
import math

import jax
import jax.numpy as jnp
from jax.experimental import pallas as pl
from jax.experimental.pallas import tpu as pltpu


# ----------------------------------------------------------------------------
# Fused kernel: all layers, both directions, and the FC head in one launch.
# Packed gate-column order (per layer, both weight kinds):
#   [i_f i_b | f_f f_b | o_f o_b | g_f g_b]   (sigmoid gates first, tanh last)
# ----------------------------------------------------------------------------
def make_fused_lstm_kernel(T, B, H, num_layers):
    TWO_H = 2 * H

    def kernel(*refs):
        x_ref = refs[0]                                        # (T*B, Din0) time-major, flat
        wih_refs = refs[1:1 + num_layers]                      # (Din_l, 8H)  no zero padding
        whh_refs = refs[1 + num_layers:1 + 2 * num_layers]     # (2H, 8H)     block-diag
        (h0_ref, c0_ref, fcw_ref, fcb_ref) = refs[1 + 2 * num_layers:5 + 2 * num_layers]
        (ret_ref, hn_ref, cn_ref) = refs[5 + 2 * num_layers:8 + 2 * num_layers]
        xproj_buf, seq_buf, y_buf = refs[8 + 2 * num_layers:]

        # Static lane masks, built once for the whole kernel.
        lane8 = jax.lax.broadcasted_iota(jnp.int32, (B, 8 * H), 1)
        bwd_lane = (lane8 % TWO_H) >= H                        # backward-direction lanes
        lane2 = jax.lax.broadcasted_iota(jnp.int32, (B, TWO_H), 1)
        fwd_half = lane2 < H                                   # forward half of a (B,2H) slab

        def run_layer(l, xin):
            # (1) Hoisted input projection: one big-M matmul for the whole sequence
            #     and both directions (columns already in packed gate order).
            xp = jnp.dot(xin, wih_refs[l][...],
                         preferred_element_type=jnp.float32)   # (T*B, 8H)
            for p in range(T):                                 # static scatter -> (T,B,8H)
                xproj_buf[p] = xp[p * B:(p + 1) * B, :]

            w_hh = whh_refs[l][...]                            # (2H, 8H) block-diag
            h = jnp.concatenate([h0_ref[2 * l], h0_ref[2 * l + 1]], axis=-1)  # (B, 2H)
            c = jnp.concatenate([c0_ref[2 * l], c0_ref[2 * l + 1]], axis=-1)  # (B, 2H)

            # (2) Serial recurrence: per step, one tiny (B,2H)@(2H,8H) matmul,
            #     one sigmoid over (B,6H), one tanh over (B,2H), slab-wide c/h update.
            def step(t, carry):
                h, c = carry
                # fwd lanes use x[t]'s projection, bwd lanes use x[T-1-t]'s.
                xg = jnp.where(bwd_lane, xproj_buf[T - 1 - t], xproj_buf[t])
                gates = xg + jnp.dot(h, w_hh, preferred_element_type=jnp.float32)
                sg = jax.nn.sigmoid(gates[:, 0:6 * H])         # i, f, o (both dirs)
                gg = jnp.tanh(gates[:, 6 * H:8 * H])           # g       (both dirs)
                i = sg[:, 0:TWO_H]
                f = sg[:, TWO_H:2 * TWO_H]
                o = sg[:, 2 * TWO_H:3 * TWO_H]
                c = f * c + i * gg
                h = o * jnp.tanh(c)
                seq_buf[t] = h                                 # one full-row store / step
                return (h, c)

            h, c = jax.lax.fori_loop(0, T, step, (h, c), unroll=True)

            # Final states (PyTorch layout: index 2l = fwd, 2l+1 = bwd).
            hn_ref[2 * l] = h[:, 0:H]
            hn_ref[2 * l + 1] = h[:, H:TWO_H]
            cn_ref[2 * l] = c[:, 0:H]
            cn_ref[2 * l + 1] = c[:, H:TWO_H]

        # Layer 0 reads the (time-major, flattened) input sequence.
        run_layer(0, x_ref[...])
        for l in range(1, num_layers):
            # Re-time-order the previous layer's step-ordered outputs once per layer:
            # y[p] = [fwd(p) | bwd(p)] = [seq[p][:, :H] | seq[T-1-p][:, H:]].
            for p in range(T):
                y_buf[pl.ds(p * B, B), :] = jnp.where(
                    fwd_half, seq_buf[p], seq_buf[T - 1 - p])
            run_layer(l, y_buf[...])

        # FC epilogue on output[:, -1, :] of the last layer: VPU mul + lane reduce.
        last = jnp.where(fwd_half, seq_buf[T - 1], seq_buf[0])    # (B, 2H)
        ret_ref[...] = (jnp.sum(last * fcw_ref[...], axis=-1, keepdims=True)
                        + fcb_ref[...])

    return kernel


def lstm_forward(packed, x, hidden_state, *, num_layers, hidden_size):
    """x: (B, T, input_size) batch-first; hidden_state = (h0, c0), each (2L, B, H)."""
    h0, c0 = hidden_state
    B, T, Din = x.shape
    H = hidden_size
    # Time-major + flatten so the hoisted per-layer input projection is a single
    # M = T*B matmul (cheap one-time wrapper reshape).
    x_flat = jnp.transpose(x, (1, 0, 2)).reshape(T * B, Din)
    w_ih, w_hh = packed['w_ih'], packed['w_hh']

    kernel = make_fused_lstm_kernel(T, B, H, num_layers)

    in_specs = [pl.BlockSpec(x_flat.shape, lambda i: (0, 0))]
    in_specs += [pl.BlockSpec(w.shape, lambda i: (0, 0)) for w in w_ih]
    in_specs += [pl.BlockSpec(w.shape, lambda i: (0, 0)) for w in w_hh]
    in_specs += [
        pl.BlockSpec((2 * num_layers, B, H), lambda i: (0, 0, 0)),
        pl.BlockSpec((2 * num_layers, B, H), lambda i: (0, 0, 0)),
        pl.BlockSpec(packed['fc_w'].shape, lambda i: (0, 0)),
        pl.BlockSpec(packed['fc_b'].shape, lambda i: (0, 0)),
    ]
    out_specs = [
        pl.BlockSpec((B, 1), lambda i: (0, 0)),
        pl.BlockSpec((2 * num_layers, B, H), lambda i: (0, 0, 0)),
        pl.BlockSpec((2 * num_layers, B, H), lambda i: (0, 0, 0)),
    ]

    ret, h_n, c_n = pl.pallas_call(
        kernel,
        out_shape=(jax.ShapeDtypeStruct((B, 1), jnp.float32),
                   jax.ShapeDtypeStruct((2 * num_layers, B, H), jnp.float32),
                   jax.ShapeDtypeStruct((2 * num_layers, B, H), jnp.float32)),
        grid_spec=pltpu.PrefetchScalarGridSpec(
            num_scalar_prefetch=0,
            grid=(1,),
            in_specs=in_specs,
            out_specs=out_specs,
            scratch_shapes=[
                pltpu.VMEM((T, B, 8 * H), jnp.float32),    # hoisted input projection
                pltpu.VMEM((T, B, 2 * H), jnp.float32),    # step-ordered layer outputs
                pltpu.VMEM((T * B, 2 * H), jnp.float32),   # time-ordered layer input
            ],
        ),
        compiler_params=pltpu.CompilerParams(
            dimension_semantics=("arbitrary",),
            vmem_limit_bytes=32 * 1024 * 1024,             # explicit budget (v7x-safe)
        ),
    )(x_flat, *w_ih, *w_hh, h0, c0, packed['fc_w'], packed['fc_b'])
    return ret, (h_n, c_n)


# ----------------------------------------------------------------------------
# Parameters (PyTorch-equivalent, stored transposed, gate order [i,f,g,o]) and
# one-time packing into the column-reordered / direction-interleaved weights
# consumed by the kernel.
# ----------------------------------------------------------------------------
def init_params(key, input_size, hidden_size, num_layers):
    H = hidden_size
    k = 1.0 / math.sqrt(H)
    wih, whh = [], []
    for layer in range(num_layers):
        d_in = input_size if layer == 0 else 2 * H
        for _ in range(2):                                # fwd, bwd
            key, k1, k2 = jax.random.split(key, 3)
            # PyTorch stores W_ih (4H, d_in), W_hh (4H, H); we store transposed.
            wih.append(jax.random.uniform(k1, (d_in, 4 * H), jnp.float32, -k, k))
            whh.append(jax.random.uniform(k2, (H, 4 * H), jnp.float32, -k, k))
    key, k1, k2 = jax.random.split(key, 3)
    f = 2 * H
    kf = 1.0 / math.sqrt(f)
    fc_w_t = jax.random.uniform(k1, (f, 1), jnp.float32, -kf, kf)
    fc_b = jax.random.uniform(k2, (1, 1), jnp.float32, -kf, kf)
    return dict(wih=wih, whh=whh, fc_w_t=fc_w_t, fc_b=fc_b)


def pack_params(params, input_size, hidden_size, num_layers):
    """Pack per-layer weights into the kernel layout (done once, outside the kernel)."""
    H = hidden_size

    def reorder(w):                      # gate cols [i, f, g, o] -> [i, f, o, g]
        return jnp.concatenate(
            [w[:, 0:H], w[:, H:2 * H], w[:, 3 * H:4 * H], w[:, 2 * H:3 * H]], axis=1)

    def interleave(wf, wb):              # -> cols [i_f i_b f_f f_b o_f o_b g_f g_b]
        K = wf.shape[0]
        return jnp.stack([wf.reshape(K, 4, H), wb.reshape(K, 4, H)],
                         axis=2).reshape(K, 8 * H)

    w_ih, w_hh = [], []
    for l in range(num_layers):
        wi_f = reorder(params['wih'][2 * l])
        wi_b = reorder(params['wih'][2 * l + 1])
        w_ih.append(interleave(wi_f, wi_b))                       # (Din_l, 8H), dense
        wh_f = reorder(params['whh'][2 * l])
        wh_b = reorder(params['whh'][2 * l + 1])
        z = jnp.zeros_like(wh_f)
        w_hh.append(jnp.concatenate(
            [interleave(wh_f, z), interleave(z, wh_b)], axis=0))  # (2H, 8H) block-diag
    return dict(w_ih=w_ih, w_hh=w_hh,
                fc_w=jnp.transpose(params['fc_w_t']),             # (1, 2H)
                fc_b=params['fc_b'])


# ----------------------------------------------------------------------------
# Pure-JAX reference (same semantics as the PyTorch forward, eval mode).
# ----------------------------------------------------------------------------
def lstm_reference(params, x, hidden_state, *, num_layers, hidden_size):
    h0_all, c0_all = hidden_state
    H = hidden_size
    hp = jax.lax.Precision.HIGHEST
    layer_in = jnp.transpose(x, (1, 0, 2))                # (T, B, Din)
    hns, cns = [], []
    for l in range(num_layers):
        outs = []
        for d in range(2):
            idx = 2 * l + d
            seq = layer_in if d == 0 else layer_in[::-1]
            h, c = h0_all[idx], c0_all[idx]
            hs = []
            for t in range(seq.shape[0]):
                g = (jnp.dot(seq[t], params['wih'][idx], precision=hp)
                     + jnp.dot(h, params['whh'][idx], precision=hp))
                i = jax.nn.sigmoid(g[:, 0:H])
                f = jax.nn.sigmoid(g[:, H:2 * H])
                gg = jnp.tanh(g[:, 2 * H:3 * H])
                o = jax.nn.sigmoid(g[:, 3 * H:4 * H])
                c = f * c + i * gg
                h = o * jnp.tanh(c)
                hs.append(h)
            out = jnp.stack(hs, axis=0)
            outs.append(out[::-1] if d == 1 else out)
            hns.append(h)
            cns.append(c)
        layer_in = jnp.concatenate(outs, axis=-1)
    ret = jnp.dot(layer_in[-1], params['fc_w_t'], precision=hp) + params['fc_b']
    return ret, (jnp.stack(hns), jnp.stack(cns))


if __name__ == "__main__":
    # Module hyperparameters (small, consistent with the PyTorch forward).
    input_size, hidden_size, num_layers, bidirectional = 16, 32, 2, True
    batch, seq = 2, 8
    assert bidirectional, "fused kernel implements the bidirectional configuration"

    key = jax.random.PRNGKey(0)
    key, kp, kx = jax.random.split(key, 3)
    params = init_params(kp, input_size, hidden_size, num_layers)
    packed = pack_params(params, input_size, hidden_size, num_layers)

    x = jax.random.normal(kx, (batch, seq, input_size), jnp.float32)
    # init_state(batch): zeros of shape (num_layers * num_dirs, B, H)
    h0 = jnp.zeros((2 * num_layers, batch, hidden_size), jnp.float32)
    c0 = jnp.zeros((2 * num_layers, batch, hidden_size), jnp.float32)

    fwd = jax.jit(functools.partial(lstm_forward, num_layers=num_layers,
                                    hidden_size=hidden_size))
    ret, (h_n, c_n) = fwd(packed, x, (h0, c0))
    jax.block_until_ready((ret, h_n, c_n))

    assert ret.shape == (batch, 1)
    assert h_n.shape == (2 * num_layers, batch, hidden_size)
    assert c_n.shape == (2 * num_layers, batch, hidden_size)

    # Sanity check vs. the pure-JAX reference (loose tol: MXU f32 path differs).
    ret_r, (h_r, c_r) = lstm_reference(params, x, (h0, c0),
                                       num_layers=num_layers,
                                       hidden_size=hidden_size)
    assert jnp.allclose(ret, ret_r, atol=2e-2, rtol=2e-2)
    assert jnp.allclose(h_n, h_r, atol=2e-2, rtol=2e-2)
    assert jnp.allclose(c_n, c_r, atol=2e-2, rtol=2e-2)

    print("KERNEL_OK")
</pallas_src>

<mosaic_0001>
module attributes {stable_mosaic.version = 11 : i64} {
  func.func @kernel(%arg0: i32, %arg1: memref<16x16xf32, #tpu.memory_space<vmem>>, %arg2: memref<16x256xf32, #tpu.memory_space<vmem>>, %arg3: memref<64x256xf32, #tpu.memory_space<vmem>>, %arg4: memref<64x256xf32, #tpu.memory_space<vmem>>, %arg5: memref<64x256xf32, #tpu.memory_space<vmem>>, %arg6: memref<4x2x32xf32, #tpu.memory_space<vmem>>, %arg7: memref<4x2x32xf32, #tpu.memory_space<vmem>>, %arg8: memref<1x64xf32, #tpu.memory_space<vmem>>, %arg9: memref<1x1xf32, #tpu.memory_space<vmem>>, %arg10: memref<2x1xf32, #tpu.memory_space<vmem>>, %arg11: memref<4x2x32xf32, #tpu.memory_space<vmem>>, %arg12: memref<4x2x32xf32, #tpu.memory_space<vmem>>, %arg13: memref<8x2x256xf32, #tpu.memory_space<vmem>>, %arg14: memref<8x2x64xf32, #tpu.memory_space<vmem>>, %arg15: memref<16x64xf32, #tpu.memory_space<vmem>>) attributes {dimension_semantics = [#tpu.dimension_semantics<arbitrary>], iteration_bounds = array<i64: 1>, scalar_prefetch = 0 : i64, scratch_operands = 3 : i64, tpu.core_type = #tpu.core_type<tc>, window_params = [{pipeline_mode = #tpu.pipeline_mode<synchronous>, transform_indices = @transform_0, window_bounds = array<i64: 16, 16>}, {pipeline_mode = #tpu.pipeline_mode<synchronous>, transform_indices = @transform_1, window_bounds = array<i64: 16, 256>}, {pipeline_mode = #tpu.pipeline_mode<synchronous>, transform_indices = @transform_2, window_bounds = array<i64: 64, 256>}, {pipeline_mode = #tpu.pipeline_mode<synchronous>, transform_indices = @transform_3, window_bounds = array<i64: 64, 256>}, {pipeline_mode = #tpu.pipeline_mode<synchronous>, transform_indices = @transform_4, window_bounds = array<i64: 64, 256>}, {pipeline_mode = #tpu.pipeline_mode<synchronous>, transform_indices = @transform_5, window_bounds = array<i64: 4, 2, 32>}, {pipeline_mode = #tpu.pipeline_mode<synchronous>, transform_indices = @transform_6, window_bounds = array<i64: 4, 2, 32>}, {pipeline_mode = #tpu.pipeline_mode<synchronous>, transform_indices = @transform_7, window_bounds = array<i64: 1, 64>}, {pipeline_mode = #tpu.pipeline_mode<synchronous>, transform_indices = @transform_8, window_bounds = array<i64: 1, 1>}, {pipeline_mode = #tpu.pipeline_mode<synchronous>, transform_indices = @transform_9, window_bounds = array<i64: 2, 1>}, {pipeline_mode = #tpu.pipeline_mode<synchronous>, transform_indices = @transform_10, window_bounds = array<i64: 4, 2, 32>}, {pipeline_mode = #tpu.pipeline_mode<synchronous>, transform_indices = @transform_11, window_bounds = array<i64: 4, 2, 32>}]} {
    %0 = tpu.iota {dimensions = array<i32: 1>} : vector<2x256xi32>
    %c64_i32 = arith.constant 64 : i32
    %c0_i32 = arith.constant 0 : i32
    %1 = arith.cmpi eq, %c64_i32, %c0_i32 : i32
    %c1_i32 = arith.constant 1 : i32
    %2 = arith.select %1, %c1_i32, %c64_i32 : i32
    %3 = vector.broadcast %2 : i32 to vector<2x256xi32>
    %4 = arith.remsi %0, %3 : vector<2x256xi32>
    %c0_i32_0 = arith.constant 0 : i32
    %5 = vector.broadcast %c0_i32_0 : i32 to vector<2x256xi32>
    %6 = arith.cmpi ne, %4, %5 : vector<2x256xi32>
    %c0_i32_1 = arith.constant 0 : i32
    %7 = vector.broadcast %c0_i32_1 : i32 to vector<2x256xi32>
    %8 = arith.cmpi slt, %4, %7 : vector<2x256xi32>
    %c0_i32_2 = arith.constant 0 : i32
    %9 = arith.cmpi slt, %2, %c0_i32_2 : i32
    %10 = vector.broadcast %9 : i1 to vector<2x256xi1>
    %11 = vector.broadcast %10 : vector<2x256xi1> to vector<2x256xi1>
    %12 = arith.xori %8, %11 : vector<2x256xi1>
    %13 = arith.andi %12, %6 : vector<2x256xi1>
    %14 = vector.broadcast %2 : i32 to vector<2x256xi32>
    %15 = arith.addi %4, %14 : vector<2x256xi32>
    %16 = arith.select %13, %15, %4 : vector<2x256xi1>, vector<2x256xi32>
    %c32_i32 = arith.constant 32 : i32
    %17 = vector.broadcast %c32_i32 : i32 to vector<2x256xi32>
    %18 = arith.cmpi sge, %16, %17 : vector<2x256xi32>
    %19 = tpu.iota {dimensions = array<i32: 1>} : vector<2x64xi32>
    %c32_i32_3 = arith.constant 32 : i32
    %20 = vector.broadcast %c32_i32_3 : i32 to vector<2x64xi32>
    %21 = arith.cmpi slt, %19, %20 : vector<2x64xi32>
    %c0 = arith.constant 0 : index
    %c0_4 = arith.constant 0 : index
    %22 = vector.load %arg1[%c0, %c0_4] : memref<16x16xf32, #tpu.memory_space<vmem>>, vector<16x16xf32>
    %c0_5 = arith.constant 0 : index
    %c0_6 = arith.constant 0 : index
    %23 = vector.load %arg2[%c0_5, %c0_6] : memref<16x256xf32, #tpu.memory_space<vmem>>, vector<16x256xf32>
    %cst = arith.constant dense<0.000000e+00> : vector<16x256xf32>
    %24 = tpu.matmul %22, %23, %cst {dimension_numbers = #tpu.dot_dimension_numbers<[1], [0], [0], [1], [0, 0, 1, 1], [], []>} : vector<16x16xf32>, vector<16x256xf32>, vector<16x256xf32> -> vector<16x256xf32>
    %25 = vector.extract_strided_slice %24 {offsets = [0, 0], sizes = [2, 256], strides = [1, 1]} : vector<16x256xf32> to vector<2x256xf32>
    %c0_7 = arith.constant 0 : index
    %c0_8 = arith.constant 0 : index
    %c0_9 = arith.constant 0 : index
    %26 = vector.load %arg13[%c0_7, %c0_8, %c0_9] : memref<8x2x256xf32, #tpu.memory_space<vmem>>, vector<1x2x256xf32>
    %27 = vector.shape_cast %26 : vector<1x2x256xf32> to vector<2x256xf32>
    %28 = vector.shape_cast %25 : vector<2x256xf32> to vector<1x2x256xf32>
    tpu.vector_store %arg13[%c0_7, %c0_8, %c0_9], %28 {strides = array<i32>} : memref<8x2x256xf32, #tpu.memory_space<vmem>>, vector<1x2x256xf32>,
    %29 = vector.extract_strided_slice %24 {offsets = [2, 0], sizes = [2, 256], strides = [1, 1]} : vector<16x256xf32> to vector<2x256xf32>
    %c1 = arith.constant 1 : index
    %c0_10 = arith.constant 0 : index
    %c0_11 = arith.constant 0 : index
    %30 = vector.load %arg13[%c1, %c0_10, %c0_11] : memref<8x2x256xf32, #tpu.memory_space<vmem>>, vector<1x2x256xf32>
    %31 = vector.shape_cast %30 : vector<1x2x256xf32> to vector<2x256xf32>
    %32 = vector.shape_cast %29 : vector<2x256xf32> to vector<1x2x256xf32>
    tpu.vector_store %arg13[%c1, %c0_10, %c0_11], %32 {strides = array<i32>} : memref<8x2x256xf32, #tpu.memory_space<vmem>>, vector<1x2x256xf32>,
    %33 = vector.extract_strided_slice %24 {offsets = [4, 0], sizes = [2, 256], strides = [1, 1]} : vector<16x256xf32> to vector<2x256xf32>
    %c2 = arith.constant 2 : index
    %c0_12 = arith.constant 0 : index
    %c0_13 = arith.constant 0 : index
    %34 = vector.load %arg13[%c2, %c0_12, %c0_13] : memref<8x2x256xf32, #tpu.memory_space<vmem>>, vector<1x2x256xf32>
    %35 = vector.shape_cast %34 : vector<1x2x256xf32> to vector<2x256xf32>
    %36 = vector.shape_cast %33 : vector<2x256xf32> to vector<1x2x256xf32>
    tpu.vector_store %arg13[%c2, %c0_12, %c0_13], %36 {strides = array<i32>} : memref<8x2x256xf32, #tpu.memory_space<vmem>>, vector<1x2x256xf32>,
    %37 = vector.extract_strided_slice %24 {offsets = [6, 0], sizes = [2, 256], strides = [1, 1]} : vector<16x256xf32> to vector<2x256xf32>
    %c3 = arith.constant 3 : index
    %c0_14 = arith.constant 0 : index
    %c0_15 = arith.constant 0 : index
    %38 = vector.load %arg13[%c3, %c0_14, %c0_15] : memref<8x2x256xf32, #tpu.memory_space<vmem>>, vector<1x2x256xf32>
    %39 = vector.shape_cast %38 : vector<1x2x256xf32> to vector<2x256xf32>
    %40 = vector.shape_cast %37 : vector<2x256xf32> to vector<1x2x256xf32>
    tpu.vector_store %arg13[%c3, %c0_14, %c0_15], %40 {strides = array<i32>} : memref<8x2x256xf32, #tpu.memory_space<vmem>>, vector<1x2x256xf32>,
    %41 = vector.extract_strided_slice %24 {offsets = [8, 0], sizes = [2, 256], strides = [1, 1]} : vector<16x256xf32> to vector<2x256xf32>
    %c4 = arith.constant 4 : index
    %c0_16 = arith.constant 0 : index
    %c0_17 = arith.constant 0 : index
    %42 = vector.load %arg13[%c4, %c0_16, %c0_17] : memref<8x2x256xf32, #tpu.memory_space<vmem>>, vector<1x2x256xf32>
    %43 = vector.shape_cast %42 : vector<1x2x256xf32> to vector<2x256xf32>
    %44 = vector.shape_cast %41 : vector<2x256xf32> to vector<1x2x256xf32>
    tpu.vector_store %arg13[%c4, %c0_16, %c0_17], %44 {strides = array<i32>} : memref<8x2x256xf32, #tpu.memory_space<vmem>>, vector<1x2x256xf32>,
    %45 = vector.extract_strided_slice %24 {offsets = [10, 0], sizes = [2, 256], strides = [1, 1]} : vector<16x256xf32> to vector<2x256xf32>
    %c5 = arith.constant 5 : index
    %c0_18 = arith.constant 0 : index
    %c0_19 = arith.constant 0 : index
    %46 = vector.load %arg13[%c5, %c0_18, %c0_19] : memref<8x2x256xf32, #tpu.memory_space<vmem>>, vector<1x2x256xf32>
    %47 = vector.shape_cast %46 : vector<1x2x256xf32> to vector<2x256xf32>
    %48 = vector.shape_cast %45 : vector<2x256xf32> to vector<1x2x256xf32>
    tpu.vector_store %arg13[%c5, %c0_18, %c0_19], %48 {strides = array<i32>} : memref<8x2x256xf32, #tpu.memory_space<vmem>>, vector<1x2x256xf32>,
    %49 = vector.extract_strided_slice %24 {offsets = [12, 0], sizes = [2, 256], strides = [1, 1]} : vector<16x256xf32> to vector<2x256xf32>
    %c6 = arith.constant 6 : index
    %c0_20 = arith.constant 0 : index
    %c0_21 = arith.constant 0 : index
    %50 = vector.load %arg13[%c6, %c0_20, %c0_21] : memref<8x2x256xf32, #tpu.memory_space<vmem>>, vector<1x2x256xf32>
    %51 = vector.shape_cast %50 : vector<1x2x256xf32> to vector<2x256xf32>
    %52 = vector.shape_cast %49 : vector<2x256xf32> to vector<1x2x256xf32>
    tpu.vector_store %arg13[%c6, %c0_20, %c0_21], %52 {strides = array<i32>} : memref<8x2x256xf32, #tpu.memory_space<vmem>>, vector<1x2x256xf32>,
    %53 = vector.extract_strided_slice %24 {offsets = [14, 0], sizes = [2, 256], strides = [1, 1]} : vector<16x256xf32> to vector<2x256xf32>
    %c7 = arith.constant 7 : index
    %c0_22 = arith.constant 0 : index
    %c0_23 = arith.constant 0 : index
    %54 = vector.load %arg13[%c7, %c0_22, %c0_23] : memref<8x2x256xf32, #tpu.memory_space<vmem>>, vector<1x2x256xf32>
    %55 = vector.shape_cast %54 : vector<1x2x256xf32> to vector<2x256xf32>
    %56 = vector.shape_cast %53 : vector<2x256xf32> to vector<1x2x256xf32>
    tpu.vector_store %arg13[%c7, %c0_22, %c0_23], %56 {strides = array<i32>} : memref<8x2x256xf32, #tpu.memory_space<vmem>>, vector<1x2x256xf32>,
    %c0_24 = arith.constant 0 : index
    %c0_25 = arith.constant 0 : index
    %57 = vector.load %arg4[%c0_24, %c0_25] : memref<64x256xf32, #tpu.memory_space<vmem>>, vector<64x256xf32>
    %c0_26 = arith.constant 0 : index
    %c0_27 = arith.constant 0 : index
    %c0_28 = arith.constant 0 : index
    %58 = vector.load %arg6[%c0_26, %c0_27, %c0_28] : memref<4x2x32xf32, #tpu.memory_space<vmem>>, vector<1x2x32xf32>
    %59 = vector.shape_cast %58 : vector<1x2x32xf32> to vector<2x32xf32>
    %c1_29 = arith.constant 1 : index
    %c0_30 = arith.constant 0 : index
    %c0_31 = arith.constant 0 : index
    %60 = vector.load %arg6[%c1_29, %c0_30, %c0_31] : memref<4x2x32xf32, #tpu.memory_space<vmem>>, vector<1x2x32xf32>
    %61 = vector.shape_cast %60 : vector<1x2x32xf32> to vector<2x32xf32>
    %62 = tpu.concatenate %59, %61 in 1 : vector<2x32xf32>, vector<2x32xf32> -> vector<2x64xf32>
    %c0_32 = arith.constant 0 : index
    %c0_33 = arith.constant 0 : index
    %c0_34 = arith.constant 0 : index
    %63 = vector.load %arg7[%c0_32, %c0_33, %c0_34] : memref<4x2x32xf32, #tpu.memory_space<vmem>>, vector<1x2x32xf32>
    %64 = vector.shape_cast %63 : vector<1x2x32xf32> to vector<2x32xf32>
    %c1_35 = arith.constant 1 : index
    %c0_36 = arith.constant 0 : index
    %c0_37 = arith.constant 0 : index
    %65 = vector.load %arg7[%c1_35, %c0_36, %c0_37] : memref<4x2x32xf32, #tpu.memory_space<vmem>>, vector<1x2x32xf32>
    %66 = vector.shape_cast %65 : vector<1x2x32xf32> to vector<2x32xf32>
    %67 = tpu.concatenate %64, %66 in 1 : vector<2x32xf32>, vector<2x32xf32> -> vector<2x64xf32>
    %c0_i32_38 = arith.constant 0 : i32
    %c7_i32 = arith.constant 7 : i32
    %68 = arith.subi %c7_i32, %c0_i32_38 : i32
    %69 = arith.index_cast %68 : i32 to index
    %c0_39 = arith.constant 0 : index
    %c0_40 = arith.constant 0 : index
    %70 = vector.load %arg13[%69, %c0_39, %c0_40] : memref<8x2x256xf32, #tpu.memory_space<vmem>>, vector<1x2x256xf32>
    %71 = vector.shape_cast %70 : vector<1x2x256xf32> to vector<2x256xf32>
    %72 = arith.index_cast %c0_i32_38 : i32 to index
    %c0_41 = arith.constant 0 : index
    %c0_42 = arith.constant 0 : index
    %73 = vector.load %arg13[%72, %c0_41, %c0_42] : memref<8x2x256xf32, #tpu.memory_space<vmem>>, vector<1x2x256xf32>
    %74 = vector.shape_cast %73 : vector<1x2x256xf32> to vector<2x256xf32>
    %75 = arith.select %18, %71, %74 : vector<2x256xi1>, vector<2x256xf32>
    %cst_43 = arith.constant dense<0.000000e+00> : vector<2x256xf32>
    %76 = tpu.matmul %62, %57, %cst_43 {dimension_numbers = #tpu.dot_dimension_numbers<[1], [0], [0], [1], [0, 0, 1, 1], [], []>} : vector<2x64xf32>, vector<64x256xf32>, vector<2x256xf32> -> vector<2x256xf32>
    %77 = arith.addf %75, %76 : vector<2x256xf32>
    %78 = vector.extract_strided_slice %77 {offsets = [0, 0], sizes = [2, 192], strides = [1, 1]} : vector<2x256xf32> to vector<2x192xf32>
    %79 = arith.negf %78 : vector<2x192xf32>
    %80 = math.exp %79 : vector<2x192xf32>
    %cst_44 = arith.constant 1.000000e+00 : f32
    %81 = vector.broadcast %cst_44 : f32 to vector<2x192xf32>
    %82 = arith.addf %81, %80 : vector<2x192xf32>
    %83 = arith.divf %81, %82 : vector<2x192xf32>
    %84 = vector.extract_strided_slice %77 {offsets = [0, 192], sizes = [2, 64], strides = [1, 1]} : vector<2x256xf32> to vector<2x64xf32>
    %85 = math.tanh %84 : vector<2x64xf32>
    %86 = vector.extract_strided_slice %83 {offsets = [0, 0], sizes = [2, 64], strides = [1, 1]} : vector<2x192xf32> to vector<2x64xf32>
    %87 = vector.extract_strided_slice %83 {offsets = [0, 64], sizes = [2, 64], strides = [1, 1]} : vector<2x192xf32> to vector<2x64xf32>
    %88 = vector.extract_strided_slice %83 {offsets = [0, 128], sizes = [2, 64], strides = [1, 1]} : vector<2x192xf32> to vector<2x64xf32>
    %89 = arith.mulf %87, %67 : vector<2x64xf32>
    %90 = arith.mulf %86, %85 : vector<2x64xf32>
    %91 = arith.addf %89, %90 : vector<2x64xf32>
    %92 = math.tanh %91 : vector<2x64xf32>
    %93 = arith.mulf %88, %92 : vector<2x64xf32>
    %94 = arith.index_cast %c0_i32_38 : i32 to index
    %c0_45 = arith.constant 0 : index
    %c0_46 = arith.constant 0 : index
    %95 = vector.load %arg14[%94, %c0_45, %c0_46] : memref<8x2x64xf32, #tpu.memory_space<vmem>>, vector<1x2x64xf32>
    %96 = vector.shape_cast %95 : vector<1x2x64xf32> to vector<2x64xf32>
    %97 = vector.shape_cast %93 : vector<2x64xf32> to vector<1x2x64xf32>
    tpu.vector_store %arg14[%94, %c0_45, %c0_46], %97 {strides = array<i32>} : memref<8x2x64xf32, #tpu.memory_space<vmem>>, vector<1x2x64xf32>,
    %c1_i32_47 = arith.constant 1 : i32
    %c7_i32_48 = arith.constant 7 : i32
    %98 = arith.subi %c7_i32_48, %c1_i32_47 : i32
    %99 = arith.index_cast %98 : i32 to index
    %c0_49 = arith.constant 0 : index
    %c0_50 = arith.constant 0 : index
    %100 = vector.load %arg13[%99, %c0_49, %c0_50] : memref<8x2x256xf32, #tpu.memory_space<vmem>>, vector<1x2x256xf32>
    %101 = vector.shape_cast %100 : vector<1x2x256xf32> to vector<2x256xf32>
    %102 = arith.index_cast %c1_i32_47 : i32 to index
    %c0_51 = arith.constant 0 : index
    %c0_52 = arith.constant 0 : index
    %103 = vector.load %arg13[%102, %c0_51, %c0_52] : memref<8x2x256xf32, #tpu.memory_space<vmem>>, vector<1x2x256xf32>
    %104 = vector.shape_cast %103 : vector<1x2x256xf32> to vector<2x256xf32>
    %105 = arith.select %18, %101, %104 : vector<2x256xi1>, vector<2x256xf32>
    %cst_53 = arith.constant dense<0.000000e+00> : vector<2x256xf32>
    %106 = tpu.matmul %93, %57, %cst_53 {dimension_numbers = #tpu.dot_dimension_numbers<[1], [0], [0], [1], [0, 0, 1, 1], [], []>} : vector<2x64xf32>, vector<64x256xf32>, vector<2x256xf32> -> vector<2x256xf32>
    %107 = arith.addf %105, %106 : vector<2x256xf32>
    %108 = vector.extract_strided_slice %107 {offsets = [0, 0], sizes = [2, 192], strides = [1, 1]} : vector<2x256xf32> to vector<2x192xf32>
    %109 = arith.negf %108 : vector<2x192xf32>
    %110 = math.exp %109 : vector<2x192xf32>
    %cst_54 = arith.constant 1.000000e+00 : f32
    %111 = vector.broadcast %cst_54 : f32 to vector<2x192xf32>
    %112 = arith.addf %111, %110 : vector<2x192xf32>
    %113 = arith.divf %111, %112 : vector<2x192xf32>
    %114 = vector.extract_strided_slice %107 {offsets = [0, 192], sizes = [2, 64], strides = [1, 1]} : vector<2x256xf32> to vector<2x64xf32>
    %115 = math.tanh %114 : vector<2x64xf32>
    %116 = vector.extract_strided_slice %113 {offsets = [0, 0], sizes = [2, 64], strides = [1, 1]} : vector<2x192xf32> to vector<2x64xf32>
    %117 = vector.extract_strided_slice %113 {offsets = [0, 64], sizes = [2, 64], strides = [1, 1]} : vector<2x192xf32> to vector<2x64xf32>
    %118 = vector.extract_strided_slice %113 {offsets = [0, 128], sizes = [2, 64], strides = [1, 1]} : vector<2x192xf32> to vector<2x64xf32>
    %119 = arith.mulf %117, %91 : vector<2x64xf32>
    %120 = arith.mulf %116, %115 : vector<2x64xf32>
    %121 = arith.addf %119, %120 : vector<2x64xf32>
    %122 = math.tanh %121 : vector<2x64xf32>
    %123 = arith.mulf %118, %122 : vector<2x64xf32>
    %124 = arith.index_cast %c1_i32_47 : i32 to index
    %c0_55 = arith.constant 0 : index
    %c0_56 = arith.constant 0 : index
    %125 = vector.load %arg14[%124, %c0_55, %c0_56] : memref<8x2x64xf32, #tpu.memory_space<vmem>>, vector<1x2x64xf32>
    %126 = vector.shape_cast %125 : vector<1x2x64xf32> to vector<2x64xf32>
    %127 = vector.shape_cast %123 : vector<2x64xf32> to vector<1x2x64xf32>
    tpu.vector_store %arg14[%124, %c0_55, %c0_56], %127 {strides = array<i32>} : memref<8x2x64xf32, #tpu.memory_space<vmem>>, vector<1x2x64xf32>,
    %c2_i32 = arith.constant 2 : i32
    %c7_i32_57 = arith.constant 7 : i32
    %128 = arith.subi %c7_i32_57, %c2_i32 : i32
    %129 = arith.index_cast %128 : i32 to index
    %c0_58 = arith.constant 0 : index
    %c0_59 = arith.constant 0 : index
    %130 = vector.load %arg13[%129, %c0_58, %c0_59] : memref<8x2x256xf32, #tpu.memory_space<vmem>>, vector<1x2x256xf32>
    %131 = vector.shape_cast %130 : vector<1x2x256xf32> to vector<2x256xf32>
    %132 = arith.index_cast %c2_i32 : i32 to index
    %c0_60 = arith.constant 0 : index
    %c0_61 = arith.constant 0 : index
    %133 = vector.load %arg13[%132, %c0_60, %c0_61] : memref<8x2x256xf32, #tpu.memory_space<vmem>>, vector<1x2x256xf32>
    %134 = vector.shape_cast %133 : vector<1x2x256xf32> to vector<2x256xf32>
    %135 = arith.select %18, %131, %134 : vector<2x256xi1>, vector<2x256xf32>
    %cst_62 = arith.constant dense<0.000000e+00> : vector<2x256xf32>
    %136 = tpu.matmul %123, %57, %cst_62 {dimension_numbers = #tpu.dot_dimension_numbers<[1], [0], [0], [1], [0, 0, 1, 1], [], []>} : vector<2x64xf32>, vector<64x256xf32>, vector<2x256xf32> -> vector<2x256xf32>
    %137 = arith.addf %135, %136 : vector<2x256xf32>
    %138 = vector.extract_strided_slice %137 {offsets = [0, 0], sizes = [2, 192], strides = [1, 1]} : vector<2x256xf32> to vector<2x192xf32>
    %139 = arith.negf %138 : vector<2x192xf32>
    %140 = math.exp %139 : vector<2x192xf32>
    %cst_63 = arith.constant 1.000000e+00 : f32
    %141 = vector.broadcast %cst_63 : f32 to vector<2x192xf32>
    %142 = arith.addf %141, %140 : vector<2x192xf32>
    %143 = arith.divf %141, %142 : vector<2x192xf32>
    %144 = vector.extract_strided_slice %137 {offsets = [0, 192], sizes = [2, 64], strides = [1, 1]} : vector<2x256xf32> to vector<2x64xf32>
    %145 = math.tanh %144 : vector<2x64xf32>
    %146 = vector.extract_strided_slice %143 {offsets = [0, 0], sizes = [2, 64], strides = [1, 1]} : vector<2x192xf32> to vector<2x64xf32>
    %147 = vector.extract_strided_slice %143 {offsets = [0, 64], sizes = [2, 64], strides = [1, 1]} : vector<2x192xf32> to vector<2x64xf32>
    %148 = vector.extract_strided_slice %143 {offsets = [0, 128], sizes = [2, 64], strides = [1, 1]} : vector<2x192xf32> to vector<2x64xf32>
    %149 = arith.mulf %147, %121 : vector<2x64xf32>
    %150 = arith.mulf %146, %145 : vector<2x64xf32>
    %151 = arith.addf %149, %150 : vector<2x64xf32>
    %152 = math.tanh %151 : vector<2x64xf32>
    %153 = arith.mulf %148, %152 : vector<2x64xf32>
    %154 = arith.index_cast %c2_i32 : i32 to index
    %c0_64 = arith.constant 0 : index
    %c0_65 = arith.constant 0 : index
    %155 = vector.load %arg14[%154, %c0_64, %c0_65] : memref<8x2x64xf32, #tpu.memory_space<vmem>>, vector<1x2x64xf32>
    %156 = vector.shape_cast %155 : vector<1x2x64xf32> to vector<2x64xf32>
    %157 = vector.shape_cast %153 : vector<2x64xf32> to vector<1x2x64xf32>
    tpu.vector_store %arg14[%154, %c0_64, %c0_65], %157 {strides = array<i32>} : memref<8x2x64xf32, #tpu.memory_space<vmem>>, vector<1x2x64xf32>,
    %c3_i32 = arith.constant 3 : i32
    %c7_i32_66 = arith.constant 7 : i32
    %158 = arith.subi %c7_i32_66, %c3_i32 : i32
    %159 = arith.index_cast %158 : i32 to index
    %c0_67 = arith.constant 0 : index
    %c0_68 = arith.constant 0 : index
    %160 = vector.load %arg13[%159, %c0_67, %c0_68] : memref<8x2x256xf32, #tpu.memory_space<vmem>>, vector<1x2x256xf32>
    %161 = vector.shape_cast %160 : vector<1x2x256xf32> to vector<2x256xf32>
    %162 = arith.index_cast %c3_i32 : i32 to index
    %c0_69 = arith.constant 0 : index
    %c0_70 = arith.constant 0 : index
    %163 = vector.load %arg13[%162, %c0_69, %c0_70] : memref<8x2x256xf32, #tpu.memory_space<vmem>>, vector<1x2x256xf32>
    %164 = vector.shape_cast %163 : vector<1x2x256xf32> to vector<2x256xf32>
    %165 = arith.select %18, %161, %164 : vector<2x256xi1>, vector<2x256xf32>
    %cst_71 = arith.constant dense<0.000000e+00> : vector<2x256xf32>
    %166 = tpu.matmul %153, %57, %cst_71 {dimension_numbers = #tpu.dot_dimension_numbers<[1], [0], [0], [1], [0, 0, 1, 1], [], []>} : vector<2x64xf32>, vector<64x256xf32>, vector<2x256xf32> -> vector<2x256xf32>
    %167 = arith.addf %165, %166 : vector<2x256xf32>
    %168 = vector.extract_strided_slice %167 {offsets = [0, 0], sizes = [2, 192], strides = [1, 1]} : vector<2x256xf32> to vector<2x192xf32>
    %169 = arith.negf %168 : vector<2x192xf32>
    %170 = math.exp %169 : vector<2x192xf32>
    %cst_72 = arith.constant 1.000000e+00 : f32
    %171 = vector.broadcast %cst_72 : f32 to vector<2x192xf32>
    %172 = arith.addf %171, %170 : vector<2x192xf32>
    %173 = arith.divf %171, %172 : vector<2x192xf32>
    %174 = vector.extract_strided_slice %167 {offsets = [0, 192], sizes = [2, 64], strides = [1, 1]} : vector<2x256xf32> to vector<2x64xf32>
    %175 = math.tanh %174 : vector<2x64xf32>
    %176 = vector.extract_strided_slice %173 {offsets = [0, 0], sizes = [2, 64], strides = [1, 1]} : vector<2x192xf32> to vector<2x64xf32>
    %177 = vector.extract_strided_slice %173 {offsets = [0, 64], sizes = [2, 64], strides = [1, 1]} : vector<2x192xf32> to vector<2x64xf32>
    %178 = vector.extract_strided_slice %173 {offsets = [0, 128], sizes = [2, 64], strides = [1, 1]} : vector<2x192xf32> to vector<2x64xf32>
    %179 = arith.mulf %177, %151 : vector<2x64xf32>
    %180 = arith.mulf %176, %175 : vector<2x64xf32>
    %181 = arith.addf %179, %180 : vector<2x64xf32>
    %182 = math.tanh %181 : vector<2x64xf32>
    %183 = arith.mulf %178, %182 : vector<2x64xf32>
    %184 = arith.index_cast %c3_i32 : i32 to index
    %c0_73 = arith.constant 0 : index
    %c0_74 = arith.constant 0 : index
    %185 = vector.load %arg14[%184, %c0_73, %c0_74] : memref<8x2x64xf32, #tpu.memory_space<vmem>>, vector<1x2x64xf32>
    %186 = vector.shape_cast %185 : vector<1x2x64xf32> to vector<2x64xf32>
    %187 = vector.shape_cast %183 : vector<2x64xf32> to vector<1x2x64xf32>
    tpu.vector_store %arg14[%184, %c0_73, %c0_74], %187 {strides = array<i32>} : memref<8x2x64xf32, #tpu.memory_space<vmem>>, vector<1x2x64xf32>,
    %c4_i32 = arith.constant 4 : i32
    %c7_i32_75 = arith.constant 7 : i32
    %188 = arith.subi %c7_i32_75, %c4_i32 : i32
    %189 = arith.index_cast %188 : i32 to index
    %c0_76 = arith.constant 0 : index
    %c0_77 = arith.constant 0 : index
    %190 = vector.load %arg13[%189, %c0_76, %c0_77] : memref<8x2x256xf32, #tpu.memory_space<vmem>>, vector<1x2x256xf32>
    %191 = vector.shape_cast %190 : vector<1x2x256xf32> to vector<2x256xf32>
    %192 = arith.index_cast %c4_i32 : i32 to index
    %c0_78 = arith.constant 0 : index
    %c0_79 = arith.constant 0 : index
    %193 = vector.load %arg13[%192, %c0_78, %c0_79] : memref<8x2x256xf32, #tpu.memory_space<vmem>>, vector<1x2x256xf32>
    %194 = vector.shape_cast %193 : vector<1x2x256xf32> to vector<2x256xf32>
    %195 = arith.select %18, %191, %194 : vector<2x256xi1>, vector<2x256xf32>
    %cst_80 = arith.constant dense<0.000000e+00> : vector<2x256xf32>
    %196 = tpu.matmul %183, %57, %cst_80 {dimension_numbers = #tpu.dot_dimension_numbers<[1], [0], [0], [1], [0, 0, 1, 1], [], []>} : vector<2x64xf32>, vector<64x256xf32>, vector<2x256xf32> -> vector<2x256xf32>
    %197 = arith.addf %195, %196 : vector<2x256xf32>
    %198 = vector.extract_strided_slice %197 {offsets = [0, 0], sizes = [2, 192], strides = [1, 1]} : vector<2x256xf32> to vector<2x192xf32>
    %199 = arith.negf %198 : vector<2x192xf32>
    %200 = math.exp %199 : vector<2x192xf32>
    %cst_81 = arith.constant 1.000000e+00 : f32
    %201 = vector.broadcast %cst_81 : f32 to vector<2x192xf32>
    %202 = arith.addf %201, %200 : vector<2x192xf32>
    %203 = arith.divf %201, %202 : vector<2x192xf32>
    %204 = vector.extract_strided_slice %197 {offsets = [0, 192], sizes = [2, 64], strides = [1, 1]} : vector<2x256xf32> to vector<2x64xf32>
    %205 = math.tanh %204 : vector<2x64xf32>
    %206 = vector.extract_strided_slice %203 {offsets = [0, 0], sizes = [2, 64], strides = [1, 1]} : vector<2x192xf32> to vector<2x64xf32>
    %207 = vector.extract_strided_slice %203 {offsets = [0, 64], sizes = [2, 64], strides = [1, 1]} : vector<2x192xf32> to vector<2x64xf32>
    %208 = vector.extract_strided_slice %203 {offsets = [0, 128], sizes = [2, 64], strides = [1, 1]} : vector<2x192xf32> to vector<2x64xf32>
    %209 = arith.mulf %207, %181 : vector<2x64xf32>
    %210 = arith.mulf %206, %205 : vector<2x64xf32>
    %211 = arith.addf %209, %210 : vector<2x64xf32>
    %212 = math.tanh %211 : vector<2x64xf32>
    %213 = arith.mulf %208, %212 : vector<2x64xf32>
    %214 = arith.index_cast %c4_i32 : i32 to index
    %c0_82 = arith.constant 0 : index
    %c0_83 = arith.constant 0 : index
    %215 = vector.load %arg14[%214, %c0_82, %c0_83] : memref<8x2x64xf32, #tpu.memory_space<vmem>>, vector<1x2x64xf32>
    %216 = vector.shape_cast %215 : vector<1x2x64xf32> to vector<2x64xf32>
    %217 = vector.shape_cast %213 : vector<2x64xf32> to vector<1x2x64xf32>
    tpu.vector_store %arg14[%214, %c0_82, %c0_83], %217 {strides = array<i32>} : memref<8x2x64xf32, #tpu.memory_space<vmem>>, vector<1x2x64xf32>,
    %c5_i32 = arith.constant 5 : i32
    %c7_i32_84 = arith.constant 7 : i32
    %218 = arith.subi %c7_i32_84, %c5_i32 : i32
    %219 = arith.index_cast %218 : i32 to index
    %c0_85 = arith.constant 0 : index
    %c0_86 = arith.constant 0 : index
    %220 = vector.load %arg13[%219, %c0_85, %c0_86] : memref<8x2x256xf32, #tpu.memory_space<vmem>>, vector<1x2x256xf32>
    %221 = vector.shape_cast %220 : vector<1x2x256xf32> to vector<2x256xf32>
    %222 = arith.index_cast %c5_i32 : i32 to index
    %c0_87 = arith.constant 0 : index
    %c0_88 = arith.constant 0 : index
    %223 = vector.load %arg13[%222, %c0_87, %c0_88] : memref<8x2x256xf32, #tpu.memory_space<vmem>>, vector<1x2x256xf32>
    %224 = vector.shape_cast %223 : vector<1x2x256xf32> to vector<2x256xf32>
    %225 = arith.select %18, %221, %224 : vector<2x256xi1>, vector<2x256xf32>
    %cst_89 = arith.constant dense<0.000000e+00> : vector<2x256xf32>
    %226 = tpu.matmul %213, %57, %cst_89 {dimension_numbers = #tpu.dot_dimension_numbers<[1], [0], [0], [1], [0, 0, 1, 1], [], []>} : vector<2x64xf32>, vector<64x256xf32>, vector<2x256xf32> -> vector<2x256xf32>
    %227 = arith.addf %225, %226 : vector<2x256xf32>
    %228 = vector.extract_strided_slice %227 {offsets = [0, 0], sizes = [2, 192], strides = [1, 1]} : vector<2x256xf32> to vector<2x192xf32>
    %229 = arith.negf %228 : vector<2x192xf32>
    %230 = math.exp %229 : vector<2x192xf32>
    %cst_90 = arith.constant 1.000000e+00 : f32
    %231 = vector.broadcast %cst_90 : f32 to vector<2x192xf32>
    %232 = arith.addf %231, %230 : vector<2x192xf32>
    %233 = arith.divf %231, %232 : vector<2x192xf32>
    %234 = vector.extract_strided_slice %227 {offsets = [0, 192], sizes = [2, 64], strides = [1, 1]} : vector<2x256xf32> to vector<2x64xf32>
    %235 = math.tanh %234 : vector<2x64xf32>
    %236 = vector.extract_strided_slice %233 {offsets = [0, 0], sizes = [2, 64], strides = [1, 1]} : vector<2x192xf32> to vector<2x64xf32>
    %237 = vector.extract_strided_slice %233 {offsets = [0, 64], sizes = [2, 64], strides = [1, 1]} : vector<2x192xf32> to vector<2x64xf32>
    %238 = vector.extract_strided_slice %233 {offsets = [0, 128], sizes = [2, 64], strides = [1, 1]} : vector<2x192xf32> to vector<2x64xf32>
    %239 = arith.mulf %237, %211 : vector<2x64xf32>
    %240 = arith.mulf %236, %235 : vector<2x64xf32>
    %241 = arith.addf %239, %240 : vector<2x64xf32>
    %242 = math.tanh %241 : vector<2x64xf32>
    %243 = arith.mulf %238, %242 : vector<2x64xf32>
    %244 = arith.index_cast %c5_i32 : i32 to index
    %c0_91 = arith.constant 0 : index
    %c0_92 = arith.constant 0 : index
    %245 = vector.load %arg14[%244, %c0_91, %c0_92] : memref<8x2x64xf32, #tpu.memory_space<vmem>>, vector<1x2x64xf32>
    %246 = vector.shape_cast %245 : vector<1x2x64xf32> to vector<2x64xf32>
    %247 = vector.shape_cast %243 : vector<2x64xf32> to vector<1x2x64xf32>
    tpu.vector_store %arg14[%244, %c0_91, %c0_92], %247 {strides = array<i32>} : memref<8x2x64xf32, #tpu.memory_space<vmem>>, vector<1x2x64xf32>,
    %c6_i32 = arith.constant 6 : i32
    %c7_i32_93 = arith.constant 7 : i32
    %248 = arith.subi %c7_i32_93, %c6_i32 : i32
    %249 = arith.index_cast %248 : i32 to index
    %c0_94 = arith.constant 0 : index
    %c0_95 = arith.constant 0 : index
    %250 = vector.load %arg13[%249, %c0_94, %c0_95] : memref<8x2x256xf32, #tpu.memory_space<vmem>>, vector<1x2x256xf32>
    %251 = vector.shape_cast %250 : vector<1x2x256xf32> to vector<2x256xf32>
    %252 = arith.index_cast %c6_i32 : i32 to index
    %c0_96 = arith.constant 0 : index
    %c0_97 = arith.constant 0 : index
    %253 = vector.load %arg13[%252, %c0_96, %c0_97] : memref<8x2x256xf32, #tpu.memory_space<vmem>>, vector<1x2x256xf32>
    %254 = vector.shape_cast %253 : vector<1x2x256xf32> to vector<2x256xf32>
    %255 = arith.select %18, %251, %254 : vector<2x256xi1>, vector<2x256xf32>
    %cst_98 = arith.constant dense<0.000000e+00> : vector<2x256xf32>
    %256 = tpu.matmul %243, %57, %cst_98 {dimension_numbers = #tpu.dot_dimension_numbers<[1], [0], [0], [1], [0, 0, 1, 1], [], []>} : vector<2x64xf32>, vector<64x256xf32>, vector<2x256xf32> -> vector<2x256xf32>
    %257 = arith.addf %255, %256 : vector<2x256xf32>
    %258 = vector.extract_strided_slice %257 {offsets = [0, 0], sizes = [2, 192], strides = [1, 1]} : vector<2x256xf32> to vector<2x192xf32>
    %259 = arith.negf %258 : vector<2x192xf32>
    %260 = math.exp %259 : vector<2x192xf32>
    %cst_99 = arith.constant 1.000000e+00 : f32
    %261 = vector.broadcast %cst_99 : f32 to vector<2x192xf32>
    %262 = arith.addf %261, %260 : vector<2x192xf32>
    %263 = arith.divf %261, %262 : vector<2x192xf32>
    %264 = vector.extract_strided_slice %257 {offsets = [0, 192], sizes = [2, 64], strides = [1, 1]} : vector<2x256xf32> to vector<2x64xf32>
    %265 = math.tanh %264 : vector<2x64xf32>
    %266 = vector.extract_strided_slice %263 {offsets = [0, 0], sizes = [2, 64], strides = [1, 1]} : vector<2x192xf32> to vector<2x64xf32>
    %267 = vector.extract_strided_slice %263 {offsets = [0, 64], sizes = [2, 64], strides = [1, 1]} : vector<2x192xf32> to vector<2x64xf32>
    %268 = vector.extract_strided_slice %263 {offsets = [0, 128], sizes = [2, 64], strides = [1, 1]} : vector<2x192xf32> to vector<2x64xf32>
    %269 = arith.mulf %267, %241 : vector<2x64xf32>
    %270 = arith.mulf %266, %265 : vector<2x64xf32>
    %271 = arith.addf %269, %270 : vector<2x64xf32>
    %272 = math.tanh %271 : vector<2x64xf32>
    %273 = arith.mulf %268, %272 : vector<2x64xf32>
    %274 = arith.index_cast %c6_i32 : i32 to index
    %c0_100 = arith.constant 0 : index
    %c0_101 = arith.constant 0 : index
    %275 = vector.load %arg14[%274, %c0_100, %c0_101] : memref<8x2x64xf32, #tpu.memory_space<vmem>>, vector<1x2x64xf32>
    %276 = vector.shape_cast %275 : vector<1x2x64xf32> to vector<2x64xf32>
    %277 = vector.shape_cast %273 : vector<2x64xf32> to vector<1x2x64xf32>
    tpu.vector_store %arg14[%274, %c0_100, %c0_101], %277 {strides = array<i32>} : memref<8x2x64xf32, #tpu.memory_space<vmem>>, vector<1x2x64xf32>,
    %c7_i32_102 = arith.constant 7 : i32
    %c7_i32_103 = arith.constant 7 : i32
    %278 = arith.subi %c7_i32_103, %c7_i32_102 : i32
    %279 = arith.index_cast %278 : i32 to index
    %c0_104 = arith.constant 0 : index
    %c0_105 = arith.constant 0 : index
    %280 = vector.load %arg13[%279, %c0_104, %c0_105] : memref<8x2x256xf32, #tpu.memory_space<vmem>>, vector<1x2x256xf32>
    %281 = vector.shape_cast %280 : vector<1x2x256xf32> to vector<2x256xf32>
    %282 = arith.index_cast %c7_i32_102 : i32 to index
    %c0_106 = arith.constant 0 : index
    %c0_107 = arith.constant 0 : index
    %283 = vector.load %arg13[%282, %c0_106, %c0_107] : memref<8x2x256xf32, #tpu.memory_space<vmem>>, vector<1x2x256xf32>
    %284 = vector.shape_cast %283 : vector<1x2x256xf32> to vector<2x256xf32>
    %285 = arith.select %18, %281, %284 : vector<2x256xi1>, vector<2x256xf32>
    %cst_108 = arith.constant dense<0.000000e+00> : vector<2x256xf32>
    %286 = tpu.matmul %273, %57, %cst_108 {dimension_numbers = #tpu.dot_dimension_numbers<[1], [0], [0], [1], [0, 0, 1, 1], [], []>} : vector<2x64xf32>, vector<64x256xf32>, vector<2x256xf32> -> vector<2x256xf32>
    %287 = arith.addf %285, %286 : vector<2x256xf32>
    %288 = vector.extract_strided_slice %287 {offsets = [0, 0], sizes = [2, 192], strides = [1, 1]} : vector<2x256xf32> to vector<2x192xf32>
    %289 = arith.negf %288 : vector<2x192xf32>
    %290 = math.exp %289 : vector<2x192xf32>
    %cst_109 = arith.constant 1.000000e+00 : f32
    %291 = vector.broadcast %cst_109 : f32 to vector<2x192xf32>
    %292 = arith.addf %291, %290 : vector<2x192xf32>
    %293 = arith.divf %291, %292 : vector<2x192xf32>
    %294 = vector.extract_strided_slice %287 {offsets = [0, 192], sizes = [2, 64], strides = [1, 1]} : vector<2x256xf32> to vector<2x64xf32>
    %295 = math.tanh %294 : vector<2x64xf32>
    %296 = vector.extract_strided_slice %293 {offsets = [0, 0], sizes = [2, 64], strides = [1, 1]} : vector<2x192xf32> to vector<2x64xf32>
    %297 = vector.extract_strided_slice %293 {offsets = [0, 64], sizes = [2, 64], strides = [1, 1]} : vector<2x192xf32> to vector<2x64xf32>
    %298 = vector.extract_strided_slice %293 {offsets = [0, 128], sizes = [2, 64], strides = [1, 1]} : vector<2x192xf32> to vector<2x64xf32>
    %299 = arith.mulf %297, %271 : vector<2x64xf32>
    %300 = arith.mulf %296, %295 : vector<2x64xf32>
    %301 = arith.addf %299, %300 : vector<2x64xf32>
    %302 = math.tanh %301 : vector<2x64xf32>
    %303 = arith.mulf %298, %302 : vector<2x64xf32>
    %304 = arith.index_cast %c7_i32_102 : i32 to index
    %c0_110 = arith.constant 0 : index
    %c0_111 = arith.constant 0 : index
    %305 = vector.load %arg14[%304, %c0_110, %c0_111] : memref<8x2x64xf32, #tpu.memory_space<vmem>>, vector<1x2x64xf32>
    %306 = vector.shape_cast %305 : vector<1x2x64xf32> to vector<2x64xf32>
    %307 = vector.shape_cast %303 : vector<2x64xf32> to vector<1x2x64xf32>
    tpu.vector_store %arg14[%304, %c0_110, %c0_111], %307 {strides = array<i32>} : memref<8x2x64xf32, #tpu.memory_space<vmem>>, vector<1x2x64xf32>,
    %c8_i32 = arith.constant 8 : i32
    %308 = vector.extract_strided_slice %303 {offsets = [0, 0], sizes = [2, 32], strides = [1, 1]} : vector<2x64xf32> to vector<2x32xf32>
    %c0_112 = arith.constant 0 : index
    %c0_113 = arith.constant 0 : index
    %c0_114 = arith.constant 0 : index
    %309 = vector.load %arg11[%c0_112, %c0_113, %c0_114] : memref<4x2x32xf32, #tpu.memory_space<vmem>>, vector<1x2x32xf32>
    %310 = vector.shape_cast %309 : vector<1x2x32xf32> to vector<2x32xf32>
    %311 = vector.shape_cast %308 : vector<2x32xf32> to vector<1x2x32xf32>
    tpu.vector_store %arg11[%c0_112, %c0_113, %c0_114], %311 {strides = array<i32>} : memref<4x2x32xf32, #tpu.memory_space<vmem>>, vector<1x2x32xf32>,
    %312 = vector.extract_strided_slice %303 {offsets = [0, 32], sizes = [2, 32], strides = [1, 1]} : vector<2x64xf32> to vector<2x32xf32>
    %c1_115 = arith.constant 1 : index
    %c0_116 = arith.constant 0 : index
    %c0_117 = arith.constant 0 : index
    %313 = vector.load %arg11[%c1_115, %c0_116, %c0_117] : memref<4x2x32xf32, #tpu.memory_space<vmem>>, vector<1x2x32xf32>
    %314 = vector.shape_cast %313 : vector<1x2x32xf32> to vector<2x32xf32>
    %315 = vector.shape_cast %312 : vector<2x32xf32> to vector<1x2x32xf32>
    tpu.vector_store %arg11[%c1_115, %c0_116, %c0_117], %315 {strides = array<i32>} : memref<4x2x32xf32, #tpu.memory_space<vmem>>, vector<1x2x32xf32>,
    %316 = vector.extract_strided_slice %301 {offsets = [0, 0], sizes = [2, 32], strides = [1, 1]} : vector<2x64xf32> to vector<2x32xf32>
    %c0_118 = arith.constant 0 : index
    %c0_119 = arith.constant 0 : index
    %c0_120 = arith.constant 0 : index
    %317 = vector.load %arg12[%c0_118, %c0_119, %c0_120] : memref<4x2x32xf32, #tpu.memory_space<vmem>>, vector<1x2x32xf32>
    %318 = vector.shape_cast %317 : vector<1x2x32xf32> to vector<2x32xf32>
    %319 = vector.shape_cast %316 : vector<2x32xf32> to vector<1x2x32xf32>
    tpu.vector_store %arg12[%c0_118, %c0_119, %c0_120], %319 {strides = array<i32>} : memref<4x2x32xf32, #tpu.memory_space<vmem>>, vector<1x2x32xf32>,
    %320 = vector.extract_strided_slice %301 {offsets = [0, 32], sizes = [2, 32], strides = [1, 1]} : vector<2x64xf32> to vector<2x32xf32>
    %c1_121 = arith.constant 1 : index
    %c0_122 = arith.constant 0 : index
    %c0_123 = arith.constant 0 : index
    %321 = vector.load %arg12[%c1_121, %c0_122, %c0_123] : memref<4x2x32xf32, #tpu.memory_space<vmem>>, vector<1x2x32xf32>
    %322 = vector.shape_cast %321 : vector<1x2x32xf32> to vector<2x32xf32>
    %323 = vector.shape_cast %320 : vector<2x32xf32> to vector<1x2x32xf32>
    tpu.vector_store %arg12[%c1_121, %c0_122, %c0_123], %323 {strides = array<i32>} : memref<4x2x32xf32, #tpu.memory_space<vmem>>, vector<1x2x32xf32>,
    %c0_124 = arith.constant 0 : index
    %c0_125 = arith.constant 0 : index
    %c0_126 = arith.constant 0 : index
    %324 = vector.load %arg14[%c0_124, %c0_125, %c0_126] : memref<8x2x64xf32, #tpu.memory_space<vmem>>, vector<1x2x64xf32>
    %325 = vector.shape_cast %324 : vector<1x2x64xf32> to vector<2x64xf32>
    %c7_127 = arith.constant 7 : index
    %c0_128 = arith.constant 0 : index
    %c0_129 = arith.constant 0 : index
    %326 = vector.load %arg14[%c7_127, %c0_128, %c0_129] : memref<8x2x64xf32, #tpu.memory_space<vmem>>, vector<1x2x64xf32>
    %327 = vector.shape_cast %326 : vector<1x2x64xf32> to vector<2x64xf32>
    %328 = arith.select %21, %325, %327 : vector<2x64xi1>, vector<2x64xf32>
    %c0_130 = arith.constant 0 : index
    %c0_131 = arith.constant 0 : index
    %329 = vector.load %arg15[%c0_130, %c0_131] : memref<16x64xf32, #tpu.memory_space<vmem>>, vector<2x64xf32>
    tpu.vector_store %arg15[%c0_130, %c0_131], %328 {strides = array<i32>} : memref<16x64xf32, #tpu.memory_space<vmem>>, vector<2x64xf32>,
    %c1_132 = arith.constant 1 : index
    %c0_133 = arith.constant 0 : index
    %c0_134 = arith.constant 0 : index
    %330 = vector.load %arg14[%c1_132, %c0_133, %c0_134] : memref<8x2x64xf32, #tpu.memory_space<vmem>>, vector<1x2x64xf32>
    %331 = vector.shape_cast %330 : vector<1x2x64xf32> to vector<2x64xf32>
    %c6_135 = arith.constant 6 : index
    %c0_136 = arith.constant 0 : index
    %c0_137 = arith.constant 0 : index
    %332 = vector.load %arg14[%c6_135, %c0_136, %c0_137] : memref<8x2x64xf32, #tpu.memory_space<vmem>>, vector<1x2x64xf32>
    %333 = vector.shape_cast %332 : vector<1x2x64xf32> to vector<2x64xf32>
    %334 = arith.select %21, %331, %333 : vector<2x64xi1>, vector<2x64xf32>
    %c2_138 = arith.constant 2 : index
    %c0_139 = arith.constant 0 : index
    %335 = vector.load %arg15[%c2_138, %c0_139] : memref<16x64xf32, #tpu.memory_space<vmem>>, vector<2x64xf32>
    tpu.vector_store %arg15[%c2_138, %c0_139], %334 {strides = array<i32>} : memref<16x64xf32, #tpu.memory_space<vmem>>, vector<2x64xf32>,
    %c2_140 = arith.constant 2 : index
    %c0_141 = arith.constant 0 : index
    %c0_142 = arith.constant 0 : index
    %336 = vector.load %arg14[%c2_140, %c0_141, %c0_142] : memref<8x2x64xf32, #tpu.memory_space<vmem>>, vector<1x2x64xf32>
    %337 = vector.shape_cast %336 : vector<1x2x64xf32> to vector<2x64xf32>
    %c5_143 = arith.constant 5 : index
    %c0_144 = arith.constant 0 : index
    %c0_145 = arith.constant 0 : index
    %338 = vector.load %arg14[%c5_143, %c0_144, %c0_145] : memref<8x2x64xf32, #tpu.memory_space<vmem>>, vector<1x2x64xf32>
    %339 = vector.shape_cast %338 : vector<1x2x64xf32> to vector<2x64xf32>
    %340 = arith.select %21, %337, %339 : vector<2x64xi1>, vector<2x64xf32>
    %c4_146 = arith.constant 4 : index
    %c0_147 = arith.constant 0 : index
    %341 = vector.load %arg15[%c4_146, %c0_147] : memref<16x64xf32, #tpu.memory_space<vmem>>, vector<2x64xf32>
    tpu.vector_store %arg15[%c4_146, %c0_147], %340 {strides = array<i32>} : memref<16x64xf32, #tpu.memory_space<vmem>>, vector<2x64xf32>,
    %c3_148 = arith.constant 3 : index
    %c0_149 = arith.constant 0 : index
    %c0_150 = arith.constant 0 : index
    %342 = vector.load %arg14[%c3_148, %c0_149, %c0_150] : memref<8x2x64xf32, #tpu.memory_space<vmem>>, vector<1x2x64xf32>
    %343 = vector.shape_cast %342 : vector<1x2x64xf32> to vector<2x64xf32>
    %c4_151 = arith.constant 4 : index
    %c0_152 = arith.constant 0 : index
    %c0_153 = arith.constant 0 : index
    %344 = vector.load %arg14[%c4_151, %c0_152, %c0_153] : memref<8x2x64xf32, #tpu.memory_space<vmem>>, vector<1x2x64xf32>
    %345 = vector.shape_cast %344 : vector<1x2x64xf32> to vector<2x64xf32>
    %346 = arith.select %21, %343, %345 : vector<2x64xi1>, vector<2x64xf32>
    %c6_154 = arith.constant 6 : index
    %c0_155 = arith.constant 0 : index
    %347 = vector.load %arg15[%c6_154, %c0_155] : memref<16x64xf32, #tpu.memory_space<vmem>>, vector<2x64xf32>
    tpu.vector_store %arg15[%c6_154, %c0_155], %346 {strides = array<i32>} : memref<16x64xf32, #tpu.memory_space<vmem>>, vector<2x64xf32>,
    %c4_156 = arith.constant 4 : index
    %c0_157 = arith.constant 0 : index
    %c0_158 = arith.constant 0 : index
    %348 = vector.load %arg14[%c4_156, %c0_157, %c0_158] : memref<8x2x64xf32, #tpu.memory_space<vmem>>, vector<1x2x64xf32>
    %349 = vector.shape_cast %348 : vector<1x2x64xf32> to vector<2x64xf32>
    %c3_159 = arith.constant 3 : index
    %c0_160 = arith.constant 0 : index
    %c0_161 = arith.constant 0 : index
    %350 = vector.load %arg14[%c3_159, %c0_160, %c0_161] : memref<8x2x64xf32, #tpu.memory_space<vmem>>, vector<1x2x64xf32>
    %351 = vector.shape_cast %350 : vector<1x2x64xf32> to vector<2x64xf32>
    %352 = arith.select %21, %349, %351 : vector<2x64xi1>, vector<2x64xf32>
    %c8 = arith.constant 8 : index
    %c0_162 = arith.constant 0 : index
    %353 = vector.load %arg15[%c8, %c0_162] : memref<16x64xf32, #tpu.memory_space<vmem>>, vector<2x64xf32>
    tpu.vector_store %arg15[%c8, %c0_162], %352 {strides = array<i32>} : memref<16x64xf32, #tpu.memory_space<vmem>>, vector<2x64xf32>,
    %c5_163 = arith.constant 5 : index
    %c0_164 = arith.constant 0 : index
    %c0_165 = arith.constant 0 : index
    %354 = vector.load %arg14[%c5_163, %c0_164, %c0_165] : memref<8x2x64xf32, #tpu.memory_space<vmem>>, vector<1x2x64xf32>
    %355 = vector.shape_cast %354 : vector<1x2x64xf32> to vector<2x64xf32>
    %c2_166 = arith.constant 2 : index
    %c0_167 = arith.constant 0 : index
    %c0_168 = arith.constant 0 : index
    %356 = vector.load %arg14[%c2_166, %c0_167, %c0_168] : memref<8x2x64xf32, #tpu.memory_space<vmem>>, vector<1x2x64xf32>
    %357 = vector.shape_cast %356 : vector<1x2x64xf32> to vector<2x64xf32>
    %358 = arith.select %21, %355, %357 : vector<2x64xi1>, vector<2x64xf32>
    %c10 = arith.constant 10 : index
    %c0_169 = arith.constant 0 : index
    %359 = vector.load %arg15[%c10, %c0_169] : memref<16x64xf32, #tpu.memory_space<vmem>>, vector<2x64xf32>
    tpu.vector_store %arg15[%c10, %c0_169], %358 {strides = array<i32>} : memref<16x64xf32, #tpu.memory_space<vmem>>, vector<2x64xf32>,
    %c6_170 = arith.constant 6 : index
    %c0_171 = arith.constant 0 : index
    %c0_172 = arith.constant 0 : index
    %360 = vector.load %arg14[%c6_170, %c0_171, %c0_172] : memref<8x2x64xf32, #tpu.memory_space<vmem>>, vector<1x2x64xf32>
    %361 = vector.shape_cast %360 : vector<1x2x64xf32> to vector<2x64xf32>
    %c1_173 = arith.constant 1 : index
    %c0_174 = arith.constant 0 : index
    %c0_175 = arith.constant 0 : index
    %362 = vector.load %arg14[%c1_173, %c0_174, %c0_175] : memref<8x2x64xf32, #tpu.memory_space<vmem>>, vector<1x2x64xf32>
    %363 = vector.shape_cast %362 : vector<1x2x64xf32> to vector<2x64xf32>
    %364 = arith.select %21, %361, %363 : vector<2x64xi1>, vector<2x64xf32>
    %c12 = arith.constant 12 : index
    %c0_176 = arith.constant 0 : index
    %365 = vector.load %arg15[%c12, %c0_176] : memref<16x64xf32, #tpu.memory_space<vmem>>, vector<2x64xf32>
    tpu.vector_store %arg15[%c12, %c0_176], %364 {strides = array<i32>} : memref<16x64xf32, #tpu.memory_space<vmem>>, vector<2x64xf32>,
    %c7_177 = arith.constant 7 : index
    %c0_178 = arith.constant 0 : index
    %c0_179 = arith.constant 0 : index
    %366 = vector.load %arg14[%c7_177, %c0_178, %c0_179] : memref<8x2x64xf32, #tpu.memory_space<vmem>>, vector<1x2x64xf32>
    %367 = vector.shape_cast %366 : vector<1x2x64xf32> to vector<2x64xf32>
    %c0_180 = arith.constant 0 : index
    %c0_181 = arith.constant 0 : index
    %c0_182 = arith.constant 0 : index
    %368 = vector.load %arg14[%c0_180, %c0_181, %c0_182] : memref<8x2x64xf32, #tpu.memory_space<vmem>>, vector<1x2x64xf32>
    %369 = vector.shape_cast %368 : vector<1x2x64xf32> to vector<2x64xf32>
    %370 = arith.select %21, %367, %369 : vector<2x64xi1>, vector<2x64xf32>
    %c14 = arith.constant 14 : index
    %c0_183 = arith.constant 0 : index
    %371 = vector.load %arg15[%c14, %c0_183] : memref<16x64xf32, #tpu.memory_space<vmem>>, vector<2x64xf32>
    tpu.vector_store %arg15[%c14, %c0_183], %370 {strides = array<i32>} : memref<16x64xf32, #tpu.memory_space<vmem>>, vector<2x64xf32>,
    %c0_184 = arith.constant 0 : index
    %c0_185 = arith.constant 0 : index
    %372 = vector.load %arg15[%c0_184, %c0_185] : memref<16x64xf32, #tpu.memory_space<vmem>>, vector<16x64xf32>
    %c0_186 = arith.constant 0 : index
    %c0_187 = arith.constant 0 : index
    %373 = vector.load %arg3[%c0_186, %c0_187] : memref<64x256xf32, #tpu.memory_space<vmem>>, vector<64x256xf32>
    %cst_188 = arith.constant dense<0.000000e+00> : vector<16x256xf32>
    %374 = tpu.matmul %372, %373, %cst_188 {dimension_numbers = #tpu.dot_dimension_numbers<[1], [0], [0], [1], [0, 0, 1, 1], [], []>} : vector<16x64xf32>, vector<64x256xf32>, vector<16x256xf32> -> vector<16x256xf32>
    %375 = vector.extract_strided_slice %374 {offsets = [0, 0], sizes = [2, 256], strides = [1, 1]} : vector<16x256xf32> to vector<2x256xf32>
    %c0_189 = arith.constant 0 : index
    %c0_190 = arith.constant 0 : index
    %c0_191 = arith.constant 0 : index
    %376 = vector.load %arg13[%c0_189, %c0_190, %c0_191] : memref<8x2x256xf32, #tpu.memory_space<vmem>>, vector<1x2x256xf32>
    %377 = vector.shape_cast %376 : vector<1x2x256xf32> to vector<2x256xf32>
    %378 = vector.shape_cast %375 : vector<2x256xf32> to vector<1x2x256xf32>
    tpu.vector_store %arg13[%c0_189, %c0_190, %c0_191], %378 {strides = array<i32>} : memref<8x2x256xf32, #tpu.memory_space<vmem>>, vector<1x2x256xf32>,
    %379 = vector.extract_strided_slice %374 {offsets = [2, 0], sizes = [2, 256], strides = [1, 1]} : vector<16x256xf32> to vector<2x256xf32>
    %c1_192 = arith.constant 1 : index
    %c0_193 = arith.constant 0 : index
    %c0_194 = arith.constant 0 : index
    %380 = vector.load %arg13[%c1_192, %c0_193, %c0_194] : memref<8x2x256xf32, #tpu.memory_space<vmem>>, vector<1x2x256xf32>
    %381 = vector.shape_cast %380 : vector<1x2x256xf32> to vector<2x256xf32>
    %382 = vector.shape_cast %379 : vector<2x256xf32> to vector<1x2x256xf32>
    tpu.vector_store %arg13[%c1_192, %c0_193, %c0_194], %382 {strides = array<i32>} : memref<8x2x256xf32, #tpu.memory_space<vmem>>, vector<1x2x256xf32>,
    %383 = vector.extract_strided_slice %374 {offsets = [4, 0], sizes = [2, 256], strides = [1, 1]} : vector<16x256xf32> to vector<2x256xf32>
    %c2_195 = arith.constant 2 : index
    %c0_196 = arith.constant 0 : index
    %c0_197 = arith.constant 0 : index
    %384 = vector.load %arg13[%c2_195, %c0_196, %c0_197] : memref<8x2x256xf32, #tpu.memory_space<vmem>>, vector<1x2x256xf32>
    %385 = vector.shape_cast %384 : vector<1x2x256xf32> to vector<2x256xf32>
    %386 = vector.shape_cast %383 : vector<2x256xf32> to vector<1x2x256xf32>
    tpu.vector_store %arg13[%c2_195, %c0_196, %c0_197], %386 {strides = array<i32>} : memref<8x2x256xf32, #tpu.memory_space<vmem>>, vector<1x2x256xf32>,
    %387 = vector.extract_strided_slice %374 {offsets = [6, 0], sizes = [2, 256], strides = [1, 1]} : vector<16x256xf32> to vector<2x256xf32>
    %c3_198 = arith.constant 3 : index
    %c0_199 = arith.constant 0 : index
    %c0_200 = arith.constant 0 : index
    %388 = vector.load %arg13[%c3_198, %c0_199, %c0_200] : memref<8x2x256xf32, #tpu.memory_space<vmem>>, vector<1x2x256xf32>
    %389 = vector.shape_cast %388 : vector<1x2x256xf32> to vector<2x256xf32>
    %390 = vector.shape_cast %387 : vector<2x256xf32> to vector<1x2x256xf32>
    tpu.vector_store %arg13[%c3_198, %c0_199, %c0_200], %390 {strides = array<i32>} : memref<8x2x256xf32, #tpu.memory_space<vmem>>, vector<1x2x256xf32>,
    %391 = vector.extract_strided_slice %374 {offsets = [8, 0], sizes = [2, 256], strides = [1, 1]} : vector<16x256xf32> to vector<2x256xf32>
    %c4_201 = arith.constant 4 : index
    %c0_202 = arith.constant 0 : index
    %c0_203 = arith.constant 0 : index
    %392 = vector.load %arg13[%c4_201, %c0_202, %c0_203] : memref<8x2x256xf32, #tpu.memory_space<vmem>>, vector<1x2x256xf32>
    %393 = vector.shape_cast %392 : vector<1x2x256xf32> to vector<2x256xf32>
    %394 = vector.shape_cast %391 : vector<2x256xf32> to vector<1x2x256xf32>
    tpu.vector_store %arg13[%c4_201, %c0_202, %c0_203], %394 {strides = array<i32>} : memref<8x2x256xf32, #tpu.memory_space<vmem>>, vector<1x2x256xf32>,
    %395 = vector.extract_strided_slice %374 {offsets = [10, 0], sizes = [2, 256], strides = [1, 1]} : vector<16x256xf32> to vector<2x256xf32>
    %c5_204 = arith.constant 5 : index
    %c0_205 = arith.constant 0 : index
    %c0_206 = arith.constant 0 : index
    %396 = vector.load %arg13[%c5_204, %c0_205, %c0_206] : memref<8x2x256xf32, #tpu.memory_space<vmem>>, vector<1x2x256xf32>
    %397 = vector.shape_cast %396 : vector<1x2x256xf32> to vector<2x256xf32>
    %398 = vector.shape_cast %395 : vector<2x256xf32> to vector<1x2x256xf32>
    tpu.vector_store %arg13[%c5_204, %c0_205, %c0_206], %398 {strides = array<i32>} : memref<8x2x256xf32, #tpu.memory_space<vmem>>, vector<1x2x256xf32>,
    %399 = vector.extract_strided_slice %374 {offsets = [12, 0], sizes = [2, 256], strides = [1, 1]} : vector<16x256xf32> to vector<2x256xf32>
    %c6_207 = arith.constant 6 : index
    %c0_208 = arith.constant 0 : index
    %c0_209 = arith.constant 0 : index
    %400 = vector.load %arg13[%c6_207, %c0_208, %c0_209] : memref<8x2x256xf32, #tpu.memory_space<vmem>>, vector<1x2x256xf32>
    %401 = vector.shape_cast %400 : vector<1x2x256xf32> to vector<2x256xf32>
    %402 = vector.shape_cast %399 : vector<2x256xf32> to vector<1x2x256xf32>
    tpu.vector_store %arg13[%c6_207, %c0_208, %c0_209], %402 {strides = array<i32>} : memref<8x2x256xf32, #tpu.memory_space<vmem>>, vector<1x2x256xf32>,
    %403 = vector.extract_strided_slice %374 {offsets = [14, 0], sizes = [2, 256], strides = [1, 1]} : vector<16x256xf32> to vector<2x256xf32>
    %c7_210 = arith.constant 7 : index
    %c0_211 = arith.constant 0 : index
    %c0_212 = arith.constant 0 : index
    %404 = vector.load %arg13[%c7_210, %c0_211, %c0_212] : memref<8x2x256xf32, #tpu.memory_space<vmem>>, vector<1x2x256xf32>
    %405 = vector.shape_cast %404 : vector<1x2x256xf32> to vector<2x256xf32>
    %406 = vector.shape_cast %403 : vector<2x256xf32> to vector<1x2x256xf32>
    tpu.vector_store %arg13[%c7_210, %c0_211, %c0_212], %406 {strides = array<i32>} : memref<8x2x256xf32, #tpu.memory_space<vmem>>, vector<1x2x256xf32>,
    %c0_213 = arith.constant 0 : index
    %c0_214 = arith.constant 0 : index
    %407 = vector.load %arg5[%c0_213, %c0_214] : memref<64x256xf32, #tpu.memory_space<vmem>>, vector<64x256xf32>
    %c2_215 = arith.constant 2 : index
    %c0_216 = arith.constant 0 : index
    %c0_217 = arith.constant 0 : index
    %408 = vector.load %arg6[%c2_215, %c0_216, %c0_217] : memref<4x2x32xf32, #tpu.memory_space<vmem>>, vector<1x2x32xf32>
    %409 = vector.shape_cast %408 : vector<1x2x32xf32> to vector<2x32xf32>
    %c3_218 = arith.constant 3 : index
    %c0_219 = arith.constant 0 : index
    %c0_220 = arith.constant 0 : index
    %410 = vector.load %arg6[%c3_218, %c0_219, %c0_220] : memref<4x2x32xf32, #tpu.memory_space<vmem>>, vector<1x2x32xf32>
    %411 = vector.shape_cast %410 : vector<1x2x32xf32> to vector<2x32xf32>
    %412 = tpu.concatenate %409, %411 in 1 : vector<2x32xf32>, vector<2x32xf32> -> vector<2x64xf32>
    %c2_221 = arith.constant 2 : index
    %c0_222 = arith.constant 0 : index
    %c0_223 = arith.constant 0 : index
    %413 = vector.load %arg7[%c2_221, %c0_222, %c0_223] : memref<4x2x32xf32, #tpu.memory_space<vmem>>, vector<1x2x32xf32>
    %414 = vector.shape_cast %413 : vector<1x2x32xf32> to vector<2x32xf32>
    %c3_224 = arith.constant 3 : index
    %c0_225 = arith.constant 0 : index
    %c0_226 = arith.constant 0 : index
    %415 = vector.load %arg7[%c3_224, %c0_225, %c0_226] : memref<4x2x32xf32, #tpu.memory_space<vmem>>, vector<1x2x32xf32>
    %416 = vector.shape_cast %415 : vector<1x2x32xf32> to vector<2x32xf32>
    %417 = tpu.concatenate %414, %416 in 1 : vector<2x32xf32>, vector<2x32xf32> -> vector<2x64xf32>
    %c0_i32_227 = arith.constant 0 : i32
    %c7_i32_228 = arith.constant 7 : i32
    %418 = arith.subi %c7_i32_228, %c0_i32_227 : i32
    %419 = arith.index_cast %418 : i32 to index
    %c0_229 = arith.constant 0 : index
    %c0_230 = arith.constant 0 : index
    %420 = vector.load %arg13[%419, %c0_229, %c0_230] : memref<8x2x256xf32, #tpu.memory_space<vmem>>, vector<1x2x256xf32>
    %421 = vector.shape_cast %420 : vector<1x2x256xf32> to vector<2x256xf32>
    %422 = arith.index_cast %c0_i32_227 : i32 to index
    %c0_231 = arith.constant 0 : index
    %c0_232 = arith.constant 0 : index
    %423 = vector.load %arg13[%422, %c0_231, %c0_232] : memref<8x2x256xf32, #tpu.memory_space<vmem>>, vector<1x2x256xf32>
    %424 = vector.shape_cast %423 : vector<1x2x256xf32> to vector<2x256xf32>
    %425 = arith.select %18, %421, %424 : vector<2x256xi1>, vector<2x256xf32>
    %cst_233 = arith.constant dense<0.000000e+00> : vector<2x256xf32>
    %426 = tpu.matmul %412, %407, %cst_233 {dimension_numbers = #tpu.dot_dimension_numbers<[1], [0], [0], [1], [0, 0, 1, 1], [], []>} : vector<2x64xf32>, vector<64x256xf32>, vector<2x256xf32> -> vector<2x256xf32>
    %427 = arith.addf %425, %426 : vector<2x256xf32>
    %428 = vector.extract_strided_slice %427 {offsets = [0, 0], sizes = [2, 192], strides = [1, 1]} : vector<2x256xf32> to vector<2x192xf32>
    %429 = arith.negf %428 : vector<2x192xf32>
    %430 = math.exp %429 : vector<2x192xf32>
    %cst_234 = arith.constant 1.000000e+00 : f32
    %431 = vector.broadcast %cst_234 : f32 to vector<2x192xf32>
    %432 = arith.addf %431, %430 : vector<2x192xf32>
    %433 = arith.divf %431, %432 : vector<2x192xf32>
    %434 = vector.extract_strided_slice %427 {offsets = [0, 192], sizes = [2, 64], strides = [1, 1]} : vector<2x256xf32> to vector<2x64xf32>
    %435 = math.tanh %434 : vector<2x64xf32>
    %436 = vector.extract_strided_slice %433 {offsets = [0, 0], sizes = [2, 64], strides = [1, 1]} : vector<2x192xf32> to vector<2x64xf32>
    %437 = vector.extract_strided_slice %433 {offsets = [0, 64], sizes = [2, 64], strides = [1, 1]} : vector<2x192xf32> to vector<2x64xf32>
    %438 = vector.extract_strided_slice %433 {offsets = [0, 128], sizes = [2, 64], strides = [1, 1]} : vector<2x192xf32> to vector<2x64xf32>
    %439 = arith.mulf %437, %417 : vector<2x64xf32>
    %440 = arith.mulf %436, %435 : vector<2x64xf32>
    %441 = arith.addf %439, %440 : vector<2x64xf32>
    %442 = math.tanh %441 : vector<2x64xf32>
    %443 = arith.mulf %438, %442 : vector<2x64xf32>
    %444 = arith.index_cast %c0_i32_227 : i32 to index
    %c0_235 = arith.constant 0 : index
    %c0_236 = arith.constant 0 : index
    %445 = vector.load %arg14[%444, %c0_235, %c0_236] : memref<8x2x64xf32, #tpu.memory_space<vmem>>, vector<1x2x64xf32>
    %446 = vector.shape_cast %445 : vector<1x2x64xf32> to vector<2x64xf32>
    %447 = vector.shape_cast %443 : vector<2x64xf32> to vector<1x2x64xf32>
    tpu.vector_store %arg14[%444, %c0_235, %c0_236], %447 {strides = array<i32>} : memref<8x2x64xf32, #tpu.memory_space<vmem>>, vector<1x2x64xf32>,
    %c1_i32_237 = arith.constant 1 : i32
    %c7_i32_238 = arith.constant 7 : i32
    %448 = arith.subi %c7_i32_238, %c1_i32_237 : i32
    %449 = arith.index_cast %448 : i32 to index
    %c0_239 = arith.constant 0 : index
    %c0_240 = arith.constant 0 : index
    %450 = vector.load %arg13[%449, %c0_239, %c0_240] : memref<8x2x256xf32, #tpu.memory_space<vmem>>, vector<1x2x256xf32>
    %451 = vector.shape_cast %450 : vector<1x2x256xf32> to vector<2x256xf32>
    %452 = arith.index_cast %c1_i32_237 : i32 to index
    %c0_241 = arith.constant 0 : index
    %c0_242 = arith.constant 0 : index
    %453 = vector.load %arg13[%452, %c0_241, %c0_242] : memref<8x2x256xf32, #tpu.memory_space<vmem>>, vector<1x2x256xf32>
    %454 = vector.shape_cast %453 : vector<1x2x256xf32> to vector<2x256xf32>
    %455 = arith.select %18, %451, %454 : vector<2x256xi1>, vector<2x256xf32>
    %cst_243 = arith.constant dense<0.000000e+00> : vector<2x256xf32>
    %456 = tpu.matmul %443, %407, %cst_243 {dimension_numbers = #tpu.dot_dimension_numbers<[1], [0], [0], [1], [0, 0, 1, 1], [], []>} : vector<2x64xf32>, vector<64x256xf32>, vector<2x256xf32> -> vector<2x256xf32>
    %457 = arith.addf %455, %456 : vector<2x256xf32>
    %458 = vector.extract_strided_slice %457 {offsets = [0, 0], sizes = [2, 192], strides = [1, 1]} : vector<2x256xf32> to vector<2x192xf32>
    %459 = arith.negf %458 : vector<2x192xf32>
    %460 = math.exp %459 : vector<2x192xf32>
    %cst_244 = arith.constant 1.000000e+00 : f32
    %461 = vector.broadcast %cst_244 : f32 to vector<2x192xf32>
    %462 = arith.addf %461, %460 : vector<2x192xf32>
    %463 = arith.divf %461, %462 : vector<2x192xf32>
    %464 = vector.extract_strided_slice %457 {offsets = [0, 192], sizes = [2, 64], strides = [1, 1]} : vector<2x256xf32> to vector<2x64xf32>
    %465 = math.tanh %464 : vector<2x64xf32>
    %466 = vector.extract_strided_slice %463 {offsets = [0, 0], sizes = [2, 64], strides = [1, 1]} : vector<2x192xf32> to vector<2x64xf32>
    %467 = vector.extract_strided_slice %463 {offsets = [0, 64], sizes = [2, 64], strides = [1, 1]} : vector<2x192xf32> to vector<2x64xf32>
    %468 = vector.extract_strided_slice %463 {offsets = [0, 128], sizes = [2, 64], strides = [1, 1]} : vector<2x192xf32> to vector<2x64xf32>
    %469 = arith.mulf %467, %441 : vector<2x64xf32>
    %470 = arith.mulf %466, %465 : vector<2x64xf32>
    %471 = arith.addf %469, %470 : vector<2x64xf32>
    %472 = math.tanh %471 : vector<2x64xf32>
    %473 = arith.mulf %468, %472 : vector<2x64xf32>
    %474 = arith.index_cast %c1_i32_237 : i32 to index
    %c0_245 = arith.constant 0 : index
    %c0_246 = arith.constant 0 : index
    %475 = vector.load %arg14[%474, %c0_245, %c0_246] : memref<8x2x64xf32, #tpu.memory_space<vmem>>, vector<1x2x64xf32>
    %476 = vector.shape_cast %475 : vector<1x2x64xf32> to vector<2x64xf32>
    %477 = vector.shape_cast %473 : vector<2x64xf32> to vector<1x2x64xf32>
    tpu.vector_store %arg14[%474, %c0_245, %c0_246], %477 {strides = array<i32>} : memref<8x2x64xf32, #tpu.memory_space<vmem>>, vector<1x2x64xf32>,
    %c2_i32_247 = arith.constant 2 : i32
    %c7_i32_248 = arith.constant 7 : i32
    %478 = arith.subi %c7_i32_248, %c2_i32_247 : i32
    %479 = arith.index_cast %478 : i32 to index
    %c0_249 = arith.constant 0 : index
    %c0_250 = arith.constant 0 : index
    %480 = vector.load %arg13[%479, %c0_249, %c0_250] : memref<8x2x256xf32, #tpu.memory_space<vmem>>, vector<1x2x256xf32>
    %481 = vector.shape_cast %480 : vector<1x2x256xf32> to vector<2x256xf32>
    %482 = arith.index_cast %c2_i32_247 : i32 to index
    %c0_251 = arith.constant 0 : index
    %c0_252 = arith.constant 0 : index
    %483 = vector.load %arg13[%482, %c0_251, %c0_252] : memref<8x2x256xf32, #tpu.memory_space<vmem>>, vector<1x2x256xf32>
    %484 = vector.shape_cast %483 : vector<1x2x256xf32> to vector<2x256xf32>
    %485 = arith.select %18, %481, %484 : vector<2x256xi1>, vector<2x256xf32>
    %cst_253 = arith.constant dense<0.000000e+00> : vector<2x256xf32>
    %486 = tpu.matmul %473, %407, %cst_253 {dimension_numbers = #tpu.dot_dimension_numbers<[1], [0], [0], [1], [0, 0, 1, 1], [], []>} : vector<2x64xf32>, vector<64x256xf32>, vector<2x256xf32> -> vector<2x256xf32>
    %487 = arith.addf %485, %486 : vector<2x256xf32>
    %488 = vector.extract_strided_slice %487 {offsets = [0, 0], sizes = [2, 192], strides = [1, 1]} : vector<2x256xf32> to vector<2x192xf32>
    %489 = arith.negf %488 : vector<2x192xf32>
    %490 = math.exp %489 : vector<2x192xf32>
    %cst_254 = arith.constant 1.000000e+00 : f32
    %491 = vector.broadcast %cst_254 : f32 to vector<2x192xf32>
    %492 = arith.addf %491, %490 : vector<2x192xf32>
    %493 = arith.divf %491, %492 : vector<2x192xf32>
    %494 = vector.extract_strided_slice %487 {offsets = [0, 192], sizes = [2, 64], strides = [1, 1]} : vector<2x256xf32> to vector<2x64xf32>
    %495 = math.tanh %494 : vector<2x64xf32>
    %496 = vector.extract_strided_slice %493 {offsets = [0, 0], sizes = [2, 64], strides = [1, 1]} : vector<2x192xf32> to vector<2x64xf32>
    %497 = vector.extract_strided_slice %493 {offsets = [0, 64], sizes = [2, 64], strides = [1, 1]} : vector<2x192xf32> to vector<2x64xf32>
    %498 = vector.extract_strided_slice %493 {offsets = [0, 128], sizes = [2, 64], strides = [1, 1]} : vector<2x192xf32> to vector<2x64xf32>
    %499 = arith.mulf %497, %471 : vector<2x64xf32>
    %500 = arith.mulf %496, %495 : vector<2x64xf32>
    %501 = arith.addf %499, %500 : vector<2x64xf32>
    %502 = math.tanh %501 : vector<2x64xf32>
    %503 = arith.mulf %498, %502 : vector<2x64xf32>
    %504 = arith.index_cast %c2_i32_247 : i32 to index
    %c0_255 = arith.constant 0 : index
    %c0_256 = arith.constant 0 : index
    %505 = vector.load %arg14[%504, %c0_255, %c0_256] : memref<8x2x64xf32, #tpu.memory_space<vmem>>, vector<1x2x64xf32>
    %506 = vector.shape_cast %505 : vector<1x2x64xf32> to vector<2x64xf32>
    %507 = vector.shape_cast %503 : vector<2x64xf32> to vector<1x2x64xf32>
    tpu.vector_store %arg14[%504, %c0_255, %c0_256], %507 {strides = array<i32>} : memref<8x2x64xf32, #tpu.memory_space<vmem>>, vector<1x2x64xf32>,
    %c3_i32_257 = arith.constant 3 : i32
    %c7_i32_258 = arith.constant 7 : i32
    %508 = arith.subi %c7_i32_258, %c3_i32_257 : i32
    %509 = arith.index_cast %508 : i32 to index
    %c0_259 = arith.constant 0 : index
    %c0_260 = arith.constant 0 : index
    %510 = vector.load %arg13[%509, %c0_259, %c0_260] : memref<8x2x256xf32, #tpu.memory_space<vmem>>, vector<1x2x256xf32>
    %511 = vector.shape_cast %510 : vector<1x2x256xf32> to vector<2x256xf32>
    %512 = arith.index_cast %c3_i32_257 : i32 to index
    %c0_261 = arith.constant 0 : index
    %c0_262 = arith.constant 0 : index
    %513 = vector.load %arg13[%512, %c0_261, %c0_262] : memref<8x2x256xf32, #tpu.memory_space<vmem>>, vector<1x2x256xf32>
    %514 = vector.shape_cast %513 : vector<1x2x256xf32> to vector<2x256xf32>
    %515 = arith.select %18, %511, %514 : vector<2x256xi1>, vector<2x256xf32>
    %cst_263 = arith.constant dense<0.000000e+00> : vector<2x256xf32>
    %516 = tpu.matmul %503, %407, %cst_263 {dimension_numbers = #tpu.dot_dimension_numbers<[1], [0], [0], [1], [0, 0, 1, 1], [], []>} : vector<2x64xf32>, vector<64x256xf32>, vector<2x256xf32> -> vector<2x256xf32>
    %517 = arith.addf %515, %516 : vector<2x256xf32>
    %518 = vector.extract_strided_slice %517 {offsets = [0, 0], sizes = [2, 192], strides = [1, 1]} : vector<2x256xf32> to vector<2x192xf32>
    %519 = arith.negf %518 : vector<2x192xf32>
    %520 = math.exp %519 : vector<2x192xf32>
    %cst_264 = arith.constant 1.000000e+00 : f32
    %521 = vector.broadcast %cst_264 : f32 to vector<2x192xf32>
    %522 = arith.addf %521, %520 : vector<2x192xf32>
    %523 = arith.divf %521, %522 : vector<2x192xf32>
    %524 = vector.extract_strided_slice %517 {offsets = [0, 192], sizes = [2, 64], strides = [1, 1]} : vector<2x256xf32> to vector<2x64xf32>
    %525 = math.tanh %524 : vector<2x64xf32>
    %526 = vector.extract_strided_slice %523 {offsets = [0, 0], sizes = [2, 64], strides = [1, 1]} : vector<2x192xf32> to vector<2x64xf32>
    %527 = vector.extract_strided_slice %523 {offsets = [0, 64], sizes = [2, 64], strides = [1, 1]} : vector<2x192xf32> to vector<2x64xf32>
    %528 = vector.extract_strided_slice %523 {offsets = [0, 128], sizes = [2, 64], strides = [1, 1]} : vector<2x192xf32> to vector<2x64xf32>
    %529 = arith.mulf %527, %501 : vector<2x64xf32>
    %530 = arith.mulf %526, %525 : vector<2x64xf32>
    %531 = arith.addf %529, %530 : vector<2x64xf32>
    %532 = math.tanh %531 : vector<2x64xf32>
    %533 = arith.mulf %528, %532 : vector<2x64xf32>
    %534 = arith.index_cast %c3_i32_257 : i32 to index
    %c0_265 = arith.constant 0 : index
    %c0_266 = arith.constant 0 : index
    %535 = vector.load %arg14[%534, %c0_265, %c0_266] : memref<8x2x64xf32, #tpu.memory_space<vmem>>, vector<1x2x64xf32>
    %536 = vector.shape_cast %535 : vector<1x2x64xf32> to vector<2x64xf32>
    %537 = vector.shape_cast %533 : vector<2x64xf32> to vector<1x2x64xf32>
    tpu.vector_store %arg14[%534, %c0_265, %c0_266], %537 {strides = array<i32>} : memref<8x2x64xf32, #tpu.memory_space<vmem>>, vector<1x2x64xf32>,
    %c4_i32_267 = arith.constant 4 : i32
    %c7_i32_268 = arith.constant 7 : i32
    %538 = arith.subi %c7_i32_268, %c4_i32_267 : i32
    %539 = arith.index_cast %538 : i32 to index
    %c0_269 = arith.constant 0 : index
    %c0_270 = arith.constant 0 : index
    %540 = vector.load %arg13[%539, %c0_269, %c0_270] : memref<8x2x256xf32, #tpu.memory_space<vmem>>, vector<1x2x256xf32>
    %541 = vector.shape_cast %540 : vector<1x2x256xf32> to vector<2x256xf32>
    %542 = arith.index_cast %c4_i32_267 : i32 to index
    %c0_271 = arith.constant 0 : index
    %c0_272 = arith.constant 0 : index
    %543 = vector.load %arg13[%542, %c0_271, %c0_272] : memref<8x2x256xf32, #tpu.memory_space<vmem>>, vector<1x2x256xf32>
    %544 = vector.shape_cast %543 : vector<1x2x256xf32> to vector<2x256xf32>
    %545 = arith.select %18, %541, %544 : vector<2x256xi1>, vector<2x256xf32>
    %cst_273 = arith.constant dense<0.000000e+00> : vector<2x256xf32>
    %546 = tpu.matmul %533, %407, %cst_273 {dimension_numbers = #tpu.dot_dimension_numbers<[1], [0], [0], [1], [0, 0, 1, 1], [], []>} : vector<2x64xf32>, vector<64x256xf32>, vector<2x256xf32> -> vector<2x256xf32>
    %547 = arith.addf %545, %546 : vector<2x256xf32>
    %548 = vector.extract_strided_slice %547 {offsets = [0, 0], sizes = [2, 192], strides = [1, 1]} : vector<2x256xf32> to vector<2x192xf32>
    %549 = arith.negf %548 : vector<2x192xf32>
    %550 = math.exp %549 : vector<2x192xf32>
    %cst_274 = arith.constant 1.000000e+00 : f32
    %551 = vector.broadcast %cst_274 : f32 to vector<2x192xf32>
    %552 = arith.addf %551, %550 : vector<2x192xf32>
    %553 = arith.divf %551, %552 : vector<2x192xf32>
    %554 = vector.extract_strided_slice %547 {offsets = [0, 192], sizes = [2, 64], strides = [1, 1]} : vector<2x256xf32> to vector<2x64xf32>
    %555 = math.tanh %554 : vector<2x64xf32>
    %556 = vector.extract_strided_slice %553 {offsets = [0, 0], sizes = [2, 64], strides = [1, 1]} : vector<2x192xf32> to vector<2x64xf32>
    %557 = vector.extract_strided_slice %553 {offsets = [0, 64], sizes = [2, 64], strides = [1, 1]} : vector<2x192xf32> to vector<2x64xf32>
    %558 = vector.extract_strided_slice %553 {offsets = [0, 128], sizes = [2, 64], strides = [1, 1]} : vector<2x192xf32> to vector<2x64xf32>
    %559 = arith.mulf %557, %531 : vector<2x64xf32>
    %560 = arith.mulf %556, %555 : vector<2x64xf32>
    %561 = arith.addf %559, %560 : vector<2x64xf32>
    %562 = math.tanh %561 : vector<2x64xf32>
    %563 = arith.mulf %558, %562 : vector<2x64xf32>
    %564 = arith.index_cast %c4_i32_267 : i32 to index
    %c0_275 = arith.constant 0 : index
    %c0_276 = arith.constant 0 : index
    %565 = vector.load %arg14[%564, %c0_275, %c0_276] : memref<8x2x64xf32, #tpu.memory_space<vmem>>, vector<1x2x64xf32>
    %566 = vector.shape_cast %565 : vector<1x2x64xf32> to vector<2x64xf32>
    %567 = vector.shape_cast %563 : vector<2x64xf32> to vector<1x2x64xf32>
    tpu.vector_store %arg14[%564, %c0_275, %c0_276], %567 {strides = array<i32>} : memref<8x2x64xf32, #tpu.memory_space<vmem>>, vector<1x2x64xf32>,
    %c5_i32_277 = arith.constant 5 : i32
    %c7_i32_278 = arith.constant 7 : i32
    %568 = arith.subi %c7_i32_278, %c5_i32_277 : i32
    %569 = arith.index_cast %568 : i32 to index
    %c0_279 = arith.constant 0 : index
    %c0_280 = arith.constant 0 : index
    %570 = vector.load %arg13[%569, %c0_279, %c0_280] : memref<8x2x256xf32, #tpu.memory_space<vmem>>, vector<1x2x256xf32>
    %571 = vector.shape_cast %570 : vector<1x2x256xf32> to vector<2x256xf32>
    %572 = arith.index_cast %c5_i32_277 : i32 to index
    %c0_281 = arith.constant 0 : index
    %c0_282 = arith.constant 0 : index
    %573 = vector.load %arg13[%572, %c0_281, %c0_282] : memref<8x2x256xf32, #tpu.memory_space<vmem>>, vector<1x2x256xf32>
    %574 = vector.shape_cast %573 : vector<1x2x256xf32> to vector<2x256xf32>
    %575 = arith.select %18, %571, %574 : vector<2x256xi1>, vector<2x256xf32>
    %cst_283 = arith.constant dense<0.000000e+00> : vector<2x256xf32>
    %576 = tpu.matmul %563, %407, %cst_283 {dimension_numbers = #tpu.dot_dimension_numbers<[1], [0], [0], [1], [0, 0, 1, 1], [], []>} : vector<2x64xf32>, vector<64x256xf32>, vector<2x256xf32> -> vector<2x256xf32>
    %577 = arith.addf %575, %576 : vector<2x256xf32>
    %578 = vector.extract_strided_slice %577 {offsets = [0, 0], sizes = [2, 192], strides = [1, 1]} : vector<2x256xf32> to vector<2x192xf32>
    %579 = arith.negf %578 : vector<2x192xf32>
    %580 = math.exp %579 : vector<2x192xf32>
    %cst_284 = arith.constant 1.000000e+00 : f32
    %581 = vector.broadcast %cst_284 : f32 to vector<2x192xf32>
    %582 = arith.addf %581, %580 : vector<2x192xf32>
    %583 = arith.divf %581, %582 : vector<2x192xf32>
    %584 = vector.extract_strided_slice %577 {offsets = [0, 192], sizes = [2, 64], strides = [1, 1]} : vector<2x256xf32> to vector<2x64xf32>
    %585 = math.tanh %584 : vector<2x64xf32>
    %586 = vector.extract_strided_slice %583 {offsets = [0, 0], sizes = [2, 64], strides = [1, 1]} : vector<2x192xf32> to vector<2x64xf32>
    %587 = vector.extract_strided_slice %583 {offsets = [0, 64], sizes = [2, 64], strides = [1, 1]} : vector<2x192xf32> to vector<2x64xf32>
    %588 = vector.extract_strided_slice %583 {offsets = [0, 128], sizes = [2, 64], strides = [1, 1]} : vector<2x192xf32> to vector<2x64xf32>
    %589 = arith.mulf %587, %561 : vector<2x64xf32>
    %590 = arith.mulf %586, %585 : vector<2x64xf32>
    %591 = arith.addf %589, %590 : vector<2x64xf32>
    %592 = math.tanh %591 : vector<2x64xf32>
    %593 = arith.mulf %588, %592 : vector<2x64xf32>
    %594 = arith.index_cast %c5_i32_277 : i32 to index
    %c0_285 = arith.constant 0 : index
    %c0_286 = arith.constant 0 : index
    %595 = vector.load %arg14[%594, %c0_285, %c0_286] : memref<8x2x64xf32, #tpu.memory_space<vmem>>, vector<1x2x64xf32>
    %596 = vector.shape_cast %595 : vector<1x2x64xf32> to vector<2x64xf32>
    %597 = vector.shape_cast %593 : vector<2x64xf32> to vector<1x2x64xf32>
    tpu.vector_store %arg14[%594, %c0_285, %c0_286], %597 {strides = array<i32>} : memref<8x2x64xf32, #tpu.memory_space<vmem>>, vector<1x2x64xf32>,
    %c6_i32_287 = arith.constant 6 : i32
    %c7_i32_288 = arith.constant 7 : i32
    %598 = arith.subi %c7_i32_288, %c6_i32_287 : i32
    %599 = arith.index_cast %598 : i32 to index
    %c0_289 = arith.constant 0 : index
    %c0_290 = arith.constant 0 : index
    %600 = vector.load %arg13[%599, %c0_289, %c0_290] : memref<8x2x256xf32, #tpu.memory_space<vmem>>, vector<1x2x256xf32>
    %601 = vector.shape_cast %600 : vector<1x2x256xf32> to vector<2x256xf32>
    %602 = arith.index_cast %c6_i32_287 : i32 to index
    %c0_291 = arith.constant 0 : index
    %c0_292 = arith.constant 0 : index
    %603 = vector.load %arg13[%602, %c0_291, %c0_292] : memref<8x2x256xf32, #tpu.memory_space<vmem>>, vector<1x2x256xf32>
    %604 = vector.shape_cast %603 : vector<1x2x256xf32> to vector<2x256xf32>
    %605 = arith.select %18, %601, %604 : vector<2x256xi1>, vector<2x256xf32>
    %cst_293 = arith.constant dense<0.000000e+00> : vector<2x256xf32>
    %606 = tpu.matmul %593, %407, %cst_293 {dimension_numbers = #tpu.dot_dimension_numbers<[1], [0], [0], [1], [0, 0, 1, 1], [], []>} : vector<2x64xf32>, vector<64x256xf32>, vector<2x256xf32> -> vector<2x256xf32>
    %607 = arith.addf %605, %606 : vector<2x256xf32>
    %608 = vector.extract_strided_slice %607 {offsets = [0, 0], sizes = [2, 192], strides = [1, 1]} : vector<2x256xf32> to vector<2x192xf32>
    %609 = arith.negf %608 : vector<2x192xf32>
    %610 = math.exp %609 : vector<2x192xf32>
    %cst_294 = arith.constant 1.000000e+00 : f32
    %611 = vector.broadcast %cst_294 : f32 to vector<2x192xf32>
    %612 = arith.addf %611, %610 : vector<2x192xf32>
    %613 = arith.divf %611, %612 : vector<2x192xf32>
    %614 = vector.extract_strided_slice %607 {offsets = [0, 192], sizes = [2, 64], strides = [1, 1]} : vector<2x256xf32> to vector<2x64xf32>
    %615 = math.tanh %614 : vector<2x64xf32>
    %616 = vector.extract_strided_slice %613 {offsets = [0, 0], sizes = [2, 64], strides = [1, 1]} : vector<2x192xf32> to vector<2x64xf32>
    %617 = vector.extract_strided_slice %613 {offsets = [0, 64], sizes = [2, 64], strides = [1, 1]} : vector<2x192xf32> to vector<2x64xf32>
    %618 = vector.extract_strided_slice %613 {offsets = [0, 128], sizes = [2, 64], strides = [1, 1]} : vector<2x192xf32> to vector<2x64xf32>
    %619 = arith.mulf %617, %591 : vector<2x64xf32>
    %620 = arith.mulf %616, %615 : vector<2x64xf32>
    %621 = arith.addf %619, %620 : vector<2x64xf32>
    %622 = math.tanh %621 : vector<2x64xf32>
    %623 = arith.mulf %618, %622 : vector<2x64xf32>
    %624 = arith.index_cast %c6_i32_287 : i32 to index
    %c0_295 = arith.constant 0 : index
    %c0_296 = arith.constant 0 : index
    %625 = vector.load %arg14[%624, %c0_295, %c0_296] : memref<8x2x64xf32, #tpu.memory_space<vmem>>, vector<1x2x64xf32>
    %626 = vector.shape_cast %625 : vector<1x2x64xf32> to vector<2x64xf32>
    %627 = vector.shape_cast %623 : vector<2x64xf32> to vector<1x2x64xf32>
    tpu.vector_store %arg14[%624, %c0_295, %c0_296], %627 {strides = array<i32>} : memref<8x2x64xf32, #tpu.memory_space<vmem>>, vector<1x2x64xf32>,
    %c7_i32_297 = arith.constant 7 : i32
    %c7_i32_298 = arith.constant 7 : i32
    %628 = arith.subi %c7_i32_298, %c7_i32_297 : i32
    %629 = arith.index_cast %628 : i32 to index
    %c0_299 = arith.constant 0 : index
    %c0_300 = arith.constant 0 : index
    %630 = vector.load %arg13[%629, %c0_299, %c0_300] : memref<8x2x256xf32, #tpu.memory_space<vmem>>, vector<1x2x256xf32>
    %631 = vector.shape_cast %630 : vector<1x2x256xf32> to vector<2x256xf32>
    %632 = arith.index_cast %c7_i32_297 : i32 to index
    %c0_301 = arith.constant 0 : index
    %c0_302 = arith.constant 0 : index
    %633 = vector.load %arg13[%632, %c0_301, %c0_302] : memref<8x2x256xf32, #tpu.memory_space<vmem>>, vector<1x2x256xf32>
    %634 = vector.shape_cast %633 : vector<1x2x256xf32> to vector<2x256xf32>
    %635 = arith.select %18, %631, %634 : vector<2x256xi1>, vector<2x256xf32>
    %cst_303 = arith.constant dense<0.000000e+00> : vector<2x256xf32>
    %636 = tpu.matmul %623, %407, %cst_303 {dimension_numbers = #tpu.dot_dimension_numbers<[1], [0], [0], [1], [0, 0, 1, 1], [], []>} : vector<2x64xf32>, vector<64x256xf32>, vector<2x256xf32> -> vector<2x256xf32>
    %637 = arith.addf %635, %636 : vector<2x256xf32>
    %638 = vector.extract_strided_slice %637 {offsets = [0, 0], sizes = [2, 192], strides = [1, 1]} : vector<2x256xf32> to vector<2x192xf32>
    %639 = arith.negf %638 : vector<2x192xf32>
    %640 = math.exp %639 : vector<2x192xf32>
    %cst_304 = arith.constant 1.000000e+00 : f32
    %641 = vector.broadcast %cst_304 : f32 to vector<2x192xf32>
    %642 = arith.addf %641, %640 : vector<2x192xf32>
    %643 = arith.divf %641, %642 : vector<2x192xf32>
    %644 = vector.extract_strided_slice %637 {offsets = [0, 192], sizes = [2, 64], strides = [1, 1]} : vector<2x256xf32> to vector<2x64xf32>
    %645 = math.tanh %644 : vector<2x64xf32>
    %646 = vector.extract_strided_slice %643 {offsets = [0, 0], sizes = [2, 64], strides = [1, 1]} : vector<2x192xf32> to vector<2x64xf32>
    %647 = vector.extract_strided_slice %643 {offsets = [0, 64], sizes = [2, 64], strides = [1, 1]} : vector<2x192xf32> to vector<2x64xf32>
    %648 = vector.extract_strided_slice %643 {offsets = [0, 128], sizes = [2, 64], strides = [1, 1]} : vector<2x192xf32> to vector<2x64xf32>
    %649 = arith.mulf %647, %621 : vector<2x64xf32>
    %650 = arith.mulf %646, %645 : vector<2x64xf32>
    %651 = arith.addf %649, %650 : vector<2x64xf32>
    %652 = math.tanh %651 : vector<2x64xf32>
    %653 = arith.mulf %648, %652 : vector<2x64xf32>
    %654 = arith.index_cast %c7_i32_297 : i32 to index
    %c0_305 = arith.constant 0 : index
    %c0_306 = arith.constant 0 : index
    %655 = vector.load %arg14[%654, %c0_305, %c0_306] : memref<8x2x64xf32, #tpu.memory_space<vmem>>, vector<1x2x64xf32>
    %656 = vector.shape_cast %655 : vector<1x2x64xf32> to vector<2x64xf32>
    %657 = vector.shape_cast %653 : vector<2x64xf32> to vector<1x2x64xf32>
    tpu.vector_store %arg14[%654, %c0_305, %c0_306], %657 {strides = array<i32>} : memref<8x2x64xf32, #tpu.memory_space<vmem>>, vector<1x2x64xf32>,
    %c8_i32_307 = arith.constant 8 : i32
    %658 = vector.extract_strided_slice %653 {offsets = [0, 0], sizes = [2, 32], strides = [1, 1]} : vector<2x64xf32> to vector<2x32xf32>
    %c2_308 = arith.constant 2 : index
    %c0_309 = arith.constant 0 : index
    %c0_310 = arith.constant 0 : index
    %659 = vector.load %arg11[%c2_308, %c0_309, %c0_310] : memref<4x2x32xf32, #tpu.memory_space<vmem>>, vector<1x2x32xf32>
    %660 = vector.shape_cast %659 : vector<1x2x32xf32> to vector<2x32xf32>
    %661 = vector.shape_cast %658 : vector<2x32xf32> to vector<1x2x32xf32>
    tpu.vector_store %arg11[%c2_308, %c0_309, %c0_310], %661 {strides = array<i32>} : memref<4x2x32xf32, #tpu.memory_space<vmem>>, vector<1x2x32xf32>,
    %662 = vector.extract_strided_slice %653 {offsets = [0, 32], sizes = [2, 32], strides = [1, 1]} : vector<2x64xf32> to vector<2x32xf32>
    %c3_311 = arith.constant 3 : index
    %c0_312 = arith.constant 0 : index
    %c0_313 = arith.constant 0 : index
    %663 = vector.load %arg11[%c3_311, %c0_312, %c0_313] : memref<4x2x32xf32, #tpu.memory_space<vmem>>, vector<1x2x32xf32>
    %664 = vector.shape_cast %663 : vector<1x2x32xf32> to vector<2x32xf32>
    %665 = vector.shape_cast %662 : vector<2x32xf32> to vector<1x2x32xf32>
    tpu.vector_store %arg11[%c3_311, %c0_312, %c0_313], %665 {strides = array<i32>} : memref<4x2x32xf32, #tpu.memory_space<vmem>>, vector<1x2x32xf32>,
    %666 = vector.extract_strided_slice %651 {offsets = [0, 0], sizes = [2, 32], strides = [1, 1]} : vector<2x64xf32> to vector<2x32xf32>
    %c2_314 = arith.constant 2 : index
    %c0_315 = arith.constant 0 : index
    %c0_316 = arith.constant 0 : index
    %667 = vector.load %arg12[%c2_314, %c0_315, %c0_316] : memref<4x2x32xf32, #tpu.memory_space<vmem>>, vector<1x2x32xf32>
    %668 = vector.shape_cast %667 : vector<1x2x32xf32> to vector<2x32xf32>
    %669 = vector.shape_cast %666 : vector<2x32xf32> to vector<1x2x32xf32>
    tpu.vector_store %arg12[%c2_314, %c0_315, %c0_316], %669 {strides = array<i32>} : memref<4x2x32xf32, #tpu.memory_space<vmem>>, vector<1x2x32xf32>,
    %670 = vector.extract_strided_slice %651 {offsets = [0, 32], sizes = [2, 32], strides = [1, 1]} : vector<2x64xf32> to vector<2x32xf32>
    %c3_317 = arith.constant 3 : index
    %c0_318 = arith.constant 0 : index
    %c0_319 = arith.constant 0 : index
    %671 = vector.load %arg12[%c3_317, %c0_318, %c0_319] : memref<4x2x32xf32, #tpu.memory_space<vmem>>, vector<1x2x32xf32>
    %672 = vector.shape_cast %671 : vector<1x2x32xf32> to vector<2x32xf32>
    %673 = vector.shape_cast %670 : vector<2x32xf32> to vector<1x2x32xf32>
    tpu.vector_store %arg12[%c3_317, %c0_318, %c0_319], %673 {strides = array<i32>} : memref<4x2x32xf32, #tpu.memory_space<vmem>>, vector<1x2x32xf32>,
    %c7_320 = arith.constant 7 : index
    %c0_321 = arith.constant 0 : index
    %c0_322 = arith.constant 0 : index
    %674 = vector.load %arg14[%c7_320, %c0_321, %c0_322] : memref<8x2x64xf32, #tpu.memory_space<vmem>>, vector<1x2x64xf32>
    %675 = vector.shape_cast %674 : vector<1x2x64xf32> to vector<2x64xf32>
    %c0_323 = arith.constant 0 : index
    %c0_324 = arith.constant 0 : index
    %c0_325 = arith.constant 0 : index
    %676 = vector.load %arg14[%c0_323, %c0_324, %c0_325] : memref<8x2x64xf32, #tpu.memory_space<vmem>>, vector<1x2x64xf32>
    %677 = vector.shape_cast %676 : vector<1x2x64xf32> to vector<2x64xf32>
    %678 = arith.select %21, %675, %677 : vector<2x64xi1>, vector<2x64xf32>
    %c0_326 = arith.constant 0 : index
    %c0_327 = arith.constant 0 : index
    %679 = vector.load %arg8[%c0_326, %c0_327] : memref<1x64xf32, #tpu.memory_space<vmem>>, vector<1x64xf32>
    %680 = vector.broadcast %679 : vector<1x64xf32> to vector<2x64xf32>
    %681 = arith.mulf %678, %680 : vector<2x64xf32>
    %cst_328 = arith.constant dense<0.000000e+00> : vector<2xf32>
    %682 = vector.multi_reduction <add>, %681, %cst_328 [1] : vector<2x64xf32> to vector<2xf32>
    %683 = vector.shape_cast %682 : vector<2xf32> to vector<2x1xf32>
    %c0_329 = arith.constant 0 : index
    %c0_330 = arith.constant 0 : index
    %684 = vector.load %arg9[%c0_329, %c0_330] : memref<1x1xf32, #tpu.memory_space<vmem>>, vector<1x1xf32>
    %685 = vector.broadcast %684 : vector<1x1xf32> to vector<2x1xf32>
    %686 = arith.addf %683, %685 : vector<2x1xf32>
    %c0_331 = arith.constant 0 : index
    %c0_332 = arith.constant 0 : index
    %687 = vector.load %arg10[%c0_331, %c0_332] : memref<2x1xf32, #tpu.memory_space<vmem>>, vector<2x1xf32>
    tpu.vector_store %arg10[%c0_331, %c0_332], %686 {strides = array<i32>} : memref<2x1xf32, #tpu.memory_space<vmem>>, vector<2x1xf32>,
    return
  }
  func.func @transform_0(%arg0: i32) -> (i32, i32) {
    %c0_i32 = arith.constant 0 : i32
    %c0_i32_0 = arith.constant 0 : i32
    %c0_i32_1 = arith.constant 0 : i32
    return %c0_i32, %c0_i32_0 : i32, i32
  }
  func.func @transform_1(%arg0: i32) -> (i32, i32) {
    %c0_i32 = arith.constant 0 : i32
    %c0_i32_0 = arith.constant 0 : i32
    %c0_i32_1 = arith.constant 0 : i32
    return %c0_i32, %c0_i32_0 : i32, i32
  }
  func.func @transform_2(%arg0: i32) -> (i32, i32) {
    %c0_i32 = arith.constant 0 : i32
    %c0_i32_0 = arith.constant 0 : i32
    %c0_i32_1 = arith.constant 0 : i32
    return %c0_i32, %c0_i32_0 : i32, i32
  }
  func.func @transform_3(%arg0: i32) -> (i32, i32) {
    %c0_i32 = arith.constant 0 : i32
    %c0_i32_0 = arith.constant 0 : i32
    %c0_i32_1 = arith.constant 0 : i32
    return %c0_i32, %c0_i32_0 : i32, i32
  }
  func.func @transform_4(%arg0: i32) -> (i32, i32) {
    %c0_i32 = arith.constant 0 : i32
    %c0_i32_0 = arith.constant 0 : i32
    %c0_i32_1 = arith.constant 0 : i32
    return %c0_i32, %c0_i32_0 : i32, i32
  }
  func.func @transform_5(%arg0: i32) -> (i32, i32, i32) {
    %c0_i32 = arith.constant 0 : i32
    %c0_i32_0 = arith.constant 0 : i32
    %c0_i32_1 = arith.constant 0 : i32
    %c0_i32_2 = arith.constant 0 : i32
    return %c0_i32, %c0_i32_0, %c0_i32_1 : i32, i32, i32
  }
  func.func @transform_6(%arg0: i32) -> (i32, i32, i32) {
    %c0_i32 = arith.constant 0 : i32
    %c0_i32_0 = arith.constant 0 : i32
    %c0_i32_1 = arith.constant 0 : i32
    %c0_i32_2 = arith.constant 0 : i32
    return %c0_i32, %c0_i32_0, %c0_i32_1 : i32, i32, i32
  }
  func.func @transform_7(%arg0: i32) -> (i32, i32) {
    %c0_i32 = arith.constant 0 : i32
    %c0_i32_0 = arith.constant 0 : i32
    %c0_i32_1 = arith.constant 0 : i32
    return %c0_i32, %c0_i32_0 : i32, i32
  }
  func.func @transform_8(%arg0: i32) -> (i32, i32) {
    %c0_i32 = arith.constant 0 : i32
    %c0_i32_0 = arith.constant 0 : i32
    %c0_i32_1 = arith.constant 0 : i32
    return %c0_i32, %c0_i32_0 : i32, i32
  }
  func.func @transform_9(%arg0: i32) -> (i32, i32) {
    %c0_i32 = arith.constant 0 : i32
    %c0_i32_0 = arith.constant 0 : i32
    %c0_i32_1 = arith.constant 0 : i32
    return %c0_i32, %c0_i32_0 : i32, i32
  }
  func.func @transform_10(%arg0: i32) -> (i32, i32, i32) {
    %c0_i32 = arith.constant 0 : i32
    %c0_i32_0 = arith.constant 0 : i32
    %c0_i32_1 = arith.constant 0 : i32
    %c0_i32_2 = arith.constant 0 : i32
    return %c0_i32, %c0_i32_0, %c0_i32_1 : i32, i32, i32
  }
  func.func @transform_11(%arg0: i32) -> (i32, i32, i32) {
    %c0_i32 = arith.constant 0 : i32
    %c0_i32_0 = arith.constant 0 : i32
    %c0_i32_1 = arith.constant 0 : i32
    %c0_i32_2 = arith.constant 0 : i32
    return %c0_i32, %c0_i32_0, %c0_i32_1 : i32, i32, i32
  }
}

</mosaic_0001>

<bundles_post_ra>
// kernel: lstm_forward.1
= control target key start
LH: loop header
LB: loop body
LE: loop exit
PB: predicated region body
PF: predicated region fallthrough
CT: control target
= control target key end

     0   :  { %s4315_s0 = inlined_call_operand.vmem [shape: f32[16,16], index: 0, kind: input, shape index: {}]   ;;  %s4316_s1 = inlined_call_operand.vmem [shape: f32[16,256], index: 1, kind: input, shape index: {}]   ;;  %s4317_s2 = inlined_call_operand.hbm [shape: f32[64,256], index: 2, kind: input, shape index: {}]   ;;  %s4318_s3 = inlined_call_operand.hbm [shape: f32[64,256], index: 3, kind: input, shape index: {}]   ;;  %s4319_s4 = inlined_call_operand.hbm [shape: f32[64,256], index: 4, kind: input, shape index: {}]   ;;  %s4320_s5 = inlined_call_operand.vmem [shape: f32[4,2,32], index: 5, kind: input, shape index: {}]   ;;  %s4321_s6 = inlined_call_operand.vmem [shape: f32[4,2,32], index: 6, kind: input, shape index: {}]   ;;  %s4322_s7 = inlined_call_operand.vmem [shape: f32[1,64], index: 7, kind: input, shape index: {}]   ;;  %s4323_s8 = inlined_call_operand.<no memory space> [shape: f32[1,1], index: 8, kind: input, shape index: {}]   ;;  %s4324_s9 = inlined_call_operand.vmem [shape: f32[2,1], index: 9, kind: output, shape index: {0}]   ;;  %s4325_s10 = inlined_call_operand.hbm [shape: f32[4,2,32], index: 10, kind: output, shape index: {1}]   ;;  %s4326_s11 = inlined_call_operand.hbm [shape: f32[4,2,32], index: 11, kind: output, shape index: {2}]  }
   0x1   :  { %v17_v0 = vstv %s4323_s8 }
   0x2   :  { %18 = vst [vmem:[#allocation5] sm:$0x1] %v17_v0 }
   0x3   :  { %19 = vsyncpa [#allocation7], 0 }
   0x4   :  { %20 = vsyncpa [#allocation10], 0 }
   0x5   :  { %21 = vsyncpa [#allocation8], 0 }
   0x6   :  { %22 = vsyncpa [#allocation14], 0  ;;  %s3462_s19 = smov [#allocation9]   ;;  %s3463_s21 = smov [#allocation6]  }
   0x7   :  { %s44_s20 = sshll.u32 %s3462_s19, 4  ;;  %s32_s22 = sshll.u32 %s3463_s21, 4  ;;  %s45_s20 = int_to_ptr.vmem [resolvable:$true] %s44_s20  ;;  %s3538_s22 = int_to_ptr.vmem [resolvable:$true] %s32_s22 }
   0x8   :  { %s3344_s25 = scalar_lea.hbm %s4318_s3, 2048 }
   0x9   :  { %p3345_p0 = scmp.ne.s32.totalorder %s4318_s3, %s3344_s25  ;;  %p3348_p1 = scmp.lt.u32.totalorder %s3344_s25, %s4318_s3 }
   0xb   :  { %p3350_p2 = pnand %p3348_p1, %p3345_p0 }
   0xd   :  { %3353 = shalt.err (!%p3350_p2)
}
   0xe   :  { %s3354_s29 = scalar_lea.vmem %s45_s20, 2048  ;;  %p3359_p4 = scmp.lt.s32.totalorder %s45_s20, %s45_s20 }
   0xf   :  { %p3355_p3 = scmp.ne.s32.totalorder %s45_s20, %s3354_s29  ;;  %p3360_p5 = scmp.lt.s32.totalorder %s3354_s29, %s3354_s29 }
  0x11   :  { %p3361_p6 = por %p3360_p5, %p3359_p4 }
  0x13   :  { %p3362_p7 = pnand %p3361_p6, %p3355_p3 }
  0x15   :  { %3365 = shalt.err (!%p3362_p7)
}
  0x16   :  { %s3464_s30 = smov 256   ;;  %s3465_s12 = smov 16  }
  0x17   :  { %50 = dma.hbm_to_vmem [thread:$0]  %s4318_s3, 2048, %s45_s20, [#allocation10], %s3464_s30, %s3464_s30, %s3465_s12  }
  0x18   :  { %s3366_s17 = scalar_lea.hbm %s4317_s2, 2048 }
  0x19   :  { %p3367_p8 = scmp.ne.s32.totalorder %s4317_s2, %s3366_s17  ;;  %p3370_p9 = scmp.lt.u32.totalorder %s3366_s17, %s4317_s2 }
  0x1b   :  { %p3372_p10 = pnand %p3370_p9, %p3367_p8 }
  0x1d   :  { %3375 = shalt.err (!%p3372_p10)
}
  0x1e   :  { %s3376_s24 = scalar_lea.vmem %s3538_s22, 2048  ;;  %p3381_p12 = scmp.lt.s32.totalorder %s3538_s22, %s3538_s22 }
  0x1f   :  { %p3377_p11 = scmp.ne.s32.totalorder %s3538_s22, %s3376_s24  ;;  %p3382_p13 = scmp.lt.s32.totalorder %s3376_s24, %s3376_s24 }
  0x21   :  { %p3383_p0 = por %p3382_p13, %p3381_p12 }
  0x23   :  { %p3384_p1 = pnand %p3383_p0, %p3377_p11 }
  0x25   :  { %3387 = shalt.err (!%p3384_p1)
}
  0x26   :  { %38 = dma.hbm_to_vmem [thread:$0]  %s4317_s2, 2048, %s3538_s22, [#allocation7], %s3464_s30, %s3464_s30, %s3465_s12  }
  0x27   :  { %s3466_s25 = smov [#allocation11]   ;;  %s3388_s28 = scalar_lea.hbm %s4319_s4, 2048 }
  0x28   :  { %s56_s26 = sshll.u32 %s3466_s25, 4  ;;  %p3389_p2 = scmp.ne.s32.totalorder %s4319_s4, %s3388_s28  ;;  %s57_s26 = int_to_ptr.vmem [resolvable:$true] %s56_s26 }
  0x29   :  { %p3392_p3 = scmp.lt.u32.totalorder %s3388_s28, %s4319_s4 }
  0x2b   :  { %p3394_p4 = pnand %p3392_p3, %p3389_p2 }
  0x2d   :  { %3397 = shalt.err (!%p3394_p4)
}
  0x2e   :  { %s3398_s16 = scalar_lea.vmem %s57_s26, 2048  ;;  %p3403_p6 = scmp.lt.s32.totalorder %s57_s26, %s57_s26 }
  0x2f   :  { %p3399_p5 = scmp.ne.s32.totalorder %s57_s26, %s3398_s16  ;;  %p3404_p7 = scmp.lt.s32.totalorder %s3398_s16, %s3398_s16 }
  0x31   :  { %p3405_p8 = por %p3404_p7, %p3403_p6 }
  0x33   :  { %p3406_p9 = pnand %p3405_p8, %p3399_p5 }
  0x35   :  { %3409 = shalt.err (!%p3406_p9)
}
  0x36   :  { %62 = dma.hbm_to_vmem [thread:$0]  %s4319_s4, 2048, %s57_s26, [#allocation10], %s3464_s30, %s3464_s30, %s3465_s12  }
  0x37   :  { %3454 = dma.done.wait [#allocation7], 2048  }
  0x38   :  { %3455 = vsyncadd [#allocation7], 4294965248 }
  0x39   :  { %3456 = dma.done.wait [#allocation10], 4096  }
  0x3a   :  { %3457 = vsyncadd [#allocation10], 4294963200  ;;  %v3467_v1 = vmov 0.0   ;;  %v2769_v2 = vld [vmem:[%s4320_s5 + $0x2] sm:$0x3]  ;;  %v113_v3 = vld [vmem:[%s4316_s1 + $0x8] sm:$0xff]  ;;  %v80_v39 = vlaneseq }
  0x3b   :  { %187 = vmatprep.mubr.f32.mxu0 %v3467_v1  ;;  %390 = vmatprep.mubr.f32.mxu1 %v3467_v1  ;;  %v115_v4 = vld [vmem:[%s4316_s1 + $0x18] sm:$0xff]  ;;  %s3468_s4 = smov 32   ;;  %v112_v6 = vld [vmem:[%s4316_s1] sm:$0xff]  ;;  %v114_v7 = vld [vmem:[%s4316_s1 + $0x10] sm:$0xff]  ;;  %vm116_vm0 = vcmask 130048   ;;  %vm286_vm1 = vcmask 261120  }
  0x3c   :  { %283 = vrot.lane.b32.xlu0 %v2769_v2, %s3468_s4  ;;  %v2863_v5 = vpack.c.bf16 %v115_v4, %v113_v3  ;;  %v2865_v8 = vpack.c.bf16 %v114_v7, %v112_v6  ;;  %v110_v9 = vld [vmem:[%s4315_s0] sm:$0xff]  ;;  %v264_v10 = vld [vmem:[#allocation9 + $0x8] sm:$0xff]  ;;  %v265_v14 = vld [vmem:[#allocation9 + $0x10] sm:$0xff]  ;;  %vm322_vm2 = vcmask 523264   ;;  %v3469_v40 = vmov 1983009808  }
  0x3d   :  { %v266_v11 = vld [vmem:[#allocation9 + $0x18] sm:$0xff]  ;;  %v263_v13 = vld [vmem:[#allocation9] sm:$0xff]  ;;  %v268_v15 = vld [vmem:[#allocation9 + $0x28] sm:$0xff]  ;;  %v204_v41 = vunpack.c.l.s4 %v3469_v40  ;;  %v207_v43 = vshrl.u32 %v80_v39, 7  ;;  %v3674_v57 = vand.u32 127, %v80_v39  ;;  %s3470_s15 = smov 64  }
  0x3e   :  { %2864 = vmatprep.subr.bf16.mxu0 %v2863_v5  ;;  %v3611_v12 = vpack.c.bf16 %v266_v11, %v264_v10  ;;  %v3613_v16 = vpack.c.bf16 %v265_v14, %v263_v13  ;;  %v270_v17 = vld [vmem:[#allocation9 + $0x38] sm:$0xff]  ;;  %v267_v18 = vld [vmem:[#allocation9 + $0x20] sm:$0xff]  ;;  %v269_v19 = vld [vmem:[#allocation9 + $0x30] sm:$0xff]  ;;  %vm433_vm5 = vcmask 517120   ;;  %vm1373_vm7 = vcmask 254976   ;;  %s3472_s30 = smov [#allocation12]  }
  0x3f   :  { %2866 = vmatpush1.bf16.msra.mxu0 %v2865_v8  ;;  %v3616_v20 = vpack.c.bf16 %v270_v17, %v268_v15  ;;  %v272_v21 = vld [vmem:[#allocation9 + $0x48] sm:$0xff]  ;;  %v274_v22 = vld [vmem:[#allocation9 + $0x58] sm:$0xff]  ;;  %v3620_v23 = vpack.c.bf16 %v269_v19, %v267_v18  ;;  %v271_v26 = vld [vmem:[#allocation9 + $0x40] sm:$0xff]  ;;  %v205_v42 = vunpack.c.0.s8 %v204_v41  ;;  %v82_v62 = vadd.s32 128, %v3674_v57  ;;  %s2732_s12 = sshll.u32 %s3472_s30, 4  ;;  %s2733_s12 = int_to_ptr.vmem [resolvable:$true] %s2732_s12 }
  0x40   :  { %2868 = vmatprep.subr.bf16.mxu1 %v3611_v12  ;;  %2884 = vmatprep.subr.bf16.mxu0 %v3611_v12  ;;  %v111_v24 = vld [vmem:[%s4315_s0 + $0x8] sm:$0xff]  ;;  %v3627_v25 = vpack.c.bf16 %v274_v22, %v272_v21  ;;  %v273_v27 = vld [vmem:[#allocation9 + $0x50] sm:$0xff]  ;;  %v278_v29 = vld [vmem:[#allocation9 + $0x78] sm:$0xff]  ;;  %vm109_vm6 = vcmp.lt.s32.totalorder %v3674_v57, 32  ;;  %p3415_p11 = scmp.lt.s32.totalorder %s2733_s12, %s2733_s12 }
  0x41   :  { %2870 = vmatpush1.bf16.msra.mxu1 %v3613_v16  ;;  %v276_v28 = vld [vmem:[#allocation9 + $0x68] sm:$0xff]  ;;  %v2770_v30 = vld [vmem:[%s4321_s6 + $0x2] sm:$0x3]  ;;  %v3637_v31 = vpack.c.bf16 %v273_v27, %v271_v26  ;;  %v277_v34 = vld [vmem:[#allocation9 + $0x70] sm:$0xff]  ;;  %v3670_v47 = vsub.s32 %v205_v42, %v207_v43  ;;  %v94_v2 = vand.u32 63, %v82_v62 }
  0x42   :  { %2763 = vmatmul.mubr.msk.f32.vlgmr.msra.gmra.mrb[0].mxu0 %vm116_vm0, %v110_v9  ;;  %2872 = vmatprep.subr.bf16.mxu1 %v3616_v20  ;;  %v3641_v32 = vpack.c.bf16 %v278_v29, %v276_v28  ;;  %v275_v33 = vld [vmem:[#allocation9 + $0x60] sm:$0xff] }
  0x43   :  { %193 = vmatprep.mubr.f32.mxu0 %v3467_v1  ;;  %2886 = vmatpush1.bf16.msra.mxu0 %v3613_v16  ;;  %v3647_v35 = vpack.c.bf16 %v277_v34, %v275_v33  ;;  %v279_v36 = vld [vmem:[%s4320_s5] sm:$0x3]  ;;  %vm3707_vm3 = vcmp.ge.s32.totalorder %v94_v2, 32 }
  0x44   :  { %292 = vrot.lane.b32.xlu0 %v2770_v30, %s3468_s4  ;;  %2888 = vmatprep.subr.bf16.mxu0 %v3616_v20  ;;  %v288_v34 = vld [vmem:[%s4321_s6] sm:$0x3] }
  0x45   :  { %2874 = vmatpush1.bf16.msra.mxu1 %v3620_v23 }
  0x46   :  { %2764 = vmatmul.mubr.msk.f32.gmra.mrb[2].mxu0 %vm116_vm0, %v111_v24  ;;  %2876 = vmatprep.subr.bf16.mxu1 %v3627_v25 }
  0x47   :  { %2890 = vmatpush1.bf16.msra.mxu0 %v3620_v23  ;;  %528 = vmatprep.mubr.f32.mxu0 %v3467_v1 }
  0x48   :  { %2892 = vmatprep.subr.bf16.mxu0 %v3627_v25 }
  0x49   :  { %2878 = vmatpush1.bf16.msra.mxu1 %v3637_v31 }
  0x4a   :  { %2880 = vmatprep.subr.bf16.mxu1 %v3641_v32 }
  0x4b   :  { %2894 = vmatpush1.bf16.msra.mxu0 %v3637_v31 }
  0x4c   :  { %2896 = vmatprep.subr.bf16.mxu0 %v3641_v32 }
  0x4d   :  { %2882 = vmatpush1.bf16.msra.mxu1 %v3647_v35 }
  0x4e   :  { %2900 = vmatprep.subr.bf16.mxu1 %v3611_v12 }
  0x4f   :  { %2898 = vmatpush1.bf16.msra.mxu0 %v3647_v35 }
  0x50   :  { %2916 = vmatprep.subr.bf16.mxu0 %v3611_v12 }
  0xae   :  { %v284_v37 = vpop.permute.xlu0 %283 }
  0xaf   :  { %v287_v38 = vsel %vm286_vm1, %v279_v36, %v284_v37 }
  0xb0   :  { %2773 = vmatmul.mubr.msk.f32.vlgmr.msra.gmra.mrb[0].mxu1 %vm322_vm2, %v287_v38  ;;  %v87_v38 = vand.u32 63, %v3674_v57 }
  0xb1   :  { %2902 = vmatpush1.bf16.msra.mxu1 %v3613_v16  ;;  %662 = vmatprep.mubr.f32.mxu1 %v3467_v1 }
  0xb2   :  { %2904 = vmatprep.subr.bf16.mxu1 %v3616_v20  ;;  %vm3758_vm4 = vcmp.ge.s32.totalorder %v87_v38, 32 }
  0xb5   :  { %2906 = vmatpush1.bf16.msra.mxu1 %v3620_v23 }
  0xb6   :  { %2908 = vmatprep.subr.bf16.mxu1 %v3627_v25  ;;  %v293_v33 = vpop.permute.xlu0 %292 }
  0xb7   :  { %v295_v37 = vsel %vm286_vm1, %v288_v34, %v293_v33 }
  0xb9   :  { %2910 = vmatpush1.bf16.msra.mxu1 %v3637_v31 }
  0xba   :  { %2912 = vmatprep.subr.bf16.mxu1 %v3641_v32 }
  0xbd   :  { %2914 = vmatpush1.bf16.msra.mxu1 %v3647_v35 }
  0xbe   :  { %2932 = vmatprep.subr.bf16.mxu1 %v3611_v12 }
 0x115   :  { %v189_v44 = vpop.f32.mrb[0].mxu0 }
 0x116   :  { %v191_v45 = vpop.f32.mrb[1].mxu0 }
 0x117   :  { %v202_v46 = vcombine.low %v189_v44, %v191_v45  ;;  %v216_v48 = vcombine.high %v189_v44, %v191_v45 }
 0x119   :  { %v209_v49 = vrot.slane %v202_v46, %v3670_v47  ;;  %2765 = vst.sshfl [vmem:[#allocation2] sm:$0x33 pattern:$0x76325410] %v202_v46  ;;  %v223_v50 = vrot.slane %v216_v48, %v3670_v47  ;;  %v195_v51 = vpop.f32.mrb[2].mxu0 }
 0x11a   :  { %2766 = vst.sshfl [vmem:[#allocation2 + $0x8] sm:$0x33 pattern:$0x76325410] %v216_v48  ;;  %v197_v52 = vpop.f32.mrb[3].mxu0 }
 0x11b   :  { %v212_v53 = vcombine.high %v209_v49, %v209_v49  ;;  %v227_v54 = vcombine.high %v223_v50, %v223_v50  ;;  %v233_v55 = vcombine.low %v195_v51, %v197_v52  ;;  %v248_v56 = vcombine.high %v195_v51, %v197_v52 }
 0x11d   :  { %215 = vst [vmem:[#allocation2 + $0x4] sm:$0xf] %v212_v53  ;;  %230 = vst [vmem:[#allocation2 + $0xc] sm:$0xf] %v227_v54  ;;  %v240_v58 = vrot.slane %v233_v55, %v3670_v47  ;;  %v255_v59 = vrot.slane %v248_v56, %v3670_v47 }
 0x11e   :  { %2767 = vst.sshfl [vmem:[#allocation2 + $0x10] sm:$0x33 pattern:$0x76325410] %v233_v55 }
 0x11f   :  { %2768 = vst.sshfl [vmem:[#allocation2 + $0x18] sm:$0x33 pattern:$0x76325410] %v248_v56  ;;  %v244_v60 = vcombine.high %v240_v58, %v240_v58  ;;  %v259_v61 = vcombine.high %v255_v59, %v255_v59 }
 0x120   :  { %v3679_v63 = vld.sshfl [vmem:[#allocation2] sm:$0x33 pattern:$0x76325410] }
 0x121   :  { %247 = vst [vmem:[#allocation2 + $0x14] sm:$0xf] %v244_v60  ;;  %262 = vst [vmem:[#allocation2 + $0x1c] sm:$0xf] %v259_v61  ;;  %v3699_v8 = vcombine.high %v3679_v63, %v3679_v63 }
 0x122   :  { %v3681_v0 = vld.sshfl [vmem:[#allocation2 + $0x8] sm:$0x33 pattern:$0x76325410] }
 0x123   :  { %v3715_v14 = vcombine.high %v3681_v0, %v3681_v0 }
 0x124   :  { %v3685_v4 = vld.sshfl [vmem:[#allocation2 + $0x4] sm:$0x33 pattern:$0x76325410] }
 0x125   :  { %v3693_v6 = vcombine.high %v3685_v4, %v3685_v4  ;;  %v3695_v7 = vld.sshfl [vmem:[#allocation2 + $0x10] sm:$0x33 pattern:$0x76325410] }
 0x126   :  { %v3683_v3 = vld.sshfl [vmem:[#allocation2 + $0x18] sm:$0x33 pattern:$0x76325410]  ;;  %v3705_v10 = vcombine.high %v3695_v7, %v3695_v7 }
 0x127   :  { %v3689_v5 = vcombine.high %v3683_v3, %v3683_v3  ;;  %v3701_v9 = vld.sshfl [vmem:[#allocation2 + $0xc] sm:$0x33 pattern:$0x76325410] }
 0x128   :  { %v3711_v13 = vld.sshfl [vmem:[#allocation2 + $0x1c] sm:$0x33 pattern:$0x76325410]  ;;  %v3719_v15 = vcombine.high %v3701_v9, %v3701_v9 }
 0x129   :  { %v3723_v17 = vcombine.high %v3711_v13, %v3711_v13  ;;  %v3725_v18 = vld.sshfl [vmem:[#allocation2 + $0x14] sm:$0x33 pattern:$0x76325410]  ;;  %v1130_v19 = vsel %vm3707_vm3, %v3693_v6, %v3689_v5  ;;  %v320_v40 = vsel %vm3758_vm4, %v3711_v13, %v3679_v63  ;;  %v460_v62 = vsel %vm3707_vm3, %v3689_v5, %v3693_v6 }
 0x12a   :  { %v3733_v21 = vcombine.high %v3725_v18, %v3725_v18  ;;  %v862_v22 = vsel %vm3707_vm3, %v3719_v15, %v3705_v10 }
 0x12b   :  { %v1264_v24 = vsel %vm3707_vm3, %v3699_v8, %v3723_v17  ;;  %v321_v28 = vsel %vm3707_vm3, %v3723_v17, %v3699_v8 }
 0x12c   :  { %v996_v26 = vsel %vm3707_vm3, %v3715_v14, %v3733_v21 }
 0x183   :  { %v392_v27 = vpop.f32.mrb[0].mxu1 }
 0x184   :  { %v394_v29 = vpop.f32.mrb[1].mxu1  ;;  %v397_v41 = vadd.f32 %v392_v27, %v320_v40 }
 0x185   :  { %v398_v30 = vadd.f32 %v394_v29, %v321_v28  ;;  %v459_v29 = vsel %vm3758_vm4, %v3683_v3, %v3685_v4 }
 0x186   :  { %v2774_v42 = vmul.f32 -1.442695, %v397_v41 }
 0x187   :  { %3152 = vtanh.f32 %v398_v30  ;;  %v2775_v54 = vmul.f32 -1.442695, %v398_v30 }
 0x188   :  { %3154 = vpow2.f32 %v2774_v42 }
 0x191   :  { %v3153_v36 = vpop.eup %3152 }
 0x192   :  { %418 = vrot.lane.b32.xlu1 %v3153_v36, %s3470_s15  ;;  %v3155_v43 = vpop.eup %3154 }
 0x193   :  { %v405_v44 = vadd.f32 1.0, %v3155_v43 }
 0x195   :  { %3156 = vrcp.f32 %v405_v44 }
 0x196   :  { %413 = vrot.lane.b32.xlu1 %v295_v37, %s3470_s15 }
 0x19f   :  { %v3157_v45 = vpop.eup %3156 }
 0x204   :  { %v419_v46 = vpop.permute.xlu1 %418 }
 0x205   :  { %v421_v48 = vmul.f32 %v3157_v45, %v419_v46 }
 0x207   :  { %423 = vrot.lane.b32.xlu0 %v421_v48, %s3470_s15 }
 0x208   :  { %v414_v49 = vpop.permute.xlu1 %413 }
 0x209   :  { %v416_v50 = vmul.f32 %v3157_v45, %v414_v49 }
 0x279   :  { %v424_v51 = vpop.permute.xlu0 %423 }
 0x27a   :  { %v426_v52 = vadd.f32 %v424_v51, %v416_v50 }
 0x27c   :  { %3158 = vtanh.f32 %v426_v52 }
 0x27d   :  { %3160 = vpow2.f32 %v2775_v54 }
 0x286   :  { %v3159_v53 = vpop.eup %3158 }
 0x287   :  { %429 = vrot.lane.b32.xlu1 %v3159_v53, %s3470_s15  ;;  %v3161_v55 = vpop.eup %3160  ;;  %v594_v53 = vsel %vm3707_vm3, %v3733_v21, %v3715_v14 }
 0x288   :  { %v406_v56 = vadd.f32 1.0, %v3161_v55 }
 0x28a   :  { %3162 = vrcp.f32 %v406_v56 }
 0x294   :  { %v3163_v58 = vpop.eup %3162 }
 0x2f9   :  { %v430_v59 = vpop.permute.xlu1 %429 }
 0x2fa   :  { %v432_v60 = vmul.f32 %v3163_v58, %v430_v59  ;;  %v593_v58 = vsel %vm3758_vm4, %v3725_v18, %v3681_v0 }
 0x2fc   :  { %434 = vst.msk [vmem:[#allocation3] sm:$0x3] %vm433_vm5, %v432_v60  ;;  %2778 = vmatmul.mubr.msk.f32.vlgmr.msra.gmra.mrb[4].mxu0 %vm322_vm2, %v432_v60 }
 0x2fd   :  { %2918 = vmatpush1.bf16.msra.mxu0 %v3613_v16  ;;  %796 = vmatprep.mubr.f32.mxu0 %v3467_v1 }
 0x2fe   :  { %2920 = vmatprep.subr.bf16.mxu0 %v3616_v20 }
 0x301   :  { %2922 = vmatpush1.bf16.msra.mxu0 %v3620_v23 }
 0x302   :  { %2924 = vmatprep.subr.bf16.mxu0 %v3627_v25 }
 0x305   :  { %2926 = vmatpush1.bf16.msra.mxu0 %v3637_v31 }
 0x306   :  { %2928 = vmatprep.subr.bf16.mxu0 %v3641_v32 }
 0x309   :  { %2930 = vmatpush1.bf16.msra.mxu0 %v3647_v35 }
 0x30a   :  { %2948 = vmatprep.subr.bf16.mxu0 %v3611_v12 }
 0x3cf   :  { %v530_v61 = vpop.f32.mrb[4].mxu0 }
 0x3d0   :  { %v532_v2 = vpop.f32.mrb[5].mxu0  ;;  %v535_v30 = vadd.f32 %v530_v61, %v459_v29 }
 0x3d1   :  { %v536_v27 = vadd.f32 %v532_v2, %v460_v62 }
 0x3d2   :  { %v2779_v33 = vmul.f32 -1.442695, %v535_v30 }
 0x3d3   :  { %3164 = vtanh.f32 %v536_v27  ;;  %v2780_v45 = vmul.f32 -1.442695, %v536_v27 }
 0x3d4   :  { %3166 = vpow2.f32 %v2779_v33 }
 0x3dd   :  { %v3165_v28 = vpop.eup %3164 }
 0x3de   :  { %552 = vrot.lane.b32.xlu0 %v3165_v28, %s3470_s15  ;;  %v3167_v34 = vpop.eup %3166 }
 0x3df   :  { %v543_v36 = vadd.f32 1.0, %v3167_v34 }
 0x3e1   :  { %3168 = vrcp.f32 %v543_v36 }
 0x3eb   :  { %v3169_v37 = vpop.eup %3168 }
 0x3ec   :  { %v550_v41 = vmul.f32 %v3169_v37, %v426_v52 }
 0x450   :  { %v553_v38 = vpop.permute.xlu0 %552 }
 0x451   :  { %v555_v40 = vmul.f32 %v3169_v37, %v553_v38 }
 0x453   :  { %557 = vrot.lane.b32.xlu1 %v555_v40, %s3470_s15 }
 0x4c5   :  { %v558_v42 = vpop.permute.xlu1 %557 }
 0x4c6   :  { %v560_v43 = vadd.f32 %v558_v42, %v550_v41 }
 0x4c8   :  { %3170 = vtanh.f32 %v560_v43 }
 0x4c9   :  { %3172 = vpow2.f32 %v2780_v45 }
 0x4d2   :  { %v3171_v44 = vpop.eup %3170 }
 0x4d3   :  { %563 = vrot.lane.b32.xlu0 %v3171_v44, %s3470_s15  ;;  %v3173_v46 = vpop.eup %3172  ;;  %v728_v44 = vsel %vm3707_vm3, %v3705_v10, %v3719_v15 }
 0x4d4   :  { %v544_v48 = vadd.f32 1.0, %v3173_v46 }
 0x4d6   :  { %3174 = vrcp.f32 %v544_v48 }
 0x4e0   :  { %v3175_v49 = vpop.eup %3174 }
 0x545   :  { %v564_v50 = vpop.permute.xlu0 %563 }
 0x546   :  { %v566_v51 = vmul.f32 %v3175_v49, %v564_v50  ;;  %v727_v49 = vsel %vm3758_vm4, %v3695_v7, %v3701_v9 }
 0x548   :  { %568 = vst.msk [vmem:[#allocation3 + $0x2] sm:$0x3] %vm433_vm5, %v566_v51  ;;  %2783 = vmatmul.mubr.msk.f32.vlgmr.msra.gmra.mrb[2].mxu1 %vm322_vm2, %v566_v51 }
 0x549   :  { %2934 = vmatpush1.bf16.msra.mxu1 %v3613_v16  ;;  %930 = vmatprep.mubr.f32.mxu1 %v3467_v1 }
 0x54a   :  { %2936 = vmatprep.subr.bf16.mxu1 %v3616_v20 }
 0x54d   :  { %2938 = vmatpush1.bf16.msra.mxu1 %v3620_v23 }
 0x54e   :  { %2940 = vmatprep.subr.bf16.mxu1 %v3627_v25 }
 0x551   :  { %2942 = vmatpush1.bf16.msra.mxu1 %v3637_v31 }
 0x552   :  { %2944 = vmatprep.subr.bf16.mxu1 %v3641_v32 }
 0x555   :  { %2946 = vmatpush1.bf16.msra.mxu1 %v3647_v35 }
 0x556   :  { %2964 = vmatprep.subr.bf16.mxu1 %v3611_v12 }
 0x61b   :  { %v664_v52 = vpop.f32.mrb[2].mxu1 }
 0x61c   :  { %v666_v54 = vpop.f32.mrb[3].mxu1  ;;  %v669_v59 = vadd.f32 %v664_v52, %v593_v58 }
 0x61d   :  { %v670_v55 = vadd.f32 %v666_v54, %v594_v53 }
 0x61e   :  { %v2784_v60 = vmul.f32 -1.442695, %v669_v59 }
 0x61f   :  { %3176 = vtanh.f32 %v670_v55  ;;  %v2785_v36 = vmul.f32 -1.442695, %v670_v55 }
 0x620   :  { %3178 = vpow2.f32 %v2784_v60 }
 0x629   :  { %v3177_v56 = vpop.eup %3176 }
 0x62a   :  { %686 = vrot.lane.b32.xlu1 %v3177_v56, %s3470_s15  ;;  %v3179_v61 = vpop.eup %3178 }
 0x62b   :  { %v677_v62 = vadd.f32 1.0, %v3179_v61 }
 0x62d   :  { %3180 = vrcp.f32 %v677_v62 }
 0x637   :  { %v3181_v2 = vpop.eup %3180 }
 0x638   :  { %v684_v29 = vmul.f32 %v3181_v2, %v560_v43 }
 0x69c   :  { %v687_v27 = vpop.permute.xlu1 %686 }
 0x69d   :  { %v689_v28 = vmul.f32 %v3181_v2, %v687_v27 }
 0x69f   :  { %691 = vrot.lane.b32.xlu0 %v689_v28, %s3470_s15 }
 0x711   :  { %v692_v30 = vpop.permute.xlu0 %691 }
 0x712   :  { %v694_v33 = vadd.f32 %v692_v30, %v684_v29 }
 0x714   :  { %3182 = vtanh.f32 %v694_v33 }
 0x715   :  { %3184 = vpow2.f32 %v2785_v36 }
 0x71e   :  { %v3183_v34 = vpop.eup %3182 }
 0x71f   :  { %697 = vrot.lane.b32.xlu1 %v3183_v34, %s3470_s15  ;;  %v3185_v37 = vpop.eup %3184 }
 0x720   :  { %v678_v38 = vadd.f32 1.0, %v3185_v37  ;;  %v861_v37 = vsel %vm3758_vm4, %v3701_v9, %v3695_v7 }
 0x722   :  { %3186 = vrcp.f32 %v678_v38 }
 0x72c   :  { %v3187_v40 = vpop.eup %3186 }
 0x791   :  { %v698_v41 = vpop.permute.xlu1 %697 }
 0x792   :  { %v700_v42 = vmul.f32 %v3187_v40, %v698_v41 }
 0x794   :  { %702 = vst.msk [vmem:[#allocation3 + $0x4] sm:$0x3] %vm433_vm5, %v700_v42  ;;  %2788 = vmatmul.mubr.msk.f32.vlgmr.msra.gmra.mrb[6].mxu0 %vm322_vm2, %v700_v42 }
 0x795   :  { %2950 = vmatpush1.bf16.msra.mxu0 %v3613_v16  ;;  %1064 = vmatprep.mubr.f32.mxu0 %v3467_v1 }
 0x796   :  { %2952 = vmatprep.subr.bf16.mxu0 %v3616_v20 }
 0x799   :  { %2954 = vmatpush1.bf16.msra.mxu0 %v3620_v23 }
 0x79a   :  { %2956 = vmatprep.subr.bf16.mxu0 %v3627_v25 }
 0x79d   :  { %2958 = vmatpush1.bf16.msra.mxu0 %v3637_v31 }
 0x79e   :  { %2960 = vmatprep.subr.bf16.mxu0 %v3641_v32 }
 0x7a1   :  { %2962 = vmatpush1.bf16.msra.mxu0 %v3647_v35 }
 0x7a2   :  { %2980 = vmatprep.subr.bf16.mxu0 %v3611_v12 }
 0x867   :  { %v798_v43 = vpop.f32.mrb[6].mxu0 }
 0x868   :  { %v800_v45 = vpop.f32.mrb[7].mxu0  ;;  %v803_v50 = vadd.f32 %v798_v43, %v727_v49 }
 0x869   :  { %v804_v46 = vadd.f32 %v800_v45, %v728_v44 }
 0x86a   :  { %v2789_v51 = vmul.f32 -1.442695, %v803_v50 }
 0x86b   :  { %3188 = vtanh.f32 %v804_v46  ;;  %v2790_v61 = vmul.f32 -1.442695, %v804_v46 }
 0x86c   :  { %3190 = vpow2.f32 %v2789_v51 }
 0x875   :  { %v3189_v48 = vpop.eup %3188 }
 0x876   :  { %820 = vrot.lane.b32.xlu0 %v3189_v48, %s3470_s15  ;;  %v3191_v12 = vpop.eup %3190 }
 0x877   :  { %v811_v52 = vadd.f32 1.0, %v3191_v12 }
 0x879   :  { %3192 = vrcp.f32 %v811_v52 }
 0x883   :  { %v3193_v53 = vpop.eup %3192 }
 0x884   :  { %v818_v56 = vmul.f32 %v3193_v53, %v694_v33 }
 0x8e8   :  { %v821_v54 = vpop.permute.xlu0 %820 }
 0x8e9   :  { %v823_v55 = vmul.f32 %v3193_v53, %v821_v54 }
 0x8eb   :  { %825 = vrot.lane.b32.xlu1 %v823_v55, %s3470_s15 }
 0x95d   :  { %v826_v58 = vpop.permute.xlu1 %825 }
 0x95e   :  { %v828_v59 = vadd.f32 %v826_v58, %v818_v56 }
 0x960   :  { %3194 = vtanh.f32 %v828_v59 }
 0x961   :  { %3196 = vpow2.f32 %v2790_v61 }
 0x96a   :  { %v3195_v60 = vpop.eup %3194 }
 0x96b   :  { %831 = vrot.lane.b32.xlu0 %v3195_v60, %s3470_s15  ;;  %v3197_v62 = vpop.eup %3196 }
 0x96c   :  { %v812_v2 = vadd.f32 1.0, %v3197_v62 }
 0x96e   :  { %3198 = vrcp.f32 %v812_v2 }
 0x978   :  { %v3199_v27 = vpop.eup %3198 }
 0x9dd   :  { %v832_v28 = vpop.permute.xlu0 %831 }
 0x9de   :  { %v834_v29 = vmul.f32 %v3199_v27, %v832_v28 }
 0x9e0   :  { %836 = vst.msk [vmem:[#allocation3 + $0x6] sm:$0x3] %vm433_vm5, %v834_v29  ;;  %2793 = vmatmul.mubr.msk.f32.vlgmr.msra.gmra.mrb[4].mxu1 %vm322_vm2, %v834_v29 }
 0x9e1   :  { %2966 = vmatpush1.bf16.msra.mxu1 %v3613_v16  ;;  %1198 = vmatprep.mubr.f32.mxu1 %v3467_v1 }
 0x9e2   :  { %2968 = vmatprep.subr.bf16.mxu1 %v3616_v20 }
 0x9e5   :  { %2970 = vmatpush1.bf16.msra.mxu1 %v3620_v23 }
 0x9e6   :  { %2972 = vmatprep.subr.bf16.mxu1 %v3627_v25 }
 0x9e7   :  { %v1403_v12 = vld [vmem:[#allocation3 + $0x6] sm:$0x3] }
 0x9e8   :  { %v1408_v52 = vld [vmem:[#allocation3 + $0x6] sm:$0x3] }
 0x9e9   :  { %2974 = vmatpush1.bf16.msra.mxu1 %v3637_v31 }
 0x9ea   :  { %2976 = vmatprep.subr.bf16.mxu1 %v3641_v32 }
 0x9ed   :  { %2978 = vmatpush1.bf16.msra.mxu1 %v3647_v35 }
 0xab3   :  { %v932_v30 = vpop.f32.mrb[4].mxu1 }
 0xab4   :  { %v934_v33 = vpop.f32.mrb[5].mxu1  ;;  %v937_v38 = vadd.f32 %v932_v30, %v861_v37 }
 0xab5   :  { %v938_v34 = vadd.f32 %v934_v33, %v862_v22  ;;  %v1399_v33 = vld [vmem:[#allocation3 + $0x4] sm:$0x3] }
 0xab6   :  { %v2794_v40 = vmul.f32 -1.442695, %v937_v38 }
 0xab7   :  { %3200 = vtanh.f32 %v938_v34  ;;  %v2795_v48 = vmul.f32 -1.442695, %v938_v34  ;;  %v1412_v34 = vld [vmem:[#allocation3 + $0x4] sm:$0x3] }
 0xab8   :  { %3202 = vpow2.f32 %v2794_v40 }
 0xac1   :  { %v3201_v36 = vpop.eup %3200 }
 0xac2   :  { %954 = vrot.lane.b32.xlu1 %v3201_v36, %s3470_s15  ;;  %v3203_v41 = vpop.eup %3202 }
 0xac3   :  { %v945_v42 = vadd.f32 1.0, %v3203_v41 }
 0xac5   :  { %3204 = vrcp.f32 %v945_v42 }
 0xacf   :  { %v3205_v43 = vpop.eup %3204 }
 0xad0   :  { %v952_v10 = vmul.f32 %v3205_v43, %v828_v59 }
 0xb34   :  { %v955_v44 = vpop.permute.xlu1 %954 }
 0xb35   :  { %v957_v45 = vmul.f32 %v3205_v43, %v955_v44 }
 0xb37   :  { %959 = vrot.lane.b32.xlu0 %v957_v45, %s3470_s15  ;;  %v1129_v45 = vsel %vm3758_vm4, %v3685_v4, %v3683_v3 }
 0xba9   :  { %v960_v15 = vpop.permute.xlu0 %959 }
 0xbaa   :  { %v962_v22 = vadd.f32 %v960_v15, %v952_v10 }
 0xbac   :  { %3206 = vtanh.f32 %v962_v22 }
 0xbad   :  { %3208 = vpow2.f32 %v2795_v48 }
 0xbb6   :  { %v3207_v46 = vpop.eup %3206 }
 0xbb7   :  { %965 = vrot.lane.b32.xlu1 %v3207_v46, %s3470_s15  ;;  %v3209_v7 = vpop.eup %3208 }
 0xbb8   :  { %v946_v9 = vadd.f32 1.0, %v3209_v7 }
 0xbba   :  { %3210 = vrcp.f32 %v946_v9 }
 0xbc4   :  { %v3211_v49 = vpop.eup %3210 }
 0xc29   :  { %v966_v50 = vpop.permute.xlu1 %965 }
 0xc2a   :  { %v968_v51 = vmul.f32 %v3211_v49, %v966_v50 }
 0xc2c   :  { %970 = vst.msk [vmem:[#allocation3 + $0x8] sm:$0x3] %vm433_vm5, %v968_v51  ;;  %2798 = vmatmul.mubr.msk.f32.vlgmr.msra.gmra.mrb[8].mxu0 %vm322_vm2, %v968_v51 }
 0xc2d   :  { %2982 = vmatpush1.bf16.msra.mxu0 %v3613_v16  ;;  %1332 = vmatprep.mubr.f32.mxu0 %v3467_v1 }
 0xc2e   :  { %2984 = vmatprep.subr.bf16.mxu0 %v3616_v20 }
 0xc31   :  { %2986 = vmatpush1.bf16.msra.mxu0 %v3620_v23 }
 0xc32   :  { %2988 = vmatprep.subr.bf16.mxu0 %v3627_v25 }
 0xc33   :  { %v1404_v53 = vld [vmem:[#allocation3 + $0x8] sm:$0x3] }
 0xc34   :  { %v1407_v54 = vld [vmem:[#allocation3 + $0x8] sm:$0x3]  ;;  %v1405_v55 = vsel %vm109_vm6, %v1403_v12, %v1404_v53  ;;  %v1395_v53 = vld [vmem:[#allocation3 + $0x2] sm:$0x3] }
 0xc35   :  { %v1409_v16 = vsel %vm109_vm6, %v1407_v54, %v1408_v52  ;;  %1406 = vst.msk [vmem:[#allocation4 + $0x6] sm:$0x3] %vm433_vm5, %v1405_v55  ;;  %2990 = vmatpush1.bf16.msra.mxu0 %v3637_v31  ;;  %v995_v31 = vsel %vm3758_vm4, %v3681_v0, %v3725_v18  ;;  %v1416_v54 = vld [vmem:[#allocation3 + $0x2] sm:$0x3] }
 0xc36   :  { %1410 = vst.msk [vmem:[#allocation4 + $0x8] sm:$0x3] %vm433_vm5, %v1409_v16  ;;  %2992 = vmatprep.subr.bf16.mxu0 %v3641_v32 }
 0xc39   :  { %2994 = vmatpush1.bf16.msra.mxu0 %v3647_v35 }
 0xcff   :  { %v1066_v20 = vpop.f32.mrb[8].mxu0 }
 0xd00   :  { %v1068_v23 = vpop.f32.mrb[9].mxu0  ;;  %v1071_v32 = vadd.f32 %v1066_v20, %v995_v31 }
 0xd01   :  { %v1072_v25 = vadd.f32 %v1068_v23, %v996_v26 }
 0xd02   :  { %v2799_v58 = vmul.f32 -1.442695, %v1071_v32 }
 0xd03   :  { %3212 = vtanh.f32 %v1072_v25  ;;  %v2800_v27 = vmul.f32 -1.442695, %v1072_v25 }
 0xd04   :  { %3214 = vpow2.f32 %v2799_v58  ;;  %v1263_v58 = vsel %vm3758_vm4, %v3679_v63, %v3711_v13  ;;  %v1426_v13 = vld [vmem:[#allocation6 + $0x8] sm:$0xff] }
 0xd0d   :  { %v3213_v56 = vpop.eup %3212 }
 0xd0e   :  { %1088 = vrot.lane.b32.xlu0 %v3213_v56, %s3470_s15  ;;  %v3215_v35 = vpop.eup %3214 }
 0xd0f   :  { %v1079_v59 = vadd.f32 1.0, %v3215_v35 }
 0xd11   :  { %3216 = vrcp.f32 %v1079_v59 }
 0xd1b   :  { %v3217_v60 = vpop.eup %3216 }
 0xd1c   :  { %v1086_v14 = vmul.f32 %v3217_v60, %v962_v22 }
 0xd80   :  { %v1089_v61 = vpop.permute.xlu0 %1088 }
 0xd81   :  { %v1091_v62 = vmul.f32 %v3217_v60, %v1089_v61 }
 0xd83   :  { %1093 = vrot.lane.b32.xlu1 %v1091_v62, %s3470_s15 }
 0xdf5   :  { %v1094_v21 = vpop.permute.xlu1 %1093 }
 0xdf6   :  { %v1096_v26 = vadd.f32 %v1094_v21, %v1086_v14 }
 0xdf8   :  { %3218 = vtanh.f32 %v1096_v26 }
 0xdf9   :  { %3220 = vpow2.f32 %v2800_v27  ;;  %v1425_v27 = vld [vmem:[#allocation6] sm:$0xff] }
 0xe02   :  { %v3219_v2 = vpop.eup %3218 }
 0xe03   :  { %1099 = vrot.lane.b32.xlu0 %v3219_v2, %s3470_s15  ;;  %v3221_v0 = vpop.eup %3220 }
 0xe04   :  { %v1080_v18 = vadd.f32 1.0, %v3221_v0  ;;  %v1427_v0 = vld [vmem:[#allocation6 + $0x10] sm:$0xff] }
 0xe06   :  { %3222 = vrcp.f32 %v1080_v18  ;;  %v2997_v18 = vpack.c.bf16 %v1427_v0, %v1425_v27  ;;  %v1420_v27 = vld [vmem:[#allocation3] sm:$0x3] }
 0xe10   :  { %v3223_v28 = vpop.eup %3222 }
 0xe75   :  { %v1100_v29 = vpop.permute.xlu0 %1099 }
 0xe76   :  { %v1102_v30 = vmul.f32 %v3223_v28, %v1100_v29  ;;  %v1430_v28 = vld [vmem:[#allocation6 + $0x28] sm:$0xff]  ;;  %v1432_v29 = vld [vmem:[#allocation6 + $0x38] sm:$0xff] }
 0xe78   :  { %1104 = vst.msk [vmem:[#allocation3 + $0xa] sm:$0x3] %vm433_vm5, %v1102_v30  ;;  %2803 = vmatmul.mubr.msk.f32.vlgmr.msra.gmra.mrb[6].mxu1 %vm322_vm2, %v1102_v30  ;;  %v2999_v30 = vpack.c.bf16 %v1432_v29, %v1430_v28  ;;  %v2819_v29 = vld [vmem:[%s4321_s6 + $0x4] sm:$0x3] }
 0xe79   :  { %1511 = vmatprep.mubr.f32.mxu1 %v3467_v1 }
 0xe7f   :  { %v1400_v36 = vld [vmem:[#allocation3 + $0xa] sm:$0x3] }
 0xe80   :  { %v1411_v37 = vld [vmem:[#allocation3 + $0xa] sm:$0x3]  ;;  %v1401_v38 = vsel %vm109_vm6, %v1399_v33, %v1400_v36  ;;  %v1429_v33 = vld [vmem:[#allocation6 + $0x20] sm:$0xff] }
 0xe81   :  { %v1413_v40 = vsel %vm109_vm6, %v1411_v37, %v1412_v34  ;;  %1402 = vst.msk [vmem:[#allocation4 + $0x4] sm:$0x3] %vm433_vm5, %v1401_v38  ;;  %v1431_v34 = vld [vmem:[#allocation6 + $0x30] sm:$0xff]  ;;  %v1434_v37 = vld [vmem:[#allocation6 + $0x48] sm:$0xff]  ;;  %v1436_v38 = vld [vmem:[#allocation6 + $0x58] sm:$0xff] }
 0xe82   :  { %1414 = vst.msk [vmem:[#allocation4 + $0xa] sm:$0x3] %vm433_vm5, %v1413_v40  ;;  %v3001_v36 = vpack.c.bf16 %v1431_v34, %v1429_v33  ;;  %v3003_v40 = vpack.c.bf16 %v1436_v38, %v1434_v37 }
 0xf4b   :  { %v1200_v41 = vpop.f32.mrb[6].mxu1 }
 0xf4c   :  { %v1202_v42 = vpop.f32.mrb[7].mxu1  ;;  %v1205_v10 = vadd.f32 %v1200_v41, %v1129_v45  ;;  %v1433_v41 = vld [vmem:[#allocation6 + $0x40] sm:$0xff]  ;;  %v1440_v45 = vld [vmem:[#allocation6 + $0x78] sm:$0xff] }
 0xf4d   :  { %v1206_v43 = vadd.f32 %v1202_v42, %v1130_v19  ;;  %v1435_v42 = vld [vmem:[#allocation6 + $0x50] sm:$0xff] }
 0xf4e   :  { %v2804_v15 = vmul.f32 -1.442695, %v1205_v10  ;;  %v1437_v10 = vld [vmem:[#allocation6 + $0x60] sm:$0xff] }
 0xf4f   :  { %3224 = vtanh.f32 %v1206_v43  ;;  %v2805_v50 = vmul.f32 -1.442695, %v1206_v43  ;;  %v3005_v43 = vpack.c.bf16 %v1435_v42, %v1433_v41 }
 0xf50   :  { %3226 = vpow2.f32 %v2804_v15 }
 0xf59   :  { %v3225_v44 = vpop.eup %3224 }
 0xf5a   :  { %1222 = vrot.lane.b32.xlu1 %v3225_v44, %s3470_s15  ;;  %v3227_v22 = vpop.eup %3226  ;;  %v1438_v44 = vld [vmem:[#allocation6 + $0x68] sm:$0xff] }
 0xf5b   :  { %v1213_v46 = vadd.f32 1.0, %v3227_v22  ;;  %v3007_v22 = vpack.c.bf16 %v1440_v45, %v1438_v44 }
 0xf5d   :  { %3228 = vrcp.f32 %v1213_v46  ;;  %v1439_v46 = vld [vmem:[#allocation6 + $0x70] sm:$0xff] }
 0xf67   :  { %v3229_v48 = vpop.eup %3228 }
 0xf68   :  { %v1220_v5 = vmul.f32 %v3229_v48, %v1096_v26  ;;  %v1428_v26 = vld [vmem:[#allocation6 + $0x18] sm:$0xff] }
 0xf69   :  { %v2995_v2 = vpack.c.bf16 %v1428_v26, %v1426_v13 }
 0xf6b   :  { %2996 = vmatprep.subr.bf16.mxu1 %v2995_v2  ;;  %v1391_v2 = vld [vmem:[#allocation3] sm:$0x3] }
 0xf6c   :  { %2998 = vmatpush1.bf16.msra.mxu1 %v2997_v18 }
 0xf6d   :  { %3000 = vmatprep.subr.bf16.mxu1 %v2999_v30 }
 0xf70   :  { %3002 = vmatpush1.bf16.msra.mxu1 %v3001_v36 }
 0xf71   :  { %3004 = vmatprep.subr.bf16.mxu1 %v3003_v40 }
 0xf74   :  { %3006 = vmatpush1.bf16.msra.mxu1 %v3005_v43 }
 0xf75   :  { %3008 = vmatprep.subr.bf16.mxu1 %v3007_v22 }
 0xfcc   :  { %v1223_v7 = vpop.permute.xlu1 %1222 }
 0xfcd   :  { %v1225_v9 = vmul.f32 %v3229_v48, %v1223_v7  ;;  %v3009_v48 = vpack.c.bf16 %v1439_v46, %v1437_v10  ;;  %v1581_v7 = vld [vmem:[#allocation11 + $0x8] sm:$0xff] }
 0xfcf   :  { %1227 = vrot.lane.b32.xlu0 %v1225_v9, %s3470_s15  ;;  %3010 = vmatpush1.bf16.msra.mxu1 %v3009_v48  ;;  %v1583_v9 = vld [vmem:[#allocation11 + $0x18] sm:$0xff] }
0x1041   :  { %v1228_v6 = vpop.permute.xlu0 %1227 }
0x1042   :  { %v1230_v19 = vadd.f32 %v1228_v6, %v1220_v5  ;;  %v3937_v5 = vpack.c.bf16 %v1583_v9, %v1581_v7  ;;  %v1580_v6 = vld [vmem:[#allocation11] sm:$0xff] }
0x1044   :  { %3230 = vtanh.f32 %v1230_v19  ;;  %3012 = vmatprep.subr.bf16.mxu0 %v3937_v5  ;;  %3028 = vmatprep.subr.bf16.mxu1 %v3937_v5 }
0x1045   :  { %3232 = vpow2.f32 %v2805_v50  ;;  %v1585_v50 = vld [vmem:[#allocation11 + $0x28] sm:$0xff] }
0x104e   :  { %v3231_v49 = vpop.eup %3230 }
0x104f   :  { %1233 = vrot.lane.b32.xlu1 %v3231_v49, %s3470_s15  ;;  %v3233_v3 = vpop.eup %3232 }
0x1050   :  { %v1214_v4 = vadd.f32 1.0, %v3233_v3  ;;  %v1587_v3 = vld [vmem:[#allocation11 + $0x38] sm:$0xff] }
0x1052   :  { %3234 = vrcp.f32 %v1214_v4  ;;  %v1584_v4 = vld [vmem:[#allocation11 + $0x20] sm:$0xff] }
0x105c   :  { %v3235_v51 = vpop.eup %3234 }
0x10c1   :  { %v1234_v12 = vpop.permute.xlu1 %1233 }
0x10c2   :  { %v1236_v52 = vmul.f32 %v3235_v51, %v1234_v12  ;;  %v3944_v51 = vpack.c.bf16 %v1587_v3, %v1585_v50  ;;  %v1586_v12 = vld [vmem:[#allocation11 + $0x30] sm:$0xff] }
0x10c4   :  { %1238 = vst.msk [vmem:[#allocation3 + $0xc] sm:$0x3] %vm433_vm5, %v1236_v52  ;;  %2808 = vmatmul.mubr.msk.f32.vlgmr.msra.gmra.mrb[10].mxu0 %vm322_vm2, %v1236_v52  ;;  %v1589_v52 = vld [vmem:[#allocation11 + $0x48] sm:$0xff] }
0x10c5   :  { %1707 = vmatprep.mubr.f32.mxu0 %v3467_v1 }
0x10cb   :  { %v1396_v55 = vld [vmem:[#allocation3 + $0xc] sm:$0x3] }
0x10cc   :  { %v1415_v16 = vld [vmem:[#allocation3 + $0xc] sm:$0x3]  ;;  %v1397_v20 = vsel %vm109_vm6, %v1395_v53, %v1396_v55  ;;  %v1591_v53 = vld [vmem:[#allocation11 + $0x58] sm:$0xff] }
0x10cd   :  { %v1417_v23 = vsel %vm109_vm6, %v1415_v16, %v1416_v54  ;;  %1398 = vst.msk [vmem:[#allocation4 + $0x2] sm:$0x3] %vm433_vm5, %v1397_v20  ;;  %v3946_v54 = vpack.c.bf16 %v1586_v12, %v1584_v4  ;;  %v3948_v55 = vpack.c.bf16 %v1591_v53, %v1589_v52  ;;  %v1588_v16 = vld [vmem:[#allocation11 + $0x40] sm:$0xff]  ;;  %v1590_v20 = vld [vmem:[#allocation11 + $0x50] sm:$0xff] }
0x10ce   :  { %1418 = vst.msk [vmem:[#allocation4 + $0xc] sm:$0x3] %vm433_vm5, %v1417_v23  ;;  %v1593_v23 = vld [vmem:[#allocation11 + $0x68] sm:$0xff] }
0x1197   :  { %v1334_v25 = vpop.f32.mrb[10].mxu0 }
0x1198   :  { %v1336_v56 = vpop.f32.mrb[11].mxu0  ;;  %v1339_v35 = vadd.f32 %v1334_v25, %v1263_v58  ;;  %v1595_v25 = vld [vmem:[#allocation11 + $0x78] sm:$0xff] }
0x1199   :  { %v3920_v31 = vadd.f32 %v1336_v56, %v1264_v24  ;;  %v2818_v24 = vld [vmem:[%s4320_s5 + $0x6] sm:$0x3]  ;;  %v3959_v58 = vpack.c.bf16 %v1595_v25, %v1593_v23 }
0x119a   :  { %v2809_v59 = vmul.f32 -1.442695, %v1339_v35  ;;  %v2820_v56 = vld [vmem:[%s4321_s6 + $0x6] sm:$0x3]  ;;  %s3471_s6 = smov 96  }
0x119b   :  { %3236 = vtanh.f32 %v3920_v31  ;;  %v1592_v35 = vld [vmem:[#allocation11 + $0x60] sm:$0xff] }
0x119c   :  { %3238 = vpow2.f32 %v2809_v59  ;;  %v1594_v59 = vld [vmem:[#allocation11 + $0x70] sm:$0xff] }
0x11a5   :  { %v3237_v32 = vpop.eup %3236 }
0x11a6   :  { %1356 = vrot.lane.b32.xlu0 %v3237_v32, %s3470_s15  ;;  %v3239_v60 = vpop.eup %3238  ;;  %v3955_v32 = vpack.c.bf16 %v1590_v20, %v1588_v16 }
0x11a7   :  { %v1347_v61 = vadd.f32 1.0, %v3239_v60  ;;  %v3962_v60 = vpack.c.bf16 %v1594_v59, %v1592_v35 }
0x11a9   :  { %3240 = vrcp.f32 %v1347_v61  ;;  %v2817_v61 = vld [vmem:[%s4320_s5 + $0x4] sm:$0x3] }
0x11b3   :  { %v3241_v62 = vpop.eup %3240 }
0x11b4   :  { %v1354_v14 = vmul.f32 %v3241_v62, %v1230_v19  ;;  %v1582_v19 = vld [vmem:[#allocation11 + $0x10] sm:$0xff] }
0x11b5   :  { %v3939_v49 = vpack.c.bf16 %v1582_v19, %v1580_v6 }
0x11b7   :  { %3014 = vmatpush1.bf16.msra.mxu0 %v3939_v49 }
0x11b8   :  { %3016 = vmatprep.subr.bf16.mxu0 %v3944_v51 }
0x11bb   :  { %3018 = vmatpush1.bf16.msra.mxu0 %v3946_v54 }
0x11bc   :  { %3020 = vmatprep.subr.bf16.mxu0 %v3948_v55 }
0x11bf   :  { %3022 = vmatpush1.bf16.msra.mxu0 %v3955_v32 }
0x11c0   :  { %3024 = vmatprep.subr.bf16.mxu0 %v3959_v58 }
0x11c3   :  { %3026 = vmatpush1.bf16.msra.mxu0 %v3962_v60 }
0x11c4   :  { %3044 = vmatprep.subr.bf16.mxu0 %v3937_v5 }
0x1218   :  { %v1357_v8 = vpop.permute.xlu0 %1356 }
0x1219   :  { %v1359_v17 = vmul.f32 %v3241_v62, %v1357_v8 }
0x121b   :  { %1361 = vrot.lane.b32.xlu1 %v1359_v17, %s3470_s15  ;;  %v2810_v17 = vmul.f32 -1.442695, %v3920_v31 }
0x121f   :  { %1601 = vrot.lane.b32.xlu1 %v2818_v24, %s3468_s4 }
0x128d   :  { %v1362_v21 = vpop.permute.xlu1 %1361 }
0x128e   :  { %v3933_v63 = vadd.f32 %v1362_v21, %v1354_v14 }
0x1290   :  { %3242 = vtanh.f32 %v3933_v63 }
0x1291   :  { %v1602_v62 = vpop.permute.xlu1 %1601  ;;  %3244 = vpow2.f32 %v2810_v17 }
0x1292   :  { %v1604_v8 = vsel %vm286_vm1, %v2817_v61, %v1602_v62 }
0x1293   :  { %2823 = vmatmul.mubr.msk.f32.vlgmr.msra.gmra.mrb[12].mxu0 %vm322_vm2, %v1604_v8 }
0x1294   :  { %3046 = vmatpush1.bf16.msra.mxu0 %v3939_v49  ;;  %1977 = vmatprep.mubr.f32.mxu0 %v3467_v1 }
0x1295   :  { %3048 = vmatprep.subr.bf16.mxu0 %v3944_v51 }
0x1298   :  { %3050 = vmatpush1.bf16.msra.mxu0 %v3946_v54 }
0x1299   :  { %3052 = vmatprep.subr.bf16.mxu0 %v3948_v55 }
0x129a   :  { %v3243_v15 = vpop.eup %3242 }
0x129b   :  { %1367 = vrot.lane.b32.xlu0 %v3243_v15, %s3470_s15  ;;  %v3245_v24 = vpop.eup %3244 }
0x129c   :  { %3054 = vmatpush1.bf16.msra.mxu0 %v3955_v32  ;;  %v1348_v14 = vadd.f32 1.0, %v3245_v24 }
0x129d   :  { %3056 = vmatprep.subr.bf16.mxu0 %v3959_v58 }
0x129e   :  { %3246 = vrcp.f32 %v1348_v14 }
0x129f   :  { %1610 = vrot.lane.b32.xlu0 %v2820_v56, %s3468_s4 }
0x12a0   :  { %3058 = vmatpush1.bf16.msra.mxu0 %v3962_v60 }
0x12a1   :  { %3076 = vmatprep.subr.bf16.mxu0 %v3937_v5 }
0x12a8   :  { %v3247_v21 = vpop.eup %3246 }
0x130d   :  { %v1368_v13 = vpop.permute.xlu0 %1367 }
0x130e   :  { %v3982_v26 = vmul.f32 %v3247_v21, %v1368_v13 }
0x1310   :  { %1372 = vst.msk [vmem:[#allocation3 + $0xe] sm:$0x3] %vm433_vm5, %v3982_v26 }
0x1311   :  { %1374 = vst.msk [vmem:[#allocation12] sm:$0x3] %vm1373_vm7, %v3982_v26  ;;  %v1611_v30 = vpop.permute.xlu0 %1610 }
0x1312   :  { %v1613_v33 = vsel %vm286_vm1, %v2819_v29, %v1611_v30 }
0x1313   :  { %1730 = vrot.lane.b32.xlu0 %v1613_v33, %s3470_s15 }
0x1317   :  { %v1392_v0 = vld [vmem:[#allocation3 + $0xe] sm:$0x3] }
0x1318   :  { %v1419_v18 = vld [vmem:[#allocation3 + $0xe] sm:$0x3]  ;;  %v1393_v31 = vsel %vm109_vm6, %v1391_v2, %v1392_v0 }
0x1319   :  { %v1421_v28 = vsel %vm109_vm6, %v1419_v18, %v1420_v27  ;;  %1394 = vst.msk [vmem:[#allocation4] sm:$0x3] %vm433_vm5, %v1393_v31 }
0x131a   :  { %1422 = vst.msk [vmem:[#allocation4 + $0xe] sm:$0x3] %vm433_vm5, %v1421_v28 }
0x1320   :  { %v1423_v34 = vld [vmem:[#allocation4] sm:$0xff] }
0x1321   :  { %2811 = vmatmul.mubr.msk.f32.vlgmr.msra.gmra.mrb[8].mxu1 %vm322_vm2, %v1423_v34  ;;  %v1424_v36 = vld [vmem:[#allocation4 + $0x8] sm:$0xff] }
0x1322   :  { %1517 = vmatprep.mubr.f32.mxu1 %v3467_v1  ;;  %3030 = vmatpush1.bf16.msra.mxu1 %v3939_v49 }
0x1323   :  { %3032 = vmatprep.subr.bf16.mxu1 %v3944_v51 }
0x1325   :  { %2812 = vmatmul.mubr.msk.f32.gmra.mrb[10].mxu1 %vm322_vm2, %v1424_v36 }
0x1326   :  { %3034 = vmatpush1.bf16.msra.mxu1 %v3946_v54  ;;  %1844 = vmatprep.mubr.f32.mxu1 %v3467_v1 }
0x1327   :  { %3036 = vmatprep.subr.bf16.mxu1 %v3948_v55 }
0x132a   :  { %3038 = vmatpush1.bf16.msra.mxu1 %v3955_v32 }
0x132b   :  { %3040 = vmatprep.subr.bf16.mxu1 %v3959_v58 }
0x132e   :  { %3042 = vmatpush1.bf16.msra.mxu1 %v3962_v60 }
0x132f   :  { %3060 = vmatprep.subr.bf16.mxu1 %v3937_v5 }
0x1366   :  { %v1709_v37 = vpop.f32.mrb[12].mxu0 }
0x1367   :  { %v1711_v38 = vpop.f32.mrb[13].mxu0 }
0x13f4   :  { %v1513_v40 = vpop.f32.mrb[8].mxu1 }
0x13f5   :  { %v1515_v41 = vpop.f32.mrb[9].mxu1 }
0x13f6   :  { %v1526_v42 = vcombine.low %v1513_v40, %v1515_v41  ;;  %v1539_v43 = vcombine.high %v1513_v40, %v1515_v41 }
0x13f8   :  { %v1533_v44 = vrot.slane %v1526_v42, %v3670_v47  ;;  %2813 = vst.sshfl [vmem:[#allocation2] sm:$0x33 pattern:$0x76325410] %v1526_v42  ;;  %v1546_v45 = vrot.slane %v1539_v43, %v3670_v47  ;;  %v1519_v10 = vpop.f32.mrb[10].mxu1 }
0x13f9   :  { %2814 = vst.sshfl [vmem:[#allocation2 + $0x8] sm:$0x33 pattern:$0x76325410] %v1539_v43  ;;  %v1521_v15 = vpop.f32.mrb[11].mxu1 }
0x13fa   :  { %v1536_v22 = vcombine.high %v1533_v44, %v1533_v44  ;;  %v1549_v46 = vcombine.high %v1546_v45, %v1546_v45  ;;  %v1554_v48 = vcombine.low %v1519_v10, %v1521_v15  ;;  %v1567_v7 = vcombine.high %v1519_v10, %v1521_v15 }
0x13fc   :  { %1538 = vst [vmem:[#allocation2 + $0x4] sm:$0xf] %v1536_v22  ;;  %1551 = vst [vmem:[#allocation2 + $0xc] sm:$0xf] %v1549_v46  ;;  %v1561_v9 = vrot.slane %v1554_v48, %v3670_v47  ;;  %v1574_v6 = vrot.slane %v1567_v7, %v3670_v47 }
0x13fd   :  { %2815 = vst.sshfl [vmem:[#allocation2 + $0x10] sm:$0x33 pattern:$0x76325410] %v1554_v48 }
0x13fe   :  { %2816 = vst.sshfl [vmem:[#allocation2 + $0x18] sm:$0x33 pattern:$0x76325410] %v1567_v7  ;;  %v1564_v19 = vcombine.high %v1561_v9, %v1561_v9  ;;  %v1577_v50 = vcombine.high %v1574_v6, %v1574_v6 }
0x13ff   :  { %v4015_v3 = vld.sshfl [vmem:[#allocation2] sm:$0x33 pattern:$0x76325410] }
0x1400   :  { %1566 = vst [vmem:[#allocation2 + $0x14] sm:$0xf] %v1564_v19  ;;  %1579 = vst [vmem:[#allocation2 + $0x1c] sm:$0xf] %v1577_v50  ;;  %v4051_v59 = vcombine.high %v4015_v3, %v4015_v3 }
0x1401   :  { %v4025_v53 = vld.sshfl [vmem:[#allocation2 + $0x8] sm:$0x33 pattern:$0x76325410] }
0x1402   :  { %v4089_v0 = vcombine.high %v4025_v53, %v4025_v53 }
0x1403   :  { %v4019_v12 = vld.sshfl [vmem:[#allocation2 + $0x4] sm:$0x33 pattern:$0x76325410] }
0x1404   :  { %v4029_v47 = vcombine.high %v4019_v12, %v4019_v12  ;;  %v4035_v20 = vld.sshfl [vmem:[#allocation2 + $0x10] sm:$0x33 pattern:$0x76325410] }
0x1405   :  { %v4017_v4 = vld.sshfl [vmem:[#allocation2 + $0x18] sm:$0x33 pattern:$0x76325410]  ;;  %v4045_v56 = vcombine.high %v4035_v20, %v4035_v20 }
0x1406   :  { %v4023_v52 = vcombine.high %v4017_v4, %v4017_v4  ;;  %v1775_v16 = vsel %vm3758_vm4, %v4017_v4, %v4019_v12  ;;  %v2440_v23 = vsel %vm3758_vm4, %v4019_v12, %v4017_v4  ;;  %v4041_v25 = vld.sshfl [vmem:[#allocation2 + $0xc] sm:$0x33 pattern:$0x76325410] }
0x1407   :  { %v4047_v35 = vld.sshfl [vmem:[#allocation2 + $0x1c] sm:$0x33 pattern:$0x76325410]  ;;  %v4055_v61 = vcombine.high %v4041_v25, %v4041_v25  ;;  %v2041_v62 = vsel %vm3758_vm4, %v4035_v20, %v4041_v25  ;;  %v2174_v8 = vsel %vm3758_vm4, %v4041_v25, %v4035_v20 }
0x1408   :  { %v4067_v17 = vcombine.high %v4047_v35, %v4047_v35  ;;  %v1638_v24 = vsel %vm3758_vm4, %v4047_v35, %v4015_v3  ;;  %v4073_v14 = vld.sshfl [vmem:[#allocation2 + $0x14] sm:$0x33 pattern:$0x76325410]  ;;  %v2441_v21 = vsel %vm3707_vm3, %v4029_v47, %v4023_v52  ;;  %v2573_v13 = vsel %vm3758_vm4, %v4015_v3, %v4047_v35 }
0x1409   :  { %v1714_v2 = vadd.f32 %v1709_v37, %v1638_v24  ;;  %v4085_v27 = vcombine.high %v4073_v14, %v4073_v14  ;;  %v1908_v18 = vsel %vm3758_vm4, %v4073_v14, %v4025_v53  ;;  %v2175_v28 = vsel %vm3707_vm3, %v4055_v61, %v4045_v56 }
0x140a   :  { %v1639_v31 = vsel %vm3707_vm3, %v4067_v17, %v4051_v59  ;;  %v2307_v29 = vsel %vm3758_vm4, %v4025_v53, %v4073_v14  ;;  %v2574_v30 = vsel %vm3707_vm3, %v4051_v59, %v4067_v17 }
0x140b   :  { %v1715_v33 = vadd.f32 %v1711_v38, %v1639_v31  ;;  %v2308_v34 = vsel %vm3707_vm3, %v4089_v0, %v4085_v27  ;;  %v2824_v37 = vmul.f32 -1.442695, %v1714_v2  ;;  %v1731_v38 = vpop.permute.xlu0 %1730  ;;  %v1776_v2 = vsel %vm3707_vm3, %v4023_v52, %v4029_v47 }
0x140d   :  { %3248 = vtanh.f32 %v1715_v33  ;;  %v2825_v46 = vmul.f32 -1.442695, %v1715_v33 }
0x140e   :  { %3250 = vpow2.f32 %v2824_v37 }
0x1417   :  { %v3249_v36 = vpop.eup %3248 }
0x1418   :  { %1735 = vrot.lane.b32.xlu1 %v3249_v36, %s3470_s15  ;;  %v3251_v40 = vpop.eup %3250 }
0x1419   :  { %v1722_v41 = vadd.f32 1.0, %v3251_v40 }
0x141b   :  { %3252 = vrcp.f32 %v1722_v41 }
0x1425   :  { %v3253_v42 = vpop.eup %3252 }
0x1426   :  { %v1733_v45 = vmul.f32 %v3253_v42, %v1731_v38 }
0x148a   :  { %v1736_v43 = vpop.permute.xlu1 %1735 }
0x148b   :  { %v1738_v44 = vmul.f32 %v3253_v42, %v1736_v43 }
0x148d   :  { %1740 = vrot.lane.b32.xlu1 %v1738_v44, %s3470_s15 }
0x14ff   :  { %v1741_v10 = vpop.permute.xlu1 %1740 }
0x1500   :  { %v1743_v15 = vadd.f32 %v1741_v10, %v1733_v45 }
0x1502   :  { %3254 = vtanh.f32 %v1743_v15 }
0x1503   :  { %3256 = vpow2.f32 %v2825_v46 }
0x150c   :  { %v3255_v22 = vpop.eup %3254 }
0x150d   :  { %1746 = vrot.lane.b32.xlu0 %v3255_v22, %s3470_s15  ;;  %v3257_v48 = vpop.eup %3256 }
0x150e   :  { %v1723_v7 = vadd.f32 1.0, %v3257_v48 }
0x1510   :  { %3258 = vrcp.f32 %v1723_v7 }
0x151a   :  { %v3259_v9 = vpop.eup %3258 }
0x157f   :  { %v1747_v6 = vpop.permute.xlu0 %1746 }
0x1580   :  { %v1749_v19 = vmul.f32 %v3259_v9, %v1747_v6 }
0x1582   :  { %1750 = vst.msk [vmem:[#allocation3] sm:$0x3] %vm433_vm5, %v1749_v19  ;;  %2828 = vmatmul.mubr.msk.f32.vlgmr.msra.gmra.mrb[12].mxu1 %vm322_vm2, %v1749_v19 }
0x1583   :  { %3062 = vmatpush1.bf16.msra.mxu1 %v3939_v49  ;;  %2110 = vmatprep.mubr.f32.mxu1 %v3467_v1 }
0x1584   :  { %3064 = vmatprep.subr.bf16.mxu1 %v3944_v51 }
0x1587   :  { %3066 = vmatpush1.bf16.msra.mxu1 %v3946_v54 }
0x1588   :  { %3068 = vmatprep.subr.bf16.mxu1 %v3948_v55 }
0x158b   :  { %3070 = vmatpush1.bf16.msra.mxu1 %v3955_v32 }
0x158c   :  { %3072 = vmatprep.subr.bf16.mxu1 %v3959_v58 }
0x158f   :  { %3074 = vmatpush1.bf16.msra.mxu1 %v3962_v60 }
0x1590   :  { %3092 = vmatprep.subr.bf16.mxu1 %v3937_v5 }
0x1655   :  { %v1846_v50 = vpop.f32.mrb[12].mxu1 }
0x1656   :  { %v1851_v24 = vadd.f32 %v1846_v50, %v1775_v16  ;;  %v1848_v31 = vpop.f32.mrb[13].mxu1  ;;  %v1909_v50 = vsel %vm3707_vm3, %v4085_v27, %v4089_v0 }
0x1657   :  { %v1852_v33 = vadd.f32 %v1848_v31, %v1776_v2 }
0x1658   :  { %v2829_v37 = vmul.f32 -1.442695, %v1851_v24 }
0x1659   :  { %3260 = vtanh.f32 %v1852_v33  ;;  %v2830_v22 = vmul.f32 -1.442695, %v1852_v33 }
0x165a   :  { %3262 = vpow2.f32 %v2829_v37 }
0x1663   :  { %v3261_v36 = vpop.eup %3260 }
0x1664   :  { %1868 = vrot.lane.b32.xlu1 %v3261_v36, %s3470_s15  ;;  %v3263_v40 = vpop.eup %3262 }
0x1665   :  { %v1859_v41 = vadd.f32 1.0, %v3263_v40 }
0x1667   :  { %3264 = vrcp.f32 %v1859_v41 }
0x1671   :  { %v3265_v42 = vpop.eup %3264 }
0x1672   :  { %v1866_v16 = vmul.f32 %v3265_v42, %v1743_v15 }
0x16d6   :  { %v1869_v43 = vpop.permute.xlu1 %1868 }
0x16d7   :  { %v1871_v44 = vmul.f32 %v3265_v42, %v1869_v43 }
0x16d9   :  { %1873 = vrot.lane.b32.xlu0 %v1871_v44, %s3470_s15 }
0x174b   :  { %v1874_v38 = vpop.permute.xlu0 %1873 }
0x174c   :  { %v1876_v45 = vadd.f32 %v1874_v38, %v1866_v16 }
0x174e   :  { %3266 = vtanh.f32 %v1876_v45 }
0x174f   :  { %3268 = vpow2.f32 %v2830_v22 }
0x1758   :  { %v3267_v10 = vpop.eup %3266 }
0x1759   :  { %1879 = vrot.lane.b32.xlu1 %v3267_v10, %s3470_s15  ;;  %v3269_v46 = vpop.eup %3268 }
0x175a   :  { %v1860_v48 = vadd.f32 1.0, %v3269_v46 }
0x175c   :  { %3270 = vrcp.f32 %v1860_v48 }
0x1766   :  { %v3271_v7 = vpop.eup %3270 }
0x17cb   :  { %v1880_v9 = vpop.permute.xlu1 %1879 }
0x17cc   :  { %v1882_v6 = vmul.f32 %v3271_v7, %v1880_v9 }
0x17ce   :  { %1883 = vst.msk [vmem:[#allocation3 + $0x2] sm:$0x3] %vm433_vm5, %v1882_v6  ;;  %2833 = vmatmul.mubr.msk.f32.vlgmr.msra.gmra.mrb[14].mxu0 %vm322_vm2, %v1882_v6  ;;  %v2042_v6 = vsel %vm3707_vm3, %v4045_v56, %v4055_v61 }
0x17cf   :  { %3078 = vmatpush1.bf16.msra.mxu0 %v3939_v49  ;;  %2243 = vmatprep.mubr.f32.mxu0 %v3467_v1 }
0x17d0   :  { %3080 = vmatprep.subr.bf16.mxu0 %v3944_v51 }
0x17d3   :  { %3082 = vmatpush1.bf16.msra.mxu0 %v3946_v54 }
0x17d4   :  { %3084 = vmatprep.subr.bf16.mxu0 %v3948_v55 }
0x17d7   :  { %3086 = vmatpush1.bf16.msra.mxu0 %v3955_v32 }
0x17d8   :  { %3088 = vmatprep.subr.bf16.mxu0 %v3959_v58 }
0x17db   :  { %3090 = vmatpush1.bf16.msra.mxu0 %v3962_v60 }
0x17dc   :  { %3108 = vmatprep.subr.bf16.mxu0 %v3937_v5 }
0x18a1   :  { %v1979_v15 = vpop.f32.mrb[14].mxu0 }
0x18a2   :  { %v1984_v19 = vadd.f32 %v1979_v15, %v1908_v18  ;;  %v1981_v24 = vpop.f32.mrb[15].mxu0 }
0x18a3   :  { %v1985_v2 = vadd.f32 %v1981_v24, %v1909_v50 }
0x18a4   :  { %v2834_v33 = vmul.f32 -1.442695, %v1984_v19 }
0x18a5   :  { %3272 = vtanh.f32 %v1985_v2  ;;  %v2835_v38 = vmul.f32 -1.442695, %v1985_v2 }
0x18a6   :  { %3274 = vpow2.f32 %v2834_v33 }
0x18af   :  { %v3273_v31 = vpop.eup %3272 }
0x18b0   :  { %2001 = vrot.lane.b32.xlu0 %v3273_v31, %s3470_s15  ;;  %v3275_v36 = vpop.eup %3274 }
0x18b1   :  { %v1992_v37 = vadd.f32 1.0, %v3275_v36 }
0x18b3   :  { %3276 = vrcp.f32 %v1992_v37 }
0x18bd   :  { %v3277_v40 = vpop.eup %3276 }
0x18be   :  { %v1999_v18 = vmul.f32 %v3277_v40, %v1876_v45 }
0x1922   :  { %v2002_v41 = vpop.permute.xlu0 %2001 }
0x1923   :  { %v2004_v42 = vmul.f32 %v3277_v40, %v2002_v41 }
0x1925   :  { %2006 = vrot.lane.b32.xlu1 %v2004_v42, %s3470_s15 }
0x1997   :  { %v2007_v43 = vpop.permute.xlu1 %2006 }
0x1998   :  { %v2009_v44 = vadd.f32 %v2007_v43, %v1999_v18 }
0x199a   :  { %3278 = vtanh.f32 %v2009_v44 }
0x199b   :  { %3280 = vpow2.f32 %v2835_v38 }
0x19a4   :  { %v3279_v16 = vpop.eup %3278 }
0x19a5   :  { %2012 = vrot.lane.b32.xlu0 %v3279_v16, %s3470_s15  ;;  %v3281_v10 = vpop.eup %3280 }
0x19a6   :  { %v1993_v22 = vadd.f32 1.0, %v3281_v10 }
0x19a8   :  { %3282 = vrcp.f32 %v1993_v22 }
0x19b2   :  { %v3283_v46 = vpop.eup %3282 }
0x1a17   :  { %v2013_v48 = vpop.permute.xlu0 %2012 }
0x1a18   :  { %v2015_v7 = vmul.f32 %v3283_v46, %v2013_v48 }
0x1a1a   :  { %2016 = vst.msk [vmem:[#allocation3 + $0x4] sm:$0x3] %vm433_vm5, %v2015_v7  ;;  %2838 = vmatmul.mubr.msk.f32.vlgmr.msra.gmra.mrb[14].mxu1 %vm322_vm2, %v2015_v7 }
0x1a1b   :  { %3094 = vmatpush1.bf16.msra.mxu1 %v3939_v49  ;;  %2376 = vmatprep.mubr.f32.mxu1 %v3467_v1 }
0x1a1c   :  { %3096 = vmatprep.subr.bf16.mxu1 %v3944_v51 }
0x1a1f   :  { %3098 = vmatpush1.bf16.msra.mxu1 %v3946_v54 }
0x1a20   :  { %3100 = vmatprep.subr.bf16.mxu1 %v3948_v55 }
0x1a23   :  { %3102 = vmatpush1.bf16.msra.mxu1 %v3955_v32 }
0x1a24   :  { %3104 = vmatprep.subr.bf16.mxu1 %v3959_v58 }
0x1a27   :  { %3106 = vmatpush1.bf16.msra.mxu1 %v3962_v60 }
0x1a28   :  { %3124 = vmatprep.subr.bf16.mxu1 %v3937_v5 }
0x1aed   :  { %v2112_v45 = vpop.f32.mrb[14].mxu1 }
0x1aee   :  { %v2117_v9 = vadd.f32 %v2112_v45, %v2041_v62  ;;  %v2114_v15 = vpop.f32.mrb[15].mxu1 }
0x1aef   :  { %v2118_v19 = vadd.f32 %v2114_v15, %v2042_v6 }
0x1af0   :  { %v2839_v24 = vmul.f32 -1.442695, %v2117_v9 }
0x1af1   :  { %3284 = vtanh.f32 %v2118_v19  ;;  %v2840_v42 = vmul.f32 -1.442695, %v2118_v19 }
0x1af2   :  { %3286 = vpow2.f32 %v2839_v24 }
0x1afb   :  { %v3285_v50 = vpop.eup %3284 }
0x1afc   :  { %2134 = vrot.lane.b32.xlu1 %v3285_v50, %s3470_s15  ;;  %v3287_v5 = vpop.eup %3286 }
0x1afd   :  { %v2125_v2 = vadd.f32 1.0, %v3287_v5 }
0x1aff   :  { %3288 = vrcp.f32 %v2125_v2 }
0x1b09   :  { %v3289_v31 = vpop.eup %3288 }
0x1b0a   :  { %v2132_v62 = vmul.f32 %v3289_v31, %v2009_v44 }
0x1b6e   :  { %v2135_v33 = vpop.permute.xlu1 %2134 }
0x1b6f   :  { %v2137_v36 = vmul.f32 %v3289_v31, %v2135_v33 }
0x1b71   :  { %2139 = vrot.lane.b32.xlu0 %v2137_v36, %s3470_s15 }
0x1be3   :  { %v2140_v37 = vpop.permute.xlu0 %2139 }
0x1be4   :  { %v2142_v40 = vadd.f32 %v2140_v37, %v2132_v62 }
0x1be6   :  { %3290 = vtanh.f32 %v2142_v40 }
0x1be7   :  { %3292 = vpow2.f32 %v2840_v42 }
0x1bf0   :  { %v3291_v41 = vpop.eup %3290 }
0x1bf1   :  { %2145 = vrot.lane.b32.xlu1 %v3291_v41, %s3470_s15  ;;  %v3293_v18 = vpop.eup %3292 }
0x1bf2   :  { %v2126_v43 = vadd.f32 1.0, %v3293_v18 }
0x1bf4   :  { %3294 = vrcp.f32 %v2126_v43 }
0x1bfe   :  { %v3295_v16 = vpop.eup %3294 }
0x1c63   :  { %v2146_v38 = vpop.permute.xlu1 %2145 }
0x1c64   :  { %v2148_v10 = vmul.f32 %v3295_v16, %v2146_v38 }
0x1c66   :  { %2149 = vst.msk [vmem:[#allocation3 + $0x6] sm:$0x3] %vm433_vm5, %v2148_v10  ;;  %2843 = vmatmul.mubr.msk.f32.vlgmr.msra.gmra.mrb[16].mxu0 %vm322_vm2, %v2148_v10 }
0x1c67   :  { %3110 = vmatpush1.bf16.msra.mxu0 %v3939_v49  ;;  %2509 = vmatprep.mubr.f32.mxu0 %v3467_v1 }
0x1c68   :  { %3112 = vmatprep.subr.bf16.mxu0 %v3944_v51 }
0x1c6b   :  { %3114 = vmatpush1.bf16.msra.mxu0 %v3946_v54 }
0x1c6c   :  { %3116 = vmatprep.subr.bf16.mxu0 %v3948_v55 }
0x1c6f   :  { %3118 = vmatpush1.bf16.msra.mxu0 %v3955_v32 }
0x1c70   :  { %3120 = vmatprep.subr.bf16.mxu0 %v3959_v58 }
0x1c73   :  { %3122 = vmatpush1.bf16.msra.mxu0 %v3962_v60 }
0x1d39   :  { %v2245_v44 = vpop.f32.mrb[16].mxu0 }
0x1d3a   :  { %v2250_v22 = vadd.f32 %v2245_v44, %v2174_v8  ;;  %v2247_v46 = vpop.f32.mrb[17].mxu0 }
0x1d3b   :  { %v2251_v48 = vadd.f32 %v2247_v46, %v2175_v28 }
0x1d3c   :  { %v2844_v45 = vmul.f32 -1.442695, %v2250_v22 }
0x1d3d   :  { %3296 = vtanh.f32 %v2251_v48  ;;  %v2845_v61 = vmul.f32 -1.442695, %v2251_v48 }
0x1d3e   :  { %3298 = vpow2.f32 %v2844_v45 }
0x1d47   :  { %v3297_v7 = vpop.eup %3296 }
0x1d48   :  { %2267 = vrot.lane.b32.xlu0 %v3297_v7, %s3470_s15  ;;  %v3299_v9 = vpop.eup %3298 }
0x1d49   :  { %v2258_v6 = vadd.f32 1.0, %v3299_v9 }
0x1d4b   :  { %3300 = vrcp.f32 %v2258_v6 }
0x1d55   :  { %v3301_v15 = vpop.eup %3300 }
0x1d56   :  { %v2265_v25 = vmul.f32 %v3301_v15, %v2142_v40 }
0x1dba   :  { %v2268_v19 = vpop.permute.xlu0 %2267 }
0x1dbb   :  { %v2270_v20 = vmul.f32 %v3301_v15, %v2268_v19 }
0x1dbd   :  { %2272 = vrot.lane.b32.xlu1 %v2270_v20, %s3470_s15 }
0x1e2f   :  { %v2273_v8 = vpop.permute.xlu1 %2272 }
0x1e30   :  { %v2275_v50 = vadd.f32 %v2273_v8, %v2265_v25 }
0x1e32   :  { %3302 = vtanh.f32 %v2275_v50 }
0x1e33   :  { %3304 = vpow2.f32 %v2845_v61 }
0x1e3c   :  { %v3303_v56 = vpop.eup %3302 }
0x1e3d   :  { %2278 = vrot.lane.b32.xlu0 %v3303_v56, %s3470_s15  ;;  %v3305_v28 = vpop.eup %3304 }
0x1e3e   :  { %v2259_v24 = vadd.f32 1.0, %v3305_v28 }
0x1e40   :  { %3306 = vrcp.f32 %v2259_v24 }
0x1e4a   :  { %v3307_v5 = vpop.eup %3306 }
0x1eaf   :  { %v2279_v2 = vpop.permute.xlu0 %2278 }
0x1eb0   :  { %v2281_v31 = vmul.f32 %v3307_v5, %v2279_v2 }
0x1eb2   :  { %2282 = vst.msk [vmem:[#allocation3 + $0x8] sm:$0x3] %vm433_vm5, %v2281_v31  ;;  %2848 = vmatmul.mubr.msk.f32.vlgmr.msra.gmra.mrb[16].mxu1 %vm322_vm2, %v2281_v31 }
0x1eb3   :  { %3126 = vmatpush1.bf16.msra.mxu1 %v3939_v49  ;;  %2642 = vmatprep.mubr.f32.mxu1 %v3467_v1 }
0x1eb4   :  { %3128 = vmatprep.subr.bf16.mxu1 %v3944_v51 }
0x1eb7   :  { %3130 = vmatpush1.bf16.msra.mxu1 %v3946_v54 }
0x1eb8   :  { %3132 = vmatprep.subr.bf16.mxu1 %v3948_v55 }
0x1ebb   :  { %3134 = vmatpush1.bf16.msra.mxu1 %v3955_v32 }
0x1ebc   :  { %3136 = vmatprep.subr.bf16.mxu1 %v3959_v58 }
0x1ebf   :  { %3138 = vmatpush1.bf16.msra.mxu1 %v3962_v60 }
0x1f85   :  { %v2378_v33 = vpop.f32.mrb[16].mxu1 }
0x1f86   :  { %v2383_v49 = vadd.f32 %v2378_v33, %v2307_v29  ;;  %v2380_v1 = vpop.f32.mrb[17].mxu1 }
0x1f87   :  { %v2384_v51 = vadd.f32 %v2380_v1, %v2308_v34 }
0x1f88   :  { %v2849_v55 = vmul.f32 -1.442695, %v2383_v49 }
0x1f89   :  { %3308 = vtanh.f32 %v2384_v51  ;;  %v2850_v0 = vmul.f32 -1.442695, %v2384_v51 }
0x1f8a   :  { %3310 = vpow2.f32 %v2849_v55 }
0x1f93   :  { %v3309_v54 = vpop.eup %3308 }
0x1f94   :  { %2400 = vrot.lane.b32.xlu1 %v3309_v54, %s3470_s15  ;;  %v3311_v32 = vpop.eup %3310  ;;  %v2702_v54 = vld [vmem:[#allocation3] sm:$0x3] }
0x1f95   :  { %v2391_v58 = vadd.f32 1.0, %v3311_v32 }
0x1f97   :  { %3312 = vrcp.f32 %v2391_v58 }
0x1fa1   :  { %v3313_v60 = vpop.eup %3312 }
0x1fa2   :  { %v2398_v14 = vmul.f32 %v3313_v60, %v2275_v50 }
0x2006   :  { %v2401_v36 = vpop.permute.xlu1 %2400 }
0x2007   :  { %v2403_v53 = vmul.f32 %v3313_v60, %v2401_v36 }
0x2009   :  { %2405 = vrot.lane.b32.xlu0 %v2403_v53, %s3470_s15 }
0x207b   :  { %v2406_v29 = vpop.permute.xlu0 %2405 }
0x207c   :  { %v2408_v62 = vadd.f32 %v2406_v29, %v2398_v14 }
0x207e   :  { %3314 = vtanh.f32 %v2408_v62 }
0x207f   :  { %3316 = vpow2.f32 %v2850_v0 }
0x2088   :  { %v3315_v27 = vpop.eup %3314 }
0x2089   :  { %2411 = vrot.lane.b32.xlu1 %v3315_v27, %s3470_s15  ;;  %v3317_v34 = vpop.eup %3316 }
0x208a   :  { %v2392_v37 = vadd.f32 1.0, %v3317_v34 }
0x208c   :  { %3318 = vrcp.f32 %v2392_v37 }
0x2096   :  { %v3319_v40 = vpop.eup %3318 }
0x20fb   :  { %v2412_v41 = vpop.permute.xlu1 %2411 }
0x20fc   :  { %v2414_v42 = vmul.f32 %v3319_v40, %v2412_v41 }
0x20fe   :  { %2415 = vst.msk [vmem:[#allocation3 + $0xa] sm:$0x3] %vm433_vm5, %v2414_v42  ;;  %2853 = vmatmul.mubr.msk.f32.vlgmr.msra.gmra.mrb[18].mxu0 %vm322_vm2, %v2414_v42 }
0x21d1   :  { %v2511_v18 = vpop.f32.mrb[18].mxu0 }
0x21d2   :  { %v2516_v43 = vadd.f32 %v2511_v18, %v2440_v23  ;;  %v2513_v16 = vpop.f32.mrb[19].mxu0 }
0x21d3   :  { %v2517_v38 = vadd.f32 %v2513_v16, %v2441_v21 }
0x21d4   :  { %v2854_v44 = vmul.f32 -1.442695, %v2516_v43 }
0x21d5   :  { %3320 = vtanh.f32 %v2517_v38  ;;  %v2855_v47 = vmul.f32 -1.442695, %v2517_v38 }
0x21d6   :  { %3322 = vpow2.f32 %v2854_v44 }
0x21df   :  { %v3321_v10 = vpop.eup %3320 }
0x21e0   :  { %2533 = vrot.lane.b32.xlu0 %v3321_v10, %s3470_s15  ;;  %v3323_v22 = vpop.eup %3322 }
0x21e1   :  { %v2524_v46 = vadd.f32 1.0, %v3323_v22 }
0x21e3   :  { %3324 = vrcp.f32 %v2524_v46 }
0x21ed   :  { %v3325_v48 = vpop.eup %3324 }
0x21ee   :  { %v2531_v12 = vmul.f32 %v3325_v48, %v2408_v62 }
0x2252   :  { %v2534_v7 = vpop.permute.xlu0 %2533 }
0x2253   :  { %v2536_v4 = vmul.f32 %v3325_v48, %v2534_v7 }
0x2255   :  { %2538 = vrot.lane.b32.xlu1 %v2536_v4, %s3470_s15 }
0x22c7   :  { %v2539_v23 = vpop.permute.xlu1 %2538 }
0x22c8   :  { %v2541_v45 = vadd.f32 %v2539_v23, %v2531_v12 }
0x22ca   :  { %3326 = vtanh.f32 %v2541_v45 }
0x22cb   :  { %3328 = vpow2.f32 %v2855_v47 }
0x22d4   :  { %v3327_v52 = vpop.eup %3326 }
0x22d5   :  { %2544 = vrot.lane.b32.xlu0 %v3327_v52, %s3470_s15  ;;  %v3329_v21 = vpop.eup %3328 }
0x22d6   :  { %v2525_v9 = vadd.f32 1.0, %v3329_v21 }
0x22d8   :  { %3330 = vrcp.f32 %v2525_v9 }
0x22e2   :  { %v3331_v6 = vpop.eup %3330 }
0x2347   :  { %v2545_v15 = vpop.permute.xlu0 %2544 }
0x2348   :  { %v2547_v19 = vmul.f32 %v3331_v6, %v2545_v15 }
0x234a   :  { %2548 = vst.msk [vmem:[#allocation3 + $0xc] sm:$0x3] %vm433_vm5, %v2547_v19  ;;  %2858 = vmatmul.mubr.msk.f32.vlgmr.msra.gmra.mrb[18].mxu1 %vm322_vm2, %v2547_v19 }
0x241d   :  { %v2644_v20 = vpop.f32.mrb[18].mxu1 }
0x241e   :  { %v2649_v25 = vadd.f32 %v2644_v20, %v2573_v13  ;;  %v2646_v8 = vpop.f32.mrb[19].mxu1 }
0x241f   :  { %v2650_v50 = vadd.f32 %v2646_v8, %v2574_v30 }
0x2420   :  { %v2859_v61 = vmul.f32 -1.442695, %v2649_v25 }
0x2421   :  { %3332 = vtanh.f32 %v2650_v50  ;;  %v2860_v17 = vmul.f32 -1.442695, %v2650_v50 }
0x2422   :  { %3334 = vpow2.f32 %v2859_v61 }
0x242b   :  { %v3333_v56 = vpop.eup %3332 }
0x242c   :  { %2666 = vrot.lane.b32.xlu1 %v3333_v56, %s3470_s15  ;;  %v3335_v28 = vpop.eup %3334 }
0x242d   :  { %v2657_v24 = vadd.f32 1.0, %v3335_v28 }
0x242f   :  { %3336 = vrcp.f32 %v2657_v24 }
0x2439   :  { %v3337_v39 = vpop.eup %3336 }
0x243a   :  { %v2664_v35 = vmul.f32 %v3337_v39, %v2541_v45 }
0x249e   :  { %v2667_v5 = vpop.permute.xlu1 %2666 }
0x249f   :  { %v2669_v3 = vmul.f32 %v3337_v39, %v2667_v5 }
0x24a1   :  { %2671 = vrot.lane.b32.xlu0 %v2669_v3, %s3470_s15 }
0x2513   :  { %v2672_v11 = vpop.permute.xlu0 %2671 }
0x2514   :  { %v2674_v13 = vadd.f32 %v2672_v11, %v2664_v35 }
0x2516   :  { %3338 = vtanh.f32 %v2674_v13 }
0x2517   :  { %3340 = vpow2.f32 %v2860_v17 }
0x2520   :  { %v3339_v59 = vpop.eup %3338 }
0x2521   :  { %2677 = vrot.lane.b32.xlu1 %v3339_v59, %s3470_s15  ;;  %v3341_v30 = vpop.eup %3340 }
0x2522   :  { %v2658_v2 = vadd.f32 1.0, %v3341_v30 }
0x2524   :  { %3342 = vrcp.f32 %v2658_v2 }
0x2525   :  { %1376 = vrot.lane.b32.xlu1 %v3982_v26, %s3471_s6 }
0x2529   :  { %1382 = vrot.lane.b32.xlu1 %v3933_v63, %s3470_s15 }
0x252d   :  { %1386 = vrot.lane.b32.xlu1 %v3933_v63, %s3468_s4  ;;  %v2861_v63 = vld [vmem:[%s4322_s7] ss:$0 sm:$0xff]  ;;  %s3410_s7 = scalar_lea.vmem %s2733_s12, 128 }
0x252e   :  { %v3343_v31 = vpop.eup %3342  ;;  %p3411_p10 = scmp.ne.s32.totalorder %s2733_s12, %s3410_s7  ;;  %p3416_p12 = scmp.lt.s32.totalorder %s3410_s7, %s3410_s7 }
0x2530   :  { %p3417_p13 = por %p3416_p12, %p3415_p11 }
0x2532   :  { %p3418_p0 = pnand %p3417_p13, %p3411_p10 }
0x2593   :  { %v2678_v33 = vpop.permute.xlu1 %2677 }
0x2594   :  { %v2680_v49 = vmul.f32 %v3343_v31, %v2678_v33 }
0x2596   :  { %2681 = vst.msk [vmem:[#allocation3 + $0xe] sm:$0x3] %vm433_vm5, %v2680_v49  ;;  %2685 = vrot.lane.b32.xlu1 %v2680_v49, %s3471_s6 }
0x2597   :  { %2683 = vst.msk [vmem:[#allocation12 + $0x4] sm:$0x3] %vm1373_vm7, %v2680_v49  ;;  %v1377_v26 = vpop.permute.xlu1 %1376 }
0x2598   :  { %1380 = vst.msk [vmem:[#allocation12 + $0x2] sm:$0x3] %vm1373_vm7, %v1377_v26 }
0x259a   :  { %2691 = vrot.lane.b32.xlu1 %v2674_v13, %s3470_s15 }
0x259b   :  { %v1383_v1 = vpop.permute.xlu1 %1382 }
0x259c   :  { %1385 = vst.msk [vmem:[#allocation13] sm:$0x3] %vm1373_vm7, %v1383_v1 }
0x259d   :  { %v2701_v51 = vld [vmem:[#allocation3 + $0xe] sm:$0x3] }
0x259e   :  { %2696 = vrot.lane.b32.xlu1 %v2674_v13, %s3468_s4  ;;  %v2703_v55 = vsel %vm109_vm6, %v2701_v51, %v2702_v54 }
0x259f   :  { %v1387_v32 = vpop.permute.xlu1 %1386  ;;  %v2711_v58 = vmul.f32 %v2861_v63, %v2703_v55 }
0x25a0   :  { %1390 = vst.msk [vmem:[#allocation13 + $0x2] sm:$0x3] %vm1373_vm7, %v1387_v32 }
0x25a1   :  { %v2712_v60 = vsel %vm433_vm5, %v2711_v58, 0.0 }
0x25a2   :  { %2713 = vadd.xlane.f32.xlu0 %v2712_v60 }
0x2608   :  { %v2686_v36 = vpop.permute.xlu1 %2685 }
0x2609   :  { %2689 = vst.msk [vmem:[#allocation12 + $0x6] sm:$0x3] %vm1373_vm7, %v2686_v36 }
0x260a   :  { %3421 = shalt.err (!%p3418_p0)
}
0x260b   :  { %s3422_s25 = scalar_lea.hbm %s4325_s10, 128 }
0x260c   :  { %p3423_p1 = scmp.ne.s32.totalorder %s4325_s10, %s3422_s25  ;;  %p3426_p2 = scmp.lt.u32.totalorder %s3422_s25, %s4325_s10 }
0x260e   :  { %p3428_p3 = pnand %p3426_p2, %p3423_p1 }
0x2610   :  { %3431 = shalt.err (!%p3428_p3)
}
0x2611   :  { %s3473_s28 = smov 2   ;;  %v2692_v57 = vpop.permute.xlu1 %2691  ;;  %s3474_s13 = smov [#allocation13]  }
0x2612   :  { %2738 = dma.vmem_to_hbm [thread:$0]  %s2733_s12, 128, %s4325_s10, [#allocation8], %s3468_s4, %s3468_s4, %s3473_s28   ;;  %2695 = vst.msk [vmem:[#allocation13 + $0x4] sm:$0x3] %vm1373_vm7, %v2692_v57 }
0x2613   :  { %s2744_s14 = sshll.u32 %s3474_s13, 4  ;;  %s2745_s14 = int_to_ptr.vmem [resolvable:$true] %s2744_s14 }
0x2614   :  { %s3432_s15 = scalar_lea.vmem %s2745_s14, 128  ;;  %p3437_p5 = scmp.lt.s32.totalorder %s2745_s14, %s2745_s14 }
0x2615   :  { %v2697_v53 = vpop.permute.xlu1 %2696  ;;  %p3433_p4 = scmp.ne.s32.totalorder %s2745_s14, %s3432_s15  ;;  %p3438_p6 = scmp.lt.s32.totalorder %s3432_s15, %s3432_s15 }
0x2616   :  { %2700 = vst.msk [vmem:[#allocation13 + $0x6] sm:$0x3] %vm1373_vm7, %v2697_v53 }
0x2617   :  { %p3439_p7 = por %p3438_p6, %p3437_p5 }
0x2619   :  { %p3440_p8 = pnand %p3439_p7, %p3433_p4 }
0x261b   :  { %3443 = shalt.err (!%p3440_p8)
}
0x261c   :  { %s3444_s10 = scalar_lea.hbm %s4326_s11, 128 }
0x261d   :  { %p3445_p9 = scmp.ne.s32.totalorder %s4326_s11, %s3444_s10  ;;  %p3448_p10 = scmp.lt.u32.totalorder %s3444_s10, %s4326_s11 }
0x261f   :  { %p3450_p11 = pnand %p3448_p10, %p3445_p9 }
0x2621   :  { %3453 = shalt.err (!%p3450_p11)
}
0x2622   :  { %2750 = dma.vmem_to_hbm [thread:$0]  %s2745_s14, 128, %s4326_s11, [#allocation14], %s3468_s4, %s3468_s4, %s3473_s28   ;;  %v2862_v14 = vld [vmem:[#allocation5] ss:$0 sm:$0xff]  ;;  %vm2723_vm8 = vcmask 1024  }
0x262f   :  { %v2714_v29 = vpop.xlane.xlu0 %2713 }
0x2630   :  { %v2722_v62 = vadd.f32 %v2862_v14, %v2714_v29 }
0x2632   :  { %2724 = vst.msk [vmem:[%s4324_s9] sm:$0x3] %vm2723_vm8, %v2722_v62 }
0x2633   :  { %3458 = dma.done.wait [#allocation8], 128  }
0x2634   :  { %3459 = vsyncadd [#allocation8], 4294967168 }
0x2635   :  { %3460 = dma.done.wait [#allocation14], 128  }
0x2636   :  { %3461 = vsyncadd [#allocation14], 4294967168 }
0x2637   :  { %2759 = vsyncpa [#allocation7], 1 }
0x2638   :  { %2760 = vsyncpa [#allocation10], 1 }
0x2639   :  { %2761 = vsyncpa [#allocation8], 1 }
0x263a   :  { %2762 = vsyncpa [#allocation14], 1 }

</bundles_post_ra>
